<compile_context>
chip_gen: v6e
topology: v6e:2x2x1
jax: 0.10.0
libtpu: 0.0.40
codegen_flags: <defaults>
</compile_context>

<pallas_src>
import functools

import jax
import jax.numpy as jnp
from jax.experimental import pallas as pl
from jax.experimental.pallas import tpu as pltpu

DIM_FEATURE = 3
DIM_HIDDEN = 128
S_ROUNDS = 1
T_ROUNDS = 1


# ---------------------------------------------------------------------------
# Pallas kernel: both encoders, all rounds, forward + reverse direction.
# Grid-less single invocation; everything VMEM-resident once.
# ---------------------------------------------------------------------------
def _fused_encoder_kernel(s_rounds, t_rounds,
                          a_ref, ar_ref, xif_ref, xir_ref,
                          aggw_ref, aggrw_ref,
                          wihm_ref, whh_ref, bhh_ref,
                          wihmr_ref, whhr_ref, bhhr_ref,
                          out_ref):
    H = out_ref.shape[-1]
    Np = out_ref.shape[1]

    a = a_ref[...]                      # (Np, Np) bf16, A[dst, src]
    ar = ar_ref[...]                    # (Np, Np) bf16, A^T (reverse edges)
    xi_f = (xif_ref[0], xif_ref[1])     # (Np, 3H) f32, loop-invariant
    xi_r = (xir_ref[0], xir_ref[1])

    def gru_cell(e, msg, h, xi, wm_ref, wh_ref, bh_ref):
        """PyTorch nn.GRU single step, gate order (r, z, n).

        bf16 matmul operands, f32 accumulation; element-wise math in f32.
        """
        gi = jnp.dot(msg.astype(jnp.bfloat16), wm_ref[e],
                     preferred_element_type=jnp.float32) + xi
        gh = jnp.dot(h.astype(jnp.bfloat16), wh_ref[e],
                     preferred_element_type=jnp.float32) + bh_ref[e]
        r = jax.nn.sigmoid(gi[:, :H] + gh[:, :H])
        z = jax.nn.sigmoid(gi[:, H:2 * H] + gh[:, H:2 * H])
        n = jnp.tanh(gi[:, 2 * H:] + r * gh[:, 2 * H:])
        return (1.0 - z) * n + z * h

    # node_state = torch.ones(1, num_nodes, dim_hidden); carried as local
    # values -> one final store per encoder, no per-round VMEM round-trip.
    h = [jnp.ones((Np, H), jnp.float32), jnp.ones((Np, H), jnp.float32)]
    rounds = (int(s_rounds), int(t_rounds))

    # Rounds are static module hyper-parameters -> static Python unroll with
    # static per-encoder gating (no scalar prefetch / pl.when needed).
    # TODO(synk): for large round counts switch to lax.fori_loop carrying h.
    for rnd in range(max(rounds) if rounds else 0):
        active = (rnd < rounds[0], rnd < rounds[1])

        # forward aggregation: msg[dst] = sum_{(src,dst) in E} W_agg h[src]
        # Both encoders batched into one (Np, 2H)-wide RHS for the MXU.
        lin = jnp.concatenate(
            [jnp.dot(h[e].astype(jnp.bfloat16), aggw_ref[e],
                     preferred_element_type=jnp.float32).astype(jnp.bfloat16)
             for e in (0, 1)], axis=1)                       # (Np, 2H) bf16
        msg = jnp.dot(a, lin, preferred_element_type=jnp.float32)
        for e in (0, 1):
            if active[e]:
                h[e] = gru_cell(e, msg[:, e * H:(e + 1) * H], h[e], xi_f[e],
                                wihm_ref, whh_ref, bhh_ref)

        # reverse aggregation (edge direction flipped)
        lin = jnp.concatenate(
            [jnp.dot(h[e].astype(jnp.bfloat16), aggrw_ref[e],
                     preferred_element_type=jnp.float32).astype(jnp.bfloat16)
             for e in (0, 1)], axis=1)
        msg = jnp.dot(ar, lin, preferred_element_type=jnp.float32)
        for e in (0, 1):
            if active[e]:
                h[e] = gru_cell(e, msg[:, e * H:(e + 1) * H], h[e], xi_r[e],
                                wihmr_ref, whhr_ref, bhhr_ref)

    out_ref[0] = h[0]
    out_ref[1] = h[1]


# ---------------------------------------------------------------------------
# Wrapper: adjacency construction, hoisted projections, pallas_call.
# ---------------------------------------------------------------------------
def _round_up(n, m):
    return ((n + m - 1) // m) * m


def direct_multi_gcn_encoder(s, t, edge_index, src_params, tgt_params,
                             s_rounds=S_ROUNDS, t_rounds=T_ROUNDS):
    N = s.shape[0]
    H = DIM_HIDDEN
    H3 = 3 * H
    Np = max(_round_up(N, 128), 128)      # lane-dense node dimension
    E = edge_index.shape[1]

    src, dst = edge_index[0], edge_index[1]

    # Dense adjacency built directly in bf16 (edge multiplicities are small
    # integers -> exact up to 256).  Reverse adjacency scattered separately so
    # no f32 intermediate / dense transpose pass over Np^2 data is needed.
    one = jnp.ones((E,), jnp.bfloat16)
    A_bf = jnp.zeros((Np, Np), jnp.bfloat16).at[dst, src].add(one)   # A[dst,src]
    Ar_bf = jnp.zeros((Np, Np), jnp.bfloat16).at[src, dst].add(one)  # A^T

    # Degrees via O(E) segment sums (needed only for the folded agg bias).
    ones_e = jnp.ones((E,), jnp.float32)
    deg_f = jax.ops.segment_sum(ones_e, dst, num_segments=Np)[:, None]  # in-deg
    deg_r = jax.ops.segment_sum(ones_e, src, num_segments=Np)[:, None]  # out-deg

    def pad_rows(x):
        return jnp.zeros((Np, x.shape[1]), x.dtype).at[:x.shape[0], :].set(x)

    xs, xt = pad_rows(s), pad_rows(t)

    # Hoisted, loop-invariant GRU input projection with the aggregation bias
    # folded in:   gi = msg@Wm + [ x@Wx + b_ih + (deg*agg_b)@Wm ]
    # where msg now excludes the aggregation bias.  Padded nodes never affect
    # real nodes because their adjacency columns are zero.
    def make_xi(xp, p):
        xi_fwd = xp @ p["wih_x_t"] + p["b_ih"] + (deg_f * p["agg_b"]) @ p["wih_m_t"]
        xi_rev = xp @ p["wih_x_r_t"] + p["b_ih_r"] + (deg_r * p["agg_r_b"]) @ p["wih_m_r_t"]
        return xi_fwd, xi_rev

    xi_s_f, xi_s_r = make_xi(xs, src_params)
    xi_t_f, xi_t_r = make_xi(xt, tgt_params)
    xi_f = jnp.stack([xi_s_f, xi_t_f])                 # (2, Np, 3H) f32
    xi_r = jnp.stack([xi_s_r, xi_t_r])
    # TODO(synk): optionally ship xi in bf16 to halve its VMEM/HBM footprint.

    def stack(name, dtype):
        return jnp.stack([src_params[name], tgt_params[name]]).astype(dtype)

    aggw = stack("agg_w_t", jnp.bfloat16)              # (2, H, H)
    aggrw = stack("agg_r_w_t", jnp.bfloat16)
    wihm = stack("wih_m_t", jnp.bfloat16)              # (2, H, 3H)
    whh = stack("whh_t", jnp.bfloat16)
    bhh = stack("b_hh", jnp.float32)                   # (2, 1, 3H)
    wihmr = stack("wih_m_r_t", jnp.bfloat16)
    whhr = stack("whh_r_t", jnp.bfloat16)
    bhhr = stack("b_hh_r", jnp.float32)

    inputs = [A_bf, Ar_bf, xi_f, xi_r, aggw, aggrw,
              wihm, whh, bhh, wihmr, whhr, bhhr]

    # VMEM budget: single-buffered residency of all operands + working temps.
    in_bytes = int(sum(a.nbytes for a in inputs))
    out_bytes = 2 * Np * H * 4
    work_bytes = 10 * Np * H3 * 4                      # gi/gh/lin/msg/h temps
    needed = in_bytes + out_bytes + work_bytes
    try:
        vmem_cap = int(getattr(pltpu.get_tpu_info(), "vmem_capacity_bytes", 0)) or (64 << 20)
    except Exception:  # pragma: no cover - conservative fallback
        vmem_cap = 64 << 20
    vmem_limit = int(min(max(int(1.5 * needed), 32 << 20), int(0.85 * vmem_cap)))

    max_rounds = max(int(s_rounds), int(t_rounds))
    flops_per_round = (8 * Np * Np * H                 # A / A^T @ (Np, 2H)
                       + 8 * Np * H * H                # agg linears
                       + 48 * Np * H * H)              # GRU matmuls (3H wide)
    cost = pl.CostEstimate(
        flops=int(flops_per_round * max(max_rounds, 1)),
        transcendentals=int(12 * Np * H * max(max_rounds, 1)),
        bytes_accessed=int(in_bytes + out_bytes),
    )

    kernel = functools.partial(_fused_encoder_kernel, int(s_rounds), int(t_rounds))
    out = pl.pallas_call(
        kernel,
        out_shape=jax.ShapeDtypeStruct((2, Np, H), jnp.float32),
        compiler_params=pltpu.CompilerParams(vmem_limit_bytes=vmem_limit),
        cost_estimate=cost,
    )(*inputs)

    return out[0, :N], out[1, :N]


# ---------------------------------------------------------------------------
# Parameter init (matches nn.Linear / nn.GRU layout of the PyTorch module).
# ---------------------------------------------------------------------------
def init_encoder_params(key, dim_feature, dim_hidden):
    H, F = dim_hidden, dim_feature
    k = 1.0 / (H ** 0.5)
    ks = jax.random.split(key, 12)

    def u(kk, shape):
        return jax.random.uniform(kk, shape, jnp.float32, -k, k)

    agg_w, agg_b = u(ks[0], (H, H)), u(ks[1], (1, H))          # AggConv Linear(H, H)
    agg_r_w, agg_r_b = u(ks[2], (H, H)), u(ks[3], (1, H))
    wih, whh = u(ks[4], (3 * H, H + F)), u(ks[5], (3 * H, H))  # nn.GRU(H+F, H)
    b_ih, b_hh = u(ks[6], (1, 3 * H)), u(ks[7], (1, 3 * H))
    wih_r, whh_r = u(ks[8], (3 * H, H + F)), u(ks[9], (3 * H, H))
    b_ih_r, b_hh_r = u(ks[10], (1, 3 * H)), u(ks[11], (1, 3 * H))

    return dict(
        agg_w_t=agg_w.T, agg_b=agg_b,
        agg_r_w_t=agg_r_w.T, agg_r_b=agg_r_b,
        wih_m_t=wih[:, :H].T, wih_x_t=wih[:, H:].T, whh_t=whh.T,
        b_ih=b_ih, b_hh=b_hh,
        wih_m_r_t=wih_r[:, :H].T, wih_x_r_t=wih_r[:, H:].T, whh_r_t=whh_r.T,
        b_ih_r=b_ih_r, b_hh_r=b_hh_r,
    )


# pure-JAX f32 reference (original, unfolded math) for correctness checking
def _encoder_ref(x, A, A_r, p, num_rounds):
    N = x.shape[0]
    H = DIM_HIDDEN
    h = jnp.ones((N, H), jnp.float32)

    def gru(msg, h, wm, wx, wh, bi, bh):
        gi = msg @ wm + x @ wx + bi
        gh = h @ wh + bh
        i_r, i_z, i_n = jnp.split(gi, 3, axis=-1)
        h_r, h_z, h_n = jnp.split(gh, 3, axis=-1)
        r = jax.nn.sigmoid(i_r + h_r)
        z = jax.nn.sigmoid(i_z + h_z)
        n = jnp.tanh(i_n + r * h_n)
        return (1.0 - z) * n + z * h

    for _ in range(num_rounds):
        msg = A @ (h @ p["agg_w_t"] + p["agg_b"])
        h = gru(msg, h, p["wih_m_t"], p["wih_x_t"], p["whh_t"], p["b_ih"], p["b_hh"])
        msg = A_r @ (h @ p["agg_r_w_t"] + p["agg_r_b"])
        h = gru(msg, h, p["wih_m_r_t"], p["wih_x_r_t"], p["whh_r_t"],
                p["b_ih_r"], p["b_hh_r"])
    return h


if __name__ == "__main__":
    key = jax.random.PRNGKey(0)
    k_s, k_t, k_e, k_ps, k_pt = jax.random.split(key, 5)

    N, E = 16, 32
    s = jax.random.normal(k_s, (N, DIM_FEATURE), jnp.float32)
    t = jax.random.normal(k_t, (N, DIM_FEATURE), jnp.float32)
    edge_index = jax.random.randint(k_e, (2, E), 0, N, dtype=jnp.int32)

    src_params = init_encoder_params(k_ps, DIM_FEATURE, DIM_HIDDEN)
    tgt_params = init_encoder_params(k_pt, DIM_FEATURE, DIM_HIDDEN)

    s_out, t_out = direct_multi_gcn_encoder(s, t, edge_index, src_params, tgt_params)
    jax.block_until_ready((s_out, t_out))

    # sanity check against pure-JAX f32 reference (bf16 matmul operands in the
    # kernel -> loose tolerance)
    A = jnp.zeros((N, N), jnp.float32).at[edge_index[1], edge_index[0]].add(1.0)
    A_r = A.T
    s_ref = _encoder_ref(s, A, A_r, src_params, S_ROUNDS)
    t_ref = _encoder_ref(t, A, A_r, tgt_params, T_ROUNDS)

    assert s_out.shape == (N, DIM_HIDDEN) and t_out.shape == (N, DIM_HIDDEN)
    assert bool(jnp.all(jnp.isfinite(s_out))) and bool(jnp.all(jnp.isfinite(t_out)))
    assert bool(jnp.allclose(s_out, s_ref, atol=5e-2, rtol=5e-2))
    assert bool(jnp.allclose(t_out, t_ref, atol=5e-2, rtol=5e-2))

    print("KERNEL_OK")
</pallas_src>

<mosaic_0001>
module attributes {stable_mosaic.version = 11 : i64} {
  func.func @_fused_encoder_kernel(%arg0: memref<128x128xbf16, #tpu.memory_space<vmem>>, %arg1: memref<128x128xbf16, #tpu.memory_space<vmem>>, %arg2: memref<2x128x384xf32, #tpu.memory_space<vmem>>, %arg3: memref<2x128x384xf32, #tpu.memory_space<vmem>>, %arg4: memref<2x128x128xbf16, #tpu.memory_space<vmem>>, %arg5: memref<2x128x128xbf16, #tpu.memory_space<vmem>>, %arg6: memref<2x128x384xbf16, #tpu.memory_space<vmem>>, %arg7: memref<2x128x384xbf16, #tpu.memory_space<vmem>>, %arg8: memref<2x1x384xf32, #tpu.memory_space<vmem>>, %arg9: memref<2x128x384xbf16, #tpu.memory_space<vmem>>, %arg10: memref<2x128x384xbf16, #tpu.memory_space<vmem>>, %arg11: memref<2x1x384xf32, #tpu.memory_space<vmem>>, %arg12: memref<2x128x128xf32, #tpu.memory_space<vmem>>) attributes {dimension_semantics = [], scalar_prefetch = 0 : i64, scratch_operands = 0 : i64, tpu.core_type = #tpu.core_type<tc>} {
    %c0 = arith.constant 0 : index
    %c0_0 = arith.constant 0 : index
    %0 = vector.load %arg0[%c0, %c0_0] : memref<128x128xbf16, #tpu.memory_space<vmem>>, vector<128x128xbf16>
    %c0_1 = arith.constant 0 : index
    %c0_2 = arith.constant 0 : index
    %1 = vector.load %arg1[%c0_1, %c0_2] : memref<128x128xbf16, #tpu.memory_space<vmem>>, vector<128x128xbf16>
    %c0_3 = arith.constant 0 : index
    %c0_4 = arith.constant 0 : index
    %c0_5 = arith.constant 0 : index
    %2 = vector.load %arg2[%c0_3, %c0_4, %c0_5] : memref<2x128x384xf32, #tpu.memory_space<vmem>>, vector<1x128x384xf32>
    %3 = vector.shape_cast %2 : vector<1x128x384xf32> to vector<128x384xf32>
    %c1 = arith.constant 1 : index
    %c0_6 = arith.constant 0 : index
    %c0_7 = arith.constant 0 : index
    %4 = vector.load %arg2[%c1, %c0_6, %c0_7] : memref<2x128x384xf32, #tpu.memory_space<vmem>>, vector<1x128x384xf32>
    %5 = vector.shape_cast %4 : vector<1x128x384xf32> to vector<128x384xf32>
    %c0_8 = arith.constant 0 : index
    %c0_9 = arith.constant 0 : index
    %c0_10 = arith.constant 0 : index
    %6 = vector.load %arg3[%c0_8, %c0_9, %c0_10] : memref<2x128x384xf32, #tpu.memory_space<vmem>>, vector<1x128x384xf32>
    %7 = vector.shape_cast %6 : vector<1x128x384xf32> to vector<128x384xf32>
    %c1_11 = arith.constant 1 : index
    %c0_12 = arith.constant 0 : index
    %c0_13 = arith.constant 0 : index
    %8 = vector.load %arg3[%c1_11, %c0_12, %c0_13] : memref<2x128x384xf32, #tpu.memory_space<vmem>>, vector<1x128x384xf32>
    %9 = vector.shape_cast %8 : vector<1x128x384xf32> to vector<128x384xf32>
    %cst = arith.constant 1.000000e+00 : f32
    %10 = vector.broadcast %cst : f32 to vector<128x128xf32>
    %cst_14 = arith.constant 1.000000e+00 : f32
    %11 = vector.broadcast %cst_14 : f32 to vector<128x128xf32>
    %12 = arith.truncf %10 : vector<128x128xf32> to vector<128x128xbf16>
    %c0_15 = arith.constant 0 : index
    %c0_16 = arith.constant 0 : index
    %c0_17 = arith.constant 0 : index
    %13 = vector.load %arg4[%c0_15, %c0_16, %c0_17] : memref<2x128x128xbf16, #tpu.memory_space<vmem>>, vector<1x128x128xbf16>
    %14 = vector.shape_cast %13 : vector<1x128x128xbf16> to vector<128x128xbf16>
    %cst_18 = arith.constant dense<0.000000e+00> : vector<128x128xf32>
    %15 = tpu.matmul %12, %14, %cst_18 {dimension_numbers = #tpu.dot_dimension_numbers<[1], [0], [0], [1], [0, 0, 1, 1], [], []>} : vector<128x128xbf16>, vector<128x128xbf16>, vector<128x128xf32> -> vector<128x128xf32>
    %16 = arith.truncf %15 : vector<128x128xf32> to vector<128x128xbf16>
    %17 = arith.truncf %11 : vector<128x128xf32> to vector<128x128xbf16>
    %c1_19 = arith.constant 1 : index
    %c0_20 = arith.constant 0 : index
    %c0_21 = arith.constant 0 : index
    %18 = vector.load %arg4[%c1_19, %c0_20, %c0_21] : memref<2x128x128xbf16, #tpu.memory_space<vmem>>, vector<1x128x128xbf16>
    %19 = vector.shape_cast %18 : vector<1x128x128xbf16> to vector<128x128xbf16>
    %cst_22 = arith.constant dense<0.000000e+00> : vector<128x128xf32>
    %20 = tpu.matmul %17, %19, %cst_22 {dimension_numbers = #tpu.dot_dimension_numbers<[1], [0], [0], [1], [0, 0, 1, 1], [], []>} : vector<128x128xbf16>, vector<128x128xbf16>, vector<128x128xf32> -> vector<128x128xf32>
    %21 = arith.truncf %20 : vector<128x128xf32> to vector<128x128xbf16>
    %22 = tpu.concatenate %16, %21 in 1 : vector<128x128xbf16>, vector<128x128xbf16> -> vector<128x256xbf16>
    %cst_23 = arith.constant dense<0.000000e+00> : vector<128x256xf32>
    %23 = tpu.matmul %0, %22, %cst_23 {dimension_numbers = #tpu.dot_dimension_numbers<[1], [0], [0], [1], [0, 0, 1, 1], [], []>} : vector<128x128xbf16>, vector<128x256xbf16>, vector<128x256xf32> -> vector<128x256xf32>
    %24 = vector.extract_strided_slice %23 {offsets = [0, 0], sizes = [128, 128], strides = [1, 1]} : vector<128x256xf32> to vector<128x128xf32>
    %25 = arith.truncf %24 : vector<128x128xf32> to vector<128x128xbf16>
    %c0_24 = arith.constant 0 : index
    %c0_25 = arith.constant 0 : index
    %c0_26 = arith.constant 0 : index
    %26 = vector.load %arg6[%c0_24, %c0_25, %c0_26] : memref<2x128x384xbf16, #tpu.memory_space<vmem>>, vector<1x128x384xbf16>
    %27 = vector.shape_cast %26 : vector<1x128x384xbf16> to vector<128x384xbf16>
    %cst_27 = arith.constant dense<0.000000e+00> : vector<128x384xf32>
    %28 = tpu.matmul %25, %27, %cst_27 {dimension_numbers = #tpu.dot_dimension_numbers<[1], [0], [0], [1], [0, 0, 1, 1], [], []>} : vector<128x128xbf16>, vector<128x384xbf16>, vector<128x384xf32> -> vector<128x384xf32>
    %29 = arith.addf %28, %3 : vector<128x384xf32>
    %30 = arith.truncf %10 : vector<128x128xf32> to vector<128x128xbf16>
    %c0_28 = arith.constant 0 : index
    %c0_29 = arith.constant 0 : index
    %c0_30 = arith.constant 0 : index
    %31 = vector.load %arg7[%c0_28, %c0_29, %c0_30] : memref<2x128x384xbf16, #tpu.memory_space<vmem>>, vector<1x128x384xbf16>
    %32 = vector.shape_cast %31 : vector<1x128x384xbf16> to vector<128x384xbf16>
    %cst_31 = arith.constant dense<0.000000e+00> : vector<128x384xf32>
    %33 = tpu.matmul %30, %32, %cst_31 {dimension_numbers = #tpu.dot_dimension_numbers<[1], [0], [0], [1], [0, 0, 1, 1], [], []>} : vector<128x128xbf16>, vector<128x384xbf16>, vector<128x384xf32> -> vector<128x384xf32>
    %c0_32 = arith.constant 0 : index
    %c0_33 = arith.constant 0 : index
    %c0_34 = arith.constant 0 : index
    %34 = vector.load %arg8[%c0_32, %c0_33, %c0_34] : memref<2x1x384xf32, #tpu.memory_space<vmem>>, vector<1x1x384xf32>
    %35 = vector.shape_cast %34 : vector<1x1x384xf32> to vector<1x384xf32>
    %36 = vector.broadcast %35 : vector<1x384xf32> to vector<128x384xf32>
    %37 = arith.addf %33, %36 : vector<128x384xf32>
    %38 = vector.extract_strided_slice %29 {offsets = [0, 0], sizes = [128, 128], strides = [1, 1]} : vector<128x384xf32> to vector<128x128xf32>
    %39 = vector.extract_strided_slice %37 {offsets = [0, 0], sizes = [128, 128], strides = [1, 1]} : vector<128x384xf32> to vector<128x128xf32>
    %40 = arith.addf %38, %39 : vector<128x128xf32>
    %41 = arith.negf %40 : vector<128x128xf32>
    %42 = math.exp %41 : vector<128x128xf32>
    %cst_35 = arith.constant 1.000000e+00 : f32
    %43 = vector.broadcast %cst_35 : f32 to vector<128x128xf32>
    %44 = arith.addf %43, %42 : vector<128x128xf32>
    %45 = arith.divf %43, %44 : vector<128x128xf32>
    %46 = vector.extract_strided_slice %29 {offsets = [0, 128], sizes = [128, 128], strides = [1, 1]} : vector<128x384xf32> to vector<128x128xf32>
    %47 = vector.extract_strided_slice %37 {offsets = [0, 128], sizes = [128, 128], strides = [1, 1]} : vector<128x384xf32> to vector<128x128xf32>
    %48 = arith.addf %46, %47 : vector<128x128xf32>
    %49 = arith.negf %48 : vector<128x128xf32>
    %50 = math.exp %49 : vector<128x128xf32>
    %cst_36 = arith.constant 1.000000e+00 : f32
    %51 = vector.broadcast %cst_36 : f32 to vector<128x128xf32>
    %52 = arith.addf %51, %50 : vector<128x128xf32>
    %53 = arith.divf %51, %52 : vector<128x128xf32>
    %54 = vector.extract_strided_slice %29 {offsets = [0, 256], sizes = [128, 128], strides = [1, 1]} : vector<128x384xf32> to vector<128x128xf32>
    %55 = vector.extract_strided_slice %37 {offsets = [0, 256], sizes = [128, 128], strides = [1, 1]} : vector<128x384xf32> to vector<128x128xf32>
    %56 = arith.mulf %45, %55 : vector<128x128xf32>
    %57 = arith.addf %54, %56 : vector<128x128xf32>
    %58 = math.tanh %57 : vector<128x128xf32>
    %cst_37 = arith.constant 1.000000e+00 : f32
    %59 = vector.broadcast %cst_37 : f32 to vector<128x128xf32>
    %60 = arith.subf %59, %53 : vector<128x128xf32>
    %61 = arith.mulf %60, %58 : vector<128x128xf32>
    %62 = arith.mulf %53, %10 : vector<128x128xf32>
    %63 = arith.addf %61, %62 : vector<128x128xf32>
    %64 = vector.extract_strided_slice %23 {offsets = [0, 128], sizes = [128, 128], strides = [1, 1]} : vector<128x256xf32> to vector<128x128xf32>
    %65 = arith.truncf %64 : vector<128x128xf32> to vector<128x128xbf16>
    %c1_38 = arith.constant 1 : index
    %c0_39 = arith.constant 0 : index
    %c0_40 = arith.constant 0 : index
    %66 = vector.load %arg6[%c1_38, %c0_39, %c0_40] : memref<2x128x384xbf16, #tpu.memory_space<vmem>>, vector<1x128x384xbf16>
    %67 = vector.shape_cast %66 : vector<1x128x384xbf16> to vector<128x384xbf16>
    %cst_41 = arith.constant dense<0.000000e+00> : vector<128x384xf32>
    %68 = tpu.matmul %65, %67, %cst_41 {dimension_numbers = #tpu.dot_dimension_numbers<[1], [0], [0], [1], [0, 0, 1, 1], [], []>} : vector<128x128xbf16>, vector<128x384xbf16>, vector<128x384xf32> -> vector<128x384xf32>
    %69 = arith.addf %68, %5 : vector<128x384xf32>
    %70 = arith.truncf %11 : vector<128x128xf32> to vector<128x128xbf16>
    %c1_42 = arith.constant 1 : index
    %c0_43 = arith.constant 0 : index
    %c0_44 = arith.constant 0 : index
    %71 = vector.load %arg7[%c1_42, %c0_43, %c0_44] : memref<2x128x384xbf16, #tpu.memory_space<vmem>>, vector<1x128x384xbf16>
    %72 = vector.shape_cast %71 : vector<1x128x384xbf16> to vector<128x384xbf16>
    %cst_45 = arith.constant dense<0.000000e+00> : vector<128x384xf32>
    %73 = tpu.matmul %70, %72, %cst_45 {dimension_numbers = #tpu.dot_dimension_numbers<[1], [0], [0], [1], [0, 0, 1, 1], [], []>} : vector<128x128xbf16>, vector<128x384xbf16>, vector<128x384xf32> -> vector<128x384xf32>
    %c1_46 = arith.constant 1 : index
    %c0_47 = arith.constant 0 : index
    %c0_48 = arith.constant 0 : index
    %74 = vector.load %arg8[%c1_46, %c0_47, %c0_48] : memref<2x1x384xf32, #tpu.memory_space<vmem>>, vector<1x1x384xf32>
    %75 = vector.shape_cast %74 : vector<1x1x384xf32> to vector<1x384xf32>
    %76 = vector.broadcast %75 : vector<1x384xf32> to vector<128x384xf32>
    %77 = arith.addf %73, %76 : vector<128x384xf32>
    %78 = vector.extract_strided_slice %69 {offsets = [0, 0], sizes = [128, 128], strides = [1, 1]} : vector<128x384xf32> to vector<128x128xf32>
    %79 = vector.extract_strided_slice %77 {offsets = [0, 0], sizes = [128, 128], strides = [1, 1]} : vector<128x384xf32> to vector<128x128xf32>
    %80 = arith.addf %78, %79 : vector<128x128xf32>
    %81 = arith.negf %80 : vector<128x128xf32>
    %82 = math.exp %81 : vector<128x128xf32>
    %cst_49 = arith.constant 1.000000e+00 : f32
    %83 = vector.broadcast %cst_49 : f32 to vector<128x128xf32>
    %84 = arith.addf %83, %82 : vector<128x128xf32>
    %85 = arith.divf %83, %84 : vector<128x128xf32>
    %86 = vector.extract_strided_slice %69 {offsets = [0, 128], sizes = [128, 128], strides = [1, 1]} : vector<128x384xf32> to vector<128x128xf32>
    %87 = vector.extract_strided_slice %77 {offsets = [0, 128], sizes = [128, 128], strides = [1, 1]} : vector<128x384xf32> to vector<128x128xf32>
    %88 = arith.addf %86, %87 : vector<128x128xf32>
    %89 = arith.negf %88 : vector<128x128xf32>
    %90 = math.exp %89 : vector<128x128xf32>
    %cst_50 = arith.constant 1.000000e+00 : f32
    %91 = vector.broadcast %cst_50 : f32 to vector<128x128xf32>
    %92 = arith.addf %91, %90 : vector<128x128xf32>
    %93 = arith.divf %91, %92 : vector<128x128xf32>
    %94 = vector.extract_strided_slice %69 {offsets = [0, 256], sizes = [128, 128], strides = [1, 1]} : vector<128x384xf32> to vector<128x128xf32>
    %95 = vector.extract_strided_slice %77 {offsets = [0, 256], sizes = [128, 128], strides = [1, 1]} : vector<128x384xf32> to vector<128x128xf32>
    %96 = arith.mulf %85, %95 : vector<128x128xf32>
    %97 = arith.addf %94, %96 : vector<128x128xf32>
    %98 = math.tanh %97 : vector<128x128xf32>
    %cst_51 = arith.constant 1.000000e+00 : f32
    %99 = vector.broadcast %cst_51 : f32 to vector<128x128xf32>
    %100 = arith.subf %99, %93 : vector<128x128xf32>
    %101 = arith.mulf %100, %98 : vector<128x128xf32>
    %102 = arith.mulf %93, %11 : vector<128x128xf32>
    %103 = arith.addf %101, %102 : vector<128x128xf32>
    %104 = arith.truncf %63 : vector<128x128xf32> to vector<128x128xbf16>
    %c0_52 = arith.constant 0 : index
    %c0_53 = arith.constant 0 : index
    %c0_54 = arith.constant 0 : index
    %105 = vector.load %arg5[%c0_52, %c0_53, %c0_54] : memref<2x128x128xbf16, #tpu.memory_space<vmem>>, vector<1x128x128xbf16>
    %106 = vector.shape_cast %105 : vector<1x128x128xbf16> to vector<128x128xbf16>
    %cst_55 = arith.constant dense<0.000000e+00> : vector<128x128xf32>
    %107 = tpu.matmul %104, %106, %cst_55 {dimension_numbers = #tpu.dot_dimension_numbers<[1], [0], [0], [1], [0, 0, 1, 1], [], []>} : vector<128x128xbf16>, vector<128x128xbf16>, vector<128x128xf32> -> vector<128x128xf32>
    %108 = arith.truncf %107 : vector<128x128xf32> to vector<128x128xbf16>
    %109 = arith.truncf %103 : vector<128x128xf32> to vector<128x128xbf16>
    %c1_56 = arith.constant 1 : index
    %c0_57 = arith.constant 0 : index
    %c0_58 = arith.constant 0 : index
    %110 = vector.load %arg5[%c1_56, %c0_57, %c0_58] : memref<2x128x128xbf16, #tpu.memory_space<vmem>>, vector<1x128x128xbf16>
    %111 = vector.shape_cast %110 : vector<1x128x128xbf16> to vector<128x128xbf16>
    %cst_59 = arith.constant dense<0.000000e+00> : vector<128x128xf32>
    %112 = tpu.matmul %109, %111, %cst_59 {dimension_numbers = #tpu.dot_dimension_numbers<[1], [0], [0], [1], [0, 0, 1, 1], [], []>} : vector<128x128xbf16>, vector<128x128xbf16>, vector<128x128xf32> -> vector<128x128xf32>
    %113 = arith.truncf %112 : vector<128x128xf32> to vector<128x128xbf16>
    %114 = tpu.concatenate %108, %113 in 1 : vector<128x128xbf16>, vector<128x128xbf16> -> vector<128x256xbf16>
    %cst_60 = arith.constant dense<0.000000e+00> : vector<128x256xf32>
    %115 = tpu.matmul %1, %114, %cst_60 {dimension_numbers = #tpu.dot_dimension_numbers<[1], [0], [0], [1], [0, 0, 1, 1], [], []>} : vector<128x128xbf16>, vector<128x256xbf16>, vector<128x256xf32> -> vector<128x256xf32>
    %116 = vector.extract_strided_slice %115 {offsets = [0, 0], sizes = [128, 128], strides = [1, 1]} : vector<128x256xf32> to vector<128x128xf32>
    %117 = arith.truncf %116 : vector<128x128xf32> to vector<128x128xbf16>
    %c0_61 = arith.constant 0 : index
    %c0_62 = arith.constant 0 : index
    %c0_63 = arith.constant 0 : index
    %118 = vector.load %arg9[%c0_61, %c0_62, %c0_63] : memref<2x128x384xbf16, #tpu.memory_space<vmem>>, vector<1x128x384xbf16>
    %119 = vector.shape_cast %118 : vector<1x128x384xbf16> to vector<128x384xbf16>
    %cst_64 = arith.constant dense<0.000000e+00> : vector<128x384xf32>
    %120 = tpu.matmul %117, %119, %cst_64 {dimension_numbers = #tpu.dot_dimension_numbers<[1], [0], [0], [1], [0, 0, 1, 1], [], []>} : vector<128x128xbf16>, vector<128x384xbf16>, vector<128x384xf32> -> vector<128x384xf32>
    %121 = arith.addf %120, %7 : vector<128x384xf32>
    %122 = arith.truncf %63 : vector<128x128xf32> to vector<128x128xbf16>
    %c0_65 = arith.constant 0 : index
    %c0_66 = arith.constant 0 : index
    %c0_67 = arith.constant 0 : index
    %123 = vector.load %arg10[%c0_65, %c0_66, %c0_67] : memref<2x128x384xbf16, #tpu.memory_space<vmem>>, vector<1x128x384xbf16>
    %124 = vector.shape_cast %123 : vector<1x128x384xbf16> to vector<128x384xbf16>
    %cst_68 = arith.constant dense<0.000000e+00> : vector<128x384xf32>
    %125 = tpu.matmul %122, %124, %cst_68 {dimension_numbers = #tpu.dot_dimension_numbers<[1], [0], [0], [1], [0, 0, 1, 1], [], []>} : vector<128x128xbf16>, vector<128x384xbf16>, vector<128x384xf32> -> vector<128x384xf32>
    %c0_69 = arith.constant 0 : index
    %c0_70 = arith.constant 0 : index
    %c0_71 = arith.constant 0 : index
    %126 = vector.load %arg11[%c0_69, %c0_70, %c0_71] : memref<2x1x384xf32, #tpu.memory_space<vmem>>, vector<1x1x384xf32>
    %127 = vector.shape_cast %126 : vector<1x1x384xf32> to vector<1x384xf32>
    %128 = vector.broadcast %127 : vector<1x384xf32> to vector<128x384xf32>
    %129 = arith.addf %125, %128 : vector<128x384xf32>
    %130 = vector.extract_strided_slice %121 {offsets = [0, 0], sizes = [128, 128], strides = [1, 1]} : vector<128x384xf32> to vector<128x128xf32>
    %131 = vector.extract_strided_slice %129 {offsets = [0, 0], sizes = [128, 128], strides = [1, 1]} : vector<128x384xf32> to vector<128x128xf32>
    %132 = arith.addf %130, %131 : vector<128x128xf32>
    %133 = arith.negf %132 : vector<128x128xf32>
    %134 = math.exp %133 : vector<128x128xf32>
    %cst_72 = arith.constant 1.000000e+00 : f32
    %135 = vector.broadcast %cst_72 : f32 to vector<128x128xf32>
    %136 = arith.addf %135, %134 : vector<128x128xf32>
    %137 = arith.divf %135, %136 : vector<128x128xf32>
    %138 = vector.extract_strided_slice %121 {offsets = [0, 128], sizes = [128, 128], strides = [1, 1]} : vector<128x384xf32> to vector<128x128xf32>
    %139 = vector.extract_strided_slice %129 {offsets = [0, 128], sizes = [128, 128], strides = [1, 1]} : vector<128x384xf32> to vector<128x128xf32>
    %140 = arith.addf %138, %139 : vector<128x128xf32>
    %141 = arith.negf %140 : vector<128x128xf32>
    %142 = math.exp %141 : vector<128x128xf32>
    %cst_73 = arith.constant 1.000000e+00 : f32
    %143 = vector.broadcast %cst_73 : f32 to vector<128x128xf32>
    %144 = arith.addf %143, %142 : vector<128x128xf32>
    %145 = arith.divf %143, %144 : vector<128x128xf32>
    %146 = vector.extract_strided_slice %121 {offsets = [0, 256], sizes = [128, 128], strides = [1, 1]} : vector<128x384xf32> to vector<128x128xf32>
    %147 = vector.extract_strided_slice %129 {offsets = [0, 256], sizes = [128, 128], strides = [1, 1]} : vector<128x384xf32> to vector<128x128xf32>
    %148 = arith.mulf %137, %147 : vector<128x128xf32>
    %149 = arith.addf %146, %148 : vector<128x128xf32>
    %150 = math.tanh %149 : vector<128x128xf32>
    %cst_74 = arith.constant 1.000000e+00 : f32
    %151 = vector.broadcast %cst_74 : f32 to vector<128x128xf32>
    %152 = arith.subf %151, %145 : vector<128x128xf32>
    %153 = arith.mulf %152, %150 : vector<128x128xf32>
    %154 = arith.mulf %145, %63 : vector<128x128xf32>
    %155 = arith.addf %153, %154 : vector<128x128xf32>
    %156 = vector.extract_strided_slice %115 {offsets = [0, 128], sizes = [128, 128], strides = [1, 1]} : vector<128x256xf32> to vector<128x128xf32>
    %157 = arith.truncf %156 : vector<128x128xf32> to vector<128x128xbf16>
    %c1_75 = arith.constant 1 : index
    %c0_76 = arith.constant 0 : index
    %c0_77 = arith.constant 0 : index
    %158 = vector.load %arg9[%c1_75, %c0_76, %c0_77] : memref<2x128x384xbf16, #tpu.memory_space<vmem>>, vector<1x128x384xbf16>
    %159 = vector.shape_cast %158 : vector<1x128x384xbf16> to vector<128x384xbf16>
    %cst_78 = arith.constant dense<0.000000e+00> : vector<128x384xf32>
    %160 = tpu.matmul %157, %159, %cst_78 {dimension_numbers = #tpu.dot_dimension_numbers<[1], [0], [0], [1], [0, 0, 1, 1], [], []>} : vector<128x128xbf16>, vector<128x384xbf16>, vector<128x384xf32> -> vector<128x384xf32>
    %161 = arith.addf %160, %9 : vector<128x384xf32>
    %162 = arith.truncf %103 : vector<128x128xf32> to vector<128x128xbf16>
    %c1_79 = arith.constant 1 : index
    %c0_80 = arith.constant 0 : index
    %c0_81 = arith.constant 0 : index
    %163 = vector.load %arg10[%c1_79, %c0_80, %c0_81] : memref<2x128x384xbf16, #tpu.memory_space<vmem>>, vector<1x128x384xbf16>
    %164 = vector.shape_cast %163 : vector<1x128x384xbf16> to vector<128x384xbf16>
    %cst_82 = arith.constant dense<0.000000e+00> : vector<128x384xf32>
    %165 = tpu.matmul %162, %164, %cst_82 {dimension_numbers = #tpu.dot_dimension_numbers<[1], [0], [0], [1], [0, 0, 1, 1], [], []>} : vector<128x128xbf16>, vector<128x384xbf16>, vector<128x384xf32> -> vector<128x384xf32>
    %c1_83 = arith.constant 1 : index
    %c0_84 = arith.constant 0 : index
    %c0_85 = arith.constant 0 : index
    %166 = vector.load %arg11[%c1_83, %c0_84, %c0_85] : memref<2x1x384xf32, #tpu.memory_space<vmem>>, vector<1x1x384xf32>
    %167 = vector.shape_cast %166 : vector<1x1x384xf32> to vector<1x384xf32>
    %168 = vector.broadcast %167 : vector<1x384xf32> to vector<128x384xf32>
    %169 = arith.addf %165, %168 : vector<128x384xf32>
    %170 = vector.extract_strided_slice %161 {offsets = [0, 0], sizes = [128, 128], strides = [1, 1]} : vector<128x384xf32> to vector<128x128xf32>
    %171 = vector.extract_strided_slice %169 {offsets = [0, 0], sizes = [128, 128], strides = [1, 1]} : vector<128x384xf32> to vector<128x128xf32>
    %172 = arith.addf %170, %171 : vector<128x128xf32>
    %173 = arith.negf %172 : vector<128x128xf32>
    %174 = math.exp %173 : vector<128x128xf32>
    %cst_86 = arith.constant 1.000000e+00 : f32
    %175 = vector.broadcast %cst_86 : f32 to vector<128x128xf32>
    %176 = arith.addf %175, %174 : vector<128x128xf32>
    %177 = arith.divf %175, %176 : vector<128x128xf32>
    %178 = vector.extract_strided_slice %161 {offsets = [0, 128], sizes = [128, 128], strides = [1, 1]} : vector<128x384xf32> to vector<128x128xf32>
    %179 = vector.extract_strided_slice %169 {offsets = [0, 128], sizes = [128, 128], strides = [1, 1]} : vector<128x384xf32> to vector<128x128xf32>
    %180 = arith.addf %178, %179 : vector<128x128xf32>
    %181 = arith.negf %180 : vector<128x128xf32>
    %182 = math.exp %181 : vector<128x128xf32>
    %cst_87 = arith.constant 1.000000e+00 : f32
    %183 = vector.broadcast %cst_87 : f32 to vector<128x128xf32>
    %184 = arith.addf %183, %182 : vector<128x128xf32>
    %185 = arith.divf %183, %184 : vector<128x128xf32>
    %186 = vector.extract_strided_slice %161 {offsets = [0, 256], sizes = [128, 128], strides = [1, 1]} : vector<128x384xf32> to vector<128x128xf32>
    %187 = vector.extract_strided_slice %169 {offsets = [0, 256], sizes = [128, 128], strides = [1, 1]} : vector<128x384xf32> to vector<128x128xf32>
    %188 = arith.mulf %177, %187 : vector<128x128xf32>
    %189 = arith.addf %186, %188 : vector<128x128xf32>
    %190 = math.tanh %189 : vector<128x128xf32>
    %cst_88 = arith.constant 1.000000e+00 : f32
    %191 = vector.broadcast %cst_88 : f32 to vector<128x128xf32>
    %192 = arith.subf %191, %185 : vector<128x128xf32>
    %193 = arith.mulf %192, %190 : vector<128x128xf32>
    %194 = arith.mulf %185, %103 : vector<128x128xf32>
    %195 = arith.addf %193, %194 : vector<128x128xf32>
    %c0_89 = arith.constant 0 : index
    %c0_90 = arith.constant 0 : index
    %c0_91 = arith.constant 0 : index
    %196 = vector.load %arg12[%c0_89, %c0_90, %c0_91] : memref<2x128x128xf32, #tpu.memory_space<vmem>>, vector<1x128x128xf32>
    %197 = vector.shape_cast %196 : vector<1x128x128xf32> to vector<128x128xf32>
    %198 = vector.shape_cast %155 : vector<128x128xf32> to vector<1x128x128xf32>
    tpu.vector_store %arg12[%c0_89, %c0_90, %c0_91], %198 {strides = array<i32>} : memref<2x128x128xf32, #tpu.memory_space<vmem>>, vector<1x128x128xf32>,
    %c1_92 = arith.constant 1 : index
    %c0_93 = arith.constant 0 : index
    %c0_94 = arith.constant 0 : index
    %199 = vector.load %arg12[%c1_92, %c0_93, %c0_94] : memref<2x128x128xf32, #tpu.memory_space<vmem>>, vector<1x128x128xf32>
    %200 = vector.shape_cast %199 : vector<1x128x128xf32> to vector<128x128xf32>
    %201 = vector.shape_cast %195 : vector<128x128xf32> to vector<1x128x128xf32>
    tpu.vector_store %arg12[%c1_92, %c0_93, %c0_94], %201 {strides = array<i32>} : memref<2x128x128xf32, #tpu.memory_space<vmem>>, vector<1x128x128xf32>,
    return
  }
}

</mosaic_0001>

<bundles_post_ra>
// kernel: tpu_custom_call.1
= control target key start
LH: loop header
LB: loop body
LE: loop exit
PB: predicated region body
PF: predicated region fallthrough
CT: control target
= control target key end

     0   :  { %17 = vsyncpa [#allocation3], 0  ;;  %s9973_s0 = inlined_call_operand.hbm [shape: bf16[128,128], index: 0, kind: input, shape index: {}]   ;;  %s9974_s1 = inlined_call_operand.hbm [shape: bf16[128,128], index: 1, kind: input, shape index: {}]   ;;  %s9975_s2 = inlined_call_operand.hbm [shape: f32[2,128,384], index: 2, kind: input, shape index: {}]   ;;  %s9976_s3 = inlined_call_operand.hbm [shape: f32[2,128,384], index: 3, kind: input, shape index: {}]   ;;  %s9977_s4 = inlined_call_operand.hbm [shape: bf16[2,128,128], index: 4, kind: input, shape index: {}]   ;;  %s9978_s5 = inlined_call_operand.hbm [shape: bf16[2,128,128], index: 5, kind: input, shape index: {}]   ;;  %s9979_s6 = inlined_call_operand.hbm [shape: bf16[2,128,384], index: 6, kind: input, shape index: {}]   ;;  %s9980_s7 = inlined_call_operand.hbm [shape: bf16[2,128,384], index: 7, kind: input, shape index: {}]   ;;  %s9981_s8 = inlined_call_operand.vmem [shape: f32[2,1,384], index: 8, kind: input, shape index: {}]   ;;  %s9982_s9 = inlined_call_operand.hbm [shape: bf16[2,128,384], index: 9, kind: input, shape index: {}]   ;;  %s9983_s10 = inlined_call_operand.hbm [shape: bf16[2,128,384], index: 10, kind: input, shape index: {}]   ;;  %s9984_s11 = inlined_call_operand.vmem [shape: f32[2,1,384], index: 11, kind: input, shape index: {}]   ;;  %s9985_s12 = inlined_call_operand.hbm [shape: f32[2,128,128], index: 12, kind: output, shape index: {}]  }
   0x1   :  { %18 = vsyncpa [#allocation6], 0 }
   0x2   :  { %19 = vsyncpa [#allocation9], 0 }
   0x3   :  { %20 = vsyncpa [#allocation12], 0 }
   0x4   :  { %21 = vsyncpa [#allocation15], 0 }
   0x5   :  { %22 = vsyncpa [#allocation18], 0 }
   0x6   :  { %23 = vsyncpa [#allocation4], 0  ;;  %s8000_s21 = smov [#allocation5]  }
   0x7   :  { %s41_s22 = sshll.u32 %s8000_s21, 4  ;;  %s42_s22 = int_to_ptr.vmem [resolvable:$true] %s41_s22 }
   0x8   :  { %s7774_s23 = scalar_lea.vmem %s42_s22, 1024  ;;  %p7779_p1 = scmp.lt.s32.totalorder %s42_s22, %s42_s22 }
   0x9   :  { %p7775_p0 = scmp.ne.s32.totalorder %s42_s22, %s7774_s23  ;;  %p7780_p2 = scmp.lt.s32.totalorder %s7774_s23, %s7774_s23 }
   0xb   :  { %p7781_p3 = por %p7780_p2, %p7779_p1 }
   0xd   :  { %p7782_p4 = pnand %p7781_p3, %p7775_p0 }
   0xf   :  { %7785 = shalt.err (!%p7782_p4)
}
  0x10   :  { %s8001_s24 = smov 64   ;;  %s8002_s25 = smov 4  }
  0x11   :  { %47 = dma.hbm_to_vmem [thread:$0]  %s9974_s1, 1024, %s42_s22, [#allocation6], %s8001_s24, %s8001_s24, %s8002_s25  }
  0x12   :  { %s8003_s28 = smov [#allocation8]   ;;  %s8004_s30 = smov [#allocation11]  }
  0x13   :  { %s65_s29 = sshll.u32 %s8003_s28, 4  ;;  %s89_s13 = sshll.u32 %s8004_s30, 4  ;;  %s66_s29 = int_to_ptr.vmem [resolvable:$true] %s65_s29  ;;  %s90_s13 = int_to_ptr.vmem [resolvable:$true] %s89_s13 }
  0x14   :  { %s7794_s14 = scalar_lea.vmem %s66_s29, 12288  ;;  %p7799_p6 = scmp.lt.s32.totalorder %s66_s29, %s66_s29 }
  0x15   :  { %p7795_p5 = scmp.ne.s32.totalorder %s66_s29, %s7794_s14  ;;  %p7800_p7 = scmp.lt.s32.totalorder %s7794_s14, %s7794_s14 }
  0x17   :  { %p7801_p8 = por %p7800_p7, %p7799_p6 }
  0x19   :  { %p7802_p9 = pnand %p7801_p8, %p7795_p5 }
  0x1b   :  { %7805 = shalt.err (!%p7802_p9)
}
  0x1c   :  { %s8005_s15 = smov 384   ;;  %s8006_s16 = smov 24  }
  0x1d   :  { %71 = dma.hbm_to_vmem [thread:$0]  %s9976_s3, 12288, %s66_s29, [#allocation9], %s8005_s15, %s8005_s15, %s8006_s16  }
  0x1e   :  { %s7814_s1 = scalar_lea.vmem %s90_s13, 2048  ;;  %p7819_p11 = scmp.lt.s32.totalorder %s90_s13, %s90_s13 }
  0x1f   :  { %p7815_p10 = scmp.ne.s32.totalorder %s90_s13, %s7814_s1  ;;  %p7820_p12 = scmp.lt.s32.totalorder %s7814_s1, %s7814_s1 }
  0x21   :  { %p7821_p13 = por %p7820_p12, %p7819_p11 }
  0x23   :  { %p7822_p0 = pnand %p7821_p13, %p7815_p10 }
  0x25   :  { %7825 = shalt.err (!%p7822_p0)
}
  0x26   :  { %95 = dma.hbm_to_vmem [thread:$0]  %s9978_s5, 2048, %s90_s13, [#allocation12], %s8001_s24, %s8001_s24, %s8002_s25  }
  0x27   :  { %s8007_s21 = smov [#allocation14]   ;;  %s8008_s23 = smov [#allocation2]  }
  0x28   :  { %s113_s22 = sshll.u32 %s8007_s21, 4  ;;  %s29_s3 = sshll.u32 %s8008_s23, 4  ;;  %s114_s22 = int_to_ptr.vmem [resolvable:$true] %s113_s22  ;;  %s30_s3 = int_to_ptr.vmem [resolvable:$true] %s29_s3 }
  0x29   :  { %s7834_s26 = scalar_lea.vmem %s114_s22, 6144  ;;  %p7839_p2 = scmp.lt.s32.totalorder %s114_s22, %s114_s22 }
  0x2a   :  { %p7835_p1 = scmp.ne.s32.totalorder %s114_s22, %s7834_s26  ;;  %p7840_p3 = scmp.lt.s32.totalorder %s7834_s26, %s7834_s26 }
  0x2c   :  { %p7841_p4 = por %p7840_p3, %p7839_p2 }
  0x2e   :  { %p7842_p5 = pnand %p7841_p4, %p7835_p1 }
  0x30   :  { %7845 = shalt.err (!%p7842_p5)
}
  0x31   :  { %s8009_s27 = smov 192   ;;  %s8010_s28 = smov 12  }
  0x32   :  { %119 = dma.hbm_to_vmem [thread:$0]  %s9980_s7, 6144, %s114_s22, [#allocation15], %s8009_s27, %s8009_s27, %s8010_s28  }
  0x33   :  { %s7854_s5 = scalar_lea.vmem %s30_s3, 1024  ;;  %p7859_p7 = scmp.lt.s32.totalorder %s30_s3, %s30_s3 }
  0x34   :  { %p7855_p6 = scmp.ne.s32.totalorder %s30_s3, %s7854_s5  ;;  %p7860_p8 = scmp.lt.s32.totalorder %s7854_s5, %s7854_s5 }
  0x36   :  { %p7861_p9 = por %p7860_p8, %p7859_p7 }
  0x38   :  { %p7862_p10 = pnand %p7861_p9, %p7855_p6 }
  0x3a   :  { %7865 = shalt.err (!%p7862_p10)
}
  0x3b   :  { %35 = dma.hbm_to_vmem [thread:$0]  %s9973_s0, 1024, %s30_s3, [#allocation3], %s8001_s24, %s8001_s24, %s8002_s25  }
  0x3c   :  { %s8011_s17 = smov [#allocation7]   ;;  %s8012_s1 = smov [#allocation10]  }
  0x3d   :  { %s53_s18 = sshll.u32 %s8011_s17, 4  ;;  %s77_s7 = sshll.u32 %s8012_s1, 4  ;;  %s54_s18 = int_to_ptr.vmem [resolvable:$true] %s53_s18  ;;  %s78_s7 = int_to_ptr.vmem [resolvable:$true] %s77_s7 }
  0x3e   :  { %s7874_s19 = scalar_lea.vmem %s54_s18, 12288  ;;  %p7879_p12 = scmp.lt.s32.totalorder %s54_s18, %s54_s18 }
  0x3f   :  { %p7875_p11 = scmp.ne.s32.totalorder %s54_s18, %s7874_s19  ;;  %p7880_p13 = scmp.lt.s32.totalorder %s7874_s19, %s7874_s19 }
  0x41   :  { %p7881_p0 = por %p7880_p13, %p7879_p12 }
  0x43   :  { %p7882_p1 = pnand %p7881_p0, %p7875_p11 }
  0x45   :  { %7885 = shalt.err (!%p7882_p1)
}
  0x46   :  { %59 = dma.hbm_to_vmem [thread:$0]  %s9975_s2, 12288, %s54_s18, [#allocation6], %s8005_s15, %s8005_s15, %s8006_s16  }
  0x47   :  { %s7894_s0 = scalar_lea.vmem %s78_s7, 2048  ;;  %p7899_p3 = scmp.lt.s32.totalorder %s78_s7, %s78_s7 }
  0x48   :  { %p7895_p2 = scmp.ne.s32.totalorder %s78_s7, %s7894_s0  ;;  %p7900_p4 = scmp.lt.s32.totalorder %s7894_s0, %s7894_s0 }
  0x4a   :  { %p7901_p5 = por %p7900_p4, %p7899_p3 }
  0x4c   :  { %p7902_p6 = pnand %p7901_p5, %p7895_p2 }
  0x4e   :  { %7905 = shalt.err (!%p7902_p6)
}
  0x4f   :  { %83 = dma.hbm_to_vmem [thread:$0]  %s9977_s4, 2048, %s78_s7, [#allocation9], %s8001_s24, %s8001_s24, %s8002_s25  }
  0x50   :  { %s8013_s3 = smov [#allocation13]   ;;  %s8014_s29 = smov [#allocation16]  }
  0x51   :  { %s101_s26 = sshll.u32 %s8013_s3, 4  ;;  %s127_s2 = sshll.u32 %s8014_s29, 4  ;;  %s102_s26 = int_to_ptr.vmem [resolvable:$true] %s101_s26  ;;  %s128_s2 = int_to_ptr.vmem [resolvable:$true] %s127_s2 }
  0x52   :  { %s7914_s15 = scalar_lea.vmem %s102_s26, 6144  ;;  %p7919_p8 = scmp.lt.s32.totalorder %s102_s26, %s102_s26 }
  0x53   :  { %p7915_p7 = scmp.ne.s32.totalorder %s102_s26, %s7914_s15  ;;  %p7920_p9 = scmp.lt.s32.totalorder %s7914_s15, %s7914_s15 }
  0x55   :  { %p7921_p10 = por %p7920_p9, %p7919_p8 }
  0x57   :  { %p7922_p11 = pnand %p7921_p10, %p7915_p7 }
  0x59   :  { %7925 = shalt.err (!%p7922_p11)
}
  0x5a   :  { %107 = dma.hbm_to_vmem [thread:$0]  %s9979_s6, 6144, %s102_s26, [#allocation12], %s8009_s27, %s8009_s27, %s8010_s28  }
  0x5b   :  { %s7934_s4 = scalar_lea.vmem %s128_s2, 6144  ;;  %p7939_p13 = scmp.lt.s32.totalorder %s128_s2, %s128_s2 }
  0x5c   :  { %p7935_p12 = scmp.ne.s32.totalorder %s128_s2, %s7934_s4  ;;  %p7940_p0 = scmp.lt.s32.totalorder %s7934_s4, %s7934_s4 }
  0x5e   :  { %p7941_p1 = por %p7940_p0, %p7939_p13 }
  0x60   :  { %p7942_p2 = pnand %p7941_p1, %p7935_p12 }
  0x62   :  { %7945 = shalt.err (!%p7942_p2)
}
  0x63   :  { %133 = dma.hbm_to_vmem [thread:$0]  %s9982_s9, 6144, %s128_s2, [#allocation15], %s8009_s27, %s8009_s27, %s8010_s28  }
  0x64   :  { %s8015_s5 = smov [#allocation17]  }
  0x65   :  { %s139_s13 = sshll.u32 %s8015_s5, 4  ;;  %s140_s13 = int_to_ptr.vmem [resolvable:$true] %s139_s13 }
  0x66   :  { %s7954_s14 = scalar_lea.vmem %s140_s13, 6144  ;;  %p7959_p4 = scmp.lt.s32.totalorder %s140_s13, %s140_s13 }
  0x67   :  { %p7955_p3 = scmp.ne.s32.totalorder %s140_s13, %s7954_s14  ;;  %p7960_p5 = scmp.lt.s32.totalorder %s7954_s14, %s7954_s14 }
  0x69   :  { %p7961_p6 = por %p7960_p5, %p7959_p4 }
  0x6b   :  { %p7962_p7 = pnand %p7961_p6, %p7955_p3 }
  0x6d   :  { %7965 = shalt.err (!%p7962_p7)
}
  0x6e   :  { %145 = dma.hbm_to_vmem [thread:$0]  %s9983_s10, 6144, %s140_s13, [#allocation18], %s8009_s27, %s8009_s27, %s8010_s28  }
  0x6f   :  { %7986 = dma.done.wait [#allocation3], 1024  }
  0x70   :  { %7987 = vsyncadd [#allocation3], 4294966272 }
  0x71   :  { %7988 = dma.done.wait [#allocation6], 13312  }
  0x72   :  { %7989 = vsyncadd [#allocation6], 4294953984 }
  0x73   :  { %7990 = dma.done.wait [#allocation9], 14336  }
  0x74   :  { %7991 = vsyncadd [#allocation9], 4294952960 }
  0x75   :  { %7992 = dma.done.wait [#allocation12], 8192  }
  0x76   :  { %7993 = vsyncadd [#allocation12], 4294959104 }
  0x77   :  { %7994 = dma.done.wait [#allocation15], 12288  }
  0x78   :  { %7995 = vsyncadd [#allocation15], 4294955008 }
  0x79   :  { %7996 = dma.done.wait [#allocation18], 6144  }
  0x7a   :  { %7997 = vsyncadd [#allocation18], 4294961152  ;;  %v8016_v0 = vmov 1065369472   ;;  %v6822_v1 = vld [vmem:[#allocation10 + $0x38] sm:$0xff]   ;;  %v6824_v3 = vld [vmem:[#allocation10 + $0x30] sm:$0xff]  }
  0x7b   :  { %6433 = vmatprep.mubr.bf16.mxu0 %v8016_v0  ;;  %6465 = vmatprep.mubr.bf16.mxu1 %v8016_v0  ;;  %v6823_v2 = vld [vmem:[#allocation10 + $0x78] sm:$0xff]   ;;  %v6825_v4 = vld [vmem:[#allocation10 + $0x70] sm:$0xff]   ;;  %v6826_v5 = vld [vmem:[#allocation10 + $0x28] sm:$0xff]   ;;  %v9986_v17 = vmov 0  }
  0x7c   :  { %6417 = vmatprep.subr.bf16.mxu0 %v6822_v1  ;;  %6449 = vmatprep.subr.bf16.mxu1 %v6823_v2  ;;  %v6827_v6 = vld [vmem:[#allocation10 + $0x68] sm:$0xff]   ;;  %v6828_v7 = vld [vmem:[#allocation10 + $0x20] sm:$0xff]   ;;  %v6830_v9 = vld [vmem:[#allocation10 + $0x18] sm:$0xff]  }
  0x7d   :  { %6418 = vmatpush3.bf16.msra.mxu0 %v6822_v1  ;;  %6450 = vmatpush3.bf16.msra.mxu1 %v6823_v2  ;;  %v6829_v8 = vld [vmem:[#allocation10 + $0x60] sm:$0xff]   ;;  %v6831_v10 = vld [vmem:[#allocation10 + $0x58] sm:$0xff]   ;;  %v6832_v11 = vld [vmem:[#allocation10 + $0x10] sm:$0xff]  }
  0x7e   :  { %6419 = vmatprep.subr.bf16.mxu0 %v6824_v3  ;;  %6451 = vmatprep.subr.bf16.mxu1 %v6825_v4  ;;  %v6833_v12 = vld [vmem:[#allocation10 + $0x50] sm:$0xff]   ;;  %v6834_v13 = vld [vmem:[#allocation10 + $0x8] sm:$0xff]   ;;  %v6836_v15 = vld [vmem:[#allocation10] sm:$0xff]  }
  0x7f   :  { %v6835_v14 = vld [vmem:[#allocation10 + $0x48] sm:$0xff]   ;;  %v6837_v16 = vld [vmem:[#allocation10 + $0x40] sm:$0xff]   ;;  %v6849_v21 = vld [vmem:[#allocation13 + $0x90] ss:$12 sps:$4 sm:$0xff]  }
  0x80   :  { %v6846_v18 = vld [vmem:[#allocation13 + $0xa8] ss:$12 sps:$4 sm:$0xff]   ;;  %v6848_v19 = vld [vmem:[#allocation13 + $0xac] ss:$12 sps:$4 sm:$0xff]   ;;  %v6858_v25 = vld [vmem:[#allocation13 + $0x64] ss:$12 sps:$4 sm:$0xff]  }
  0x81   :  { %6420 = vmatpush3.bf16.msra.mxu0 %v6824_v3  ;;  %6452 = vmatpush3.bf16.msra.mxu1 %v6825_v4  ;;  %v6851_v20 = vld [vmem:[#allocation13 + $0x94] ss:$12 sps:$4 sm:$0xff]   ;;  %v6854_v22 = vld [vmem:[#allocation13 + $0x7c] ss:$12 sps:$4 sm:$0xff]   ;;  %v6852_v23 = vld [vmem:[#allocation13 + $0x78] ss:$12 sps:$4 sm:$0xff]  }
  0x82   :  { %6421 = vmatprep.subr.bf16.mxu0 %v6826_v5  ;;  %6453 = vmatprep.subr.bf16.mxu1 %v6827_v6  ;;  %v6856_v29 = vld [vmem:[#allocation13 + $0x60] ss:$12 sps:$4 sm:$0xff]   ;;  %v6860_v35 = vld [vmem:[#allocation13 + $0x48] ss:$12 sps:$4 sm:$0xff]   ;;  %v6864_v41 = vld [vmem:[#allocation13 + $0x30] ss:$12 sps:$4 sm:$0xff]  }
  0x83   :  { %v6862_v31 = vld [vmem:[#allocation13 + $0x4c] ss:$12 sps:$4 sm:$0xff]   ;;  %v6866_v37 = vld [vmem:[#allocation13 + $0x34] ss:$12 sps:$4 sm:$0xff]   ;;  %v6870_v43 = vld [vmem:[#allocation13 + $0x1c] ss:$12 sps:$4 sm:$0xff]  }
  0x84   :  { %v6868_v47 = vld [vmem:[#allocation13 + $0x18] ss:$12 sps:$4 sm:$0xff]  }
  0x85   :  { %6422 = vmatpush3.bf16.msra.mxu0 %v6826_v5  ;;  %6454 = vmatpush3.bf16.msra.mxu1 %v6827_v6 }
  0x86   :  { %6423 = vmatprep.subr.bf16.mxu0 %v6828_v7  ;;  %6455 = vmatprep.subr.bf16.mxu1 %v6829_v8 }
  0x89   :  { %6424 = vmatpush3.bf16.msra.mxu0 %v6828_v7  ;;  %6456 = vmatpush3.bf16.msra.mxu1 %v6829_v8 }
  0x8a   :  { %6425 = vmatprep.subr.bf16.mxu0 %v6830_v9  ;;  %6457 = vmatprep.subr.bf16.mxu1 %v6831_v10 }
  0x8d   :  { %6426 = vmatpush3.bf16.msra.mxu0 %v6830_v9  ;;  %6458 = vmatpush3.bf16.msra.mxu1 %v6831_v10 }
  0x8e   :  { %6427 = vmatprep.subr.bf16.mxu0 %v6832_v11  ;;  %6459 = vmatprep.subr.bf16.mxu1 %v6833_v12 }
  0x91   :  { %6428 = vmatpush3.bf16.msra.mxu0 %v6832_v11  ;;  %6460 = vmatpush3.bf16.msra.mxu1 %v6833_v12 }
  0x92   :  { %6429 = vmatprep.subr.bf16.mxu0 %v6834_v13  ;;  %6461 = vmatprep.subr.bf16.mxu1 %v6835_v14 }
  0x95   :  { %6430 = vmatpush3.bf16.msra.mxu0 %v6834_v13  ;;  %6462 = vmatpush3.bf16.msra.mxu1 %v6835_v14 }
  0x96   :  { %6431 = vmatprep.subr.bf16.mxu0 %v6836_v15  ;;  %6463 = vmatprep.subr.bf16.mxu1 %v6837_v16 }
  0x99   :  { %6432 = vmatpush3.bf16.msra.mxu0 %v6836_v15  ;;  %6464 = vmatpush3.bf16.msra.mxu1 %v6837_v16  ;;  %v6855_v16 = vld [vmem:[#allocation13 + $0xb0] ss:$12 sps:$4 sm:$0xff]  }
  0x9a   :  { %1074 = vmatprep.subr.bf16.mxu1 %v6848_v19  ;;  %v6838_v19 = vld [vmem:[#allocation2] sm:$0xff]  }
  0x9c   :  { %6434 = vmatmul.mubr.bf16.vlgmr.msra.gmra.mxu0 %v8016_v0  ;;  %6466 = vmatmul.mubr.bf16.vlgmr.msra.gmra.mxu1 %v8016_v0 }
  0x9d   :  { %6437 = vmatprep.mubr.bf16.mxu0 %v8016_v0  ;;  %6469 = vmatprep.mubr.bf16.mxu1 %v8016_v0 }
  0x9e   :  { %1075 = vmatpush1.bf16.msra.mxu1 %v6846_v18 }
  0x9f   :  { %1076 = vmatprep.subr.bf16.mxu1 %v6851_v20  ;;  %v6859_v20 = vld [vmem:[#allocation13 + $0x98] ss:$12 sps:$4 sm:$0xff]  }
  0xa2   :  { %1077 = vmatpush1.bf16.msra.mxu1 %v6849_v21  ;;  %v6863_v21 = vld [vmem:[#allocation13 + $0x80] ss:$12 sps:$4 sm:$0xff]  }
  0xa3   :  { %1078 = vmatprep.subr.bf16.mxu1 %v6854_v22  ;;  %v6839_v22 = vld [vmem:[#allocation2 + $0x8] sm:$0xff]  }
  0xa4   :  { %6438 = vmatmul.mubr.bf16.gmra.mxu0 %v8016_v0  ;;  %6470 = vmatmul.mubr.bf16.gmra.mxu1 %v8016_v0 }
  0xa5   :  { %6441 = vmatprep.mubr.bf16.mxu0 %v8016_v0  ;;  %6473 = vmatprep.mubr.bf16.mxu1 %v8016_v0 }
  0xa6   :  { %1079 = vmatpush1.bf16.msra.mxu1 %v6852_v23  ;;  %v6867_v23 = vld [vmem:[#allocation13 + $0x68] ss:$12 sps:$4 sm:$0xff]  }
  0xa7   :  { %1080 = vmatprep.subr.bf16.mxu1 %v6858_v25  ;;  %v6840_v25 = vld [vmem:[#allocation2 + $0x10] sm:$0xff]  }
  0xaa   :  { %1081 = vmatpush1.bf16.msra.mxu1 %v6856_v29  ;;  %v6844_v29 = vld [vmem:[#allocation2 + $0x30] sm:$0xff]  }
  0xab   :  { %1082 = vmatprep.subr.bf16.mxu1 %v6862_v31  ;;  %v6874_v31 = vld [vmem:[#allocation13 + $0x4] ss:$12 sps:$4 sm:$0xff]  }
  0xac   :  { %6442 = vmatmul.mubr.bf16.gmra.mxu0 %v8016_v0  ;;  %6474 = vmatmul.mubr.bf16.gmra.mxu1 %v8016_v0 }
  0xad   :  { %6445 = vmatprep.mubr.bf16.mxu0 %v8016_v0  ;;  %6477 = vmatprep.mubr.bf16.mxu1 %v8016_v0 }
  0xae   :  { %1083 = vmatpush1.bf16.msra.mxu1 %v6860_v35  ;;  %v6879_v35 = vld [vmem:[#allocation14 + $0xac] ss:$12 sps:$4 sm:$0xff]  }
  0xaf   :  { %1084 = vmatprep.subr.bf16.mxu1 %v6866_v37  ;;  %v6893_v37 = vld [vmem:[#allocation14 + $0xb0] ss:$12 sps:$4 sm:$0xff]  }
  0xb2   :  { %1085 = vmatpush1.bf16.msra.mxu1 %v6864_v41  ;;  %v6877_v41 = vld [vmem:[#allocation14 + $0xa8] ss:$12 sps:$4 sm:$0xff]  }
  0xb3   :  { %1086 = vmatprep.subr.bf16.mxu1 %v6870_v43  ;;  %v6883_v43 = vld [vmem:[#allocation14 + $0x94] ss:$12 sps:$4 sm:$0xff]  }
  0xb4   :  { %6446 = vmatmul.mubr.bf16.gmra.mxu0 %v8016_v0  ;;  %6478 = vmatmul.mubr.bf16.gmra.mxu1 %v8016_v0 }
  0xb5   :  { %825 = vmatprep.mubr.bf16.mxu0 %v9986_v17  ;;  %1106 = vmatprep.mubr.bf16.mxu1 %v9986_v17 }
  0xb6   :  { %1087 = vmatpush1.bf16.msra.mxu1 %v6868_v47  ;;  %v6886_v47 = vld [vmem:[#allocation14 + $0x7c] ss:$12 sps:$4 sm:$0xff]  }
  0xb7   :  { %1088 = vmatprep.subr.bf16.mxu1 %v6874_v31 }
 0x15c   :  { %v8164_v24 = vpop.f32.mrf.mxu0  ;;  %v8166_v26 = vpop.f32.mrf.mxu1 }
 0x15e   :  { %v8168_v27 = vpop.f32.mrf.mxu0  ;;  %v8170_v28 = vpop.f32.mrf.mxu1 }
 0x160   :  { %v8172_v30 = vpop.f32.mrf.mxu0  ;;  %v8174_v32 = vpop.f32.mrf.mxu1 }
 0x161   :  { %v738_v13 = vpack.c.bf16 %v8174_v32, %v8166_v26  ;;  %v568_v14 = vpack.c.bf16 %v8172_v30, %v8164_v24  ;;  %v6871_v24 = vld [vmem:[#allocation13 + $0x50] ss:$12 sps:$4 sm:$0xff]   ;;  %v6875_v32 = vld [vmem:[#allocation13 + $0x38] ss:$12 sps:$4 sm:$0xff]  }
 0x162   :  { %v8176_v33 = vpop.f32.mrf.mxu0  ;;  %v8178_v34 = vpop.f32.mrf.mxu1  ;;  %v6841_v26 = vld [vmem:[#allocation2 + $0x18] sm:$0xff]  }
 0x163   :  { %v737_v15 = vpack.c.bf16 %v8178_v34, %v8170_v28  ;;  %v567_v18 = vpack.c.bf16 %v8176_v33, %v8168_v27  ;;  %v6842_v27 = vld [vmem:[#allocation2 + $0x20] sm:$0xff]   ;;  %v6843_v28 = vld [vmem:[#allocation2 + $0x28] sm:$0xff]   ;;  %v6845_v30 = vld [vmem:[#allocation2 + $0x38] sm:$0xff]  }
 0x164   :  { %v6439_v36 = vpop.f32.mrf.mxu0  ;;  %v6471_v38 = vpop.f32.mrf.mxu1  ;;  %v6872_v33 = vld [vmem:[#allocation13] ss:$12 sps:$4 sm:$0xff]  }
 0x165   :  { %1089 = vmatpush1.bf16.msra.mxu1 %v6872_v33  ;;  %v6876_v34 = vld [vmem:[#allocation13 + $0x20] ss:$12 sps:$4 sm:$0xff]  }
 0x166   :  { %v520_v39 = vpop.f32.mrf.mxu0  ;;  %v690_v40 = vpop.f32.mrf.mxu1  ;;  %1461 = vmatprep.subr.bf16.mxu1 %v6879_v35 }
 0x168   :  { %v6440_v42 = vpop.f32.mrf.mxu0  ;;  %v6472_v44 = vpop.f32.mrf.mxu1 }
 0x169   :  { %v740_v9 = vpack.c.bf16 %v6472_v44, %v6471_v38  ;;  %v570_v10 = vpack.c.bf16 %v6440_v42, %v6439_v36  ;;  %v6880_v36 = vld [vmem:[#allocation13 + $0x8] ss:$12 sps:$4 sm:$0xff]  }
 0x16a   :  { %v523_v45 = vpop.f32.mrf.mxu0  ;;  %v693_v46 = vpop.f32.mrf.mxu1 }
 0x16b   :  { %v739_v11 = vpack.c.bf16 %v693_v46, %v690_v40  ;;  %v569_v12 = vpack.c.bf16 %v523_v45, %v520_v39  ;;  %v6881_v46 = vld [vmem:[#allocation14 + $0x90] ss:$12 sps:$4 sm:$0xff]  }
 0x16c   :  { %v6443_v48 = vpop.f32.mrf.mxu0  ;;  %v6475_v49 = vpop.f32.mrf.mxu1 }
 0x16e   :  { %v536_v50 = vpop.f32.mrf.mxu0  ;;  %v706_v51 = vpop.f32.mrf.mxu1 }
 0x170   :  { %v6444_v52 = vpop.f32.mrf.mxu0  ;;  %v6476_v53 = vpop.f32.mrf.mxu1 }
 0x171   :  { %v742_v5 = vpack.c.bf16 %v6476_v53, %v6475_v49  ;;  %v572_v6 = vpack.c.bf16 %v6444_v52, %v6443_v48  ;;  %v6889_v52 = vld [vmem:[#allocation14 + $0x64] ss:$12 sps:$4 sm:$0xff]  }
 0x172   :  { %v539_v54 = vpop.f32.mrf.mxu0  ;;  %v709_v55 = vpop.f32.mrf.mxu1 }
 0x173   :  { %v741_v7 = vpack.c.bf16 %v709_v55, %v706_v51  ;;  %v571_v8 = vpack.c.bf16 %v539_v54, %v536_v50  ;;  %v6884_v50 = vld [vmem:[#allocation14 + $0x78] ss:$12 sps:$4 sm:$0xff]  }
 0x174   :  { %v6447_v56 = vpop.f32.mrf.mxu0  ;;  %v6479_v57 = vpop.f32.mrf.mxu1  ;;  %v6894_v54 = vld [vmem:[#allocation14 + $0x98] ss:$12 sps:$4 sm:$0xff]  }
 0x176   :  { %v552_v58 = vpop.f32.mrf.mxu0  ;;  %v722_v59 = vpop.f32.mrf.mxu1 }
 0x178   :  { %v6448_v60 = vpop.f32.mrf.mxu0  ;;  %v6480_v62 = vpop.f32.mrf.mxu1 }
 0x179   :  { %v574_v61 = vpack.c.bf16 %v6448_v60, %v6447_v56  ;;  %v744_v63 = vpack.c.bf16 %v6480_v62, %v6479_v57  ;;  %v6887_v56 = vld [vmem:[#allocation14 + $0x60] ss:$12 sps:$4 sm:$0xff]  }
 0x17a   :  { %v725_v1 = vpop.f32.mrf.mxu1  ;;  %v555_v2 = vpop.f32.mrf.mxu0  ;;  %v6892_v57 = vld [vmem:[#allocation14 + $0x4c] ss:$12 sps:$4 sm:$0xff]  }
 0x17b   :  { %v743_v3 = vpack.c.bf16 %v725_v1, %v722_v59  ;;  %793 = vmatprep.subr.bf16.mxu0 %v744_v63  ;;  %v573_v4 = vpack.c.bf16 %v555_v2, %v552_v58  ;;  %v6898_v59 = vld [vmem:[#allocation14 + $0x80] ss:$12 sps:$4 sm:$0xff]   ;;  %v6899_v2 = vld [vmem:[#allocation14 + $0x68] ss:$12 sps:$4 sm:$0xff]  }
 0x17c   :  { %794 = vmatpush1.bf16.msra.mxu0 %v574_v61  ;;  %v6890_v61 = vld [vmem:[#allocation14 + $0x48] ss:$12 sps:$4 sm:$0xff]  }
 0x17d   :  { %795 = vmatprep.subr.bf16.mxu0 %v743_v3  ;;  %v6897_v63 = vld [vmem:[#allocation14 + $0x34] ss:$12 sps:$4 sm:$0xff]  }
 0x180   :  { %796 = vmatpush1.bf16.msra.mxu0 %v573_v4  ;;  %v6895_v4 = vld [vmem:[#allocation14 + $0x30] ss:$12 sps:$4 sm:$0xff]  }
 0x181   :  { %797 = vmatprep.subr.bf16.mxu0 %v742_v5  ;;  %v6902_v5 = vld [vmem:[#allocation14 + $0x1c] ss:$12 sps:$4 sm:$0xff]  }
 0x184   :  { %798 = vmatpush1.bf16.msra.mxu0 %v572_v6 }
 0x185   :  { %799 = vmatprep.subr.bf16.mxu0 %v741_v7  ;;  %v6903_v7 = vld [vmem:[#allocation14 + $0x50] ss:$12 sps:$4 sm:$0xff]  }
 0x188   :  { %800 = vmatpush1.bf16.msra.mxu0 %v571_v8 }
 0x189   :  { %801 = vmatprep.subr.bf16.mxu0 %v740_v9  ;;  %v6900_v9 = vld [vmem:[#allocation14 + $0x18] ss:$12 sps:$4 sm:$0xff]  }
 0x18c   :  { %802 = vmatpush1.bf16.msra.mxu0 %v570_v10 }
 0x18d   :  { %803 = vmatprep.subr.bf16.mxu0 %v739_v11  ;;  %v6907_v11 = vld [vmem:[#allocation14 + $0x4] ss:$12 sps:$4 sm:$0xff]  }
 0x190   :  { %804 = vmatpush1.bf16.msra.mxu0 %v569_v12 }
 0x191   :  { %805 = vmatprep.subr.bf16.mxu0 %v738_v13  ;;  %v6904_v13 = vld [vmem:[#allocation14 + $0x38] ss:$12 sps:$4 sm:$0xff]  }
 0x194   :  { %806 = vmatpush1.bf16.msra.mxu0 %v568_v14 }
 0x195   :  { %807 = vmatprep.subr.bf16.mxu0 %v737_v15  ;;  %v6905_v15 = vld [vmem:[#allocation14] ss:$12 sps:$4 sm:$0xff]  }
 0x198   :  { %808 = vmatpush1.bf16.msra.mxu0 %v567_v18 }
 0x199   :  { %6481 = vmatprep.subr.bf16.mxu0 %v6855_v16 }
 0x19b   :  { %826 = vmatmul.mubr.bf16.vlgmr.msra.gmra.mxu0 %v6838_v19  ;;  %v6908_v19 = vld [vmem:[#allocation14 + $0x20] ss:$12 sps:$4 sm:$0xff]  }
 0x19c   :  { %835 = vmatprep.mubr.bf16.mxu0 %v9986_v17  ;;  %6482 = vmatpush3.bf16.msra.mxu0 %v6855_v16  ;;  %v6913_v16 = vld [vmem:[#allocation13 + $0x170] ss:$12 sps:$4 sm:$0xff]  }
 0x19d   :  { %6483 = vmatprep.subr.bf16.mxu0 %v6859_v20 }
 0x1a0   :  { %6484 = vmatpush3.bf16.msra.mxu0 %v6859_v20 }
 0x1a1   :  { %6485 = vmatprep.subr.bf16.mxu0 %v6863_v21 }
 0x1a3   :  { %836 = vmatmul.mubr.bf16.gmra.mxu0 %v6839_v22 }
 0x1a4   :  { %845 = vmatprep.mubr.bf16.mxu0 %v9986_v17  ;;  %6486 = vmatpush3.bf16.msra.mxu0 %v6863_v21 }
 0x1a5   :  { %6487 = vmatprep.subr.bf16.mxu0 %v6867_v23 }
 0x1a8   :  { %6488 = vmatpush3.bf16.msra.mxu0 %v6867_v23  ;;  %v6909_v23 = vld [vmem:[#allocation14 + $0x8] ss:$12 sps:$4 sm:$0xff]  }
 0x1a9   :  { %6489 = vmatprep.subr.bf16.mxu0 %v6871_v24 }
 0x1ab   :  { %846 = vmatmul.mubr.bf16.gmra.mxu0 %v6840_v25 }
 0x1ac   :  { %855 = vmatprep.mubr.bf16.mxu0 %v9986_v17  ;;  %6490 = vmatpush3.bf16.msra.mxu0 %v6871_v24 }
 0x1ad   :  { %6491 = vmatprep.subr.bf16.mxu0 %v6875_v32 }
 0x1b0   :  { %6492 = vmatpush3.bf16.msra.mxu0 %v6875_v32 }
 0x1b1   :  { %6493 = vmatprep.subr.bf16.mxu0 %v6876_v34 }
 0x1b3   :  { %856 = vmatmul.mubr.bf16.gmra.mxu0 %v6841_v26  ;;  %v6912_v26 = vld [vmem:[#allocation13 + $0x16c] ss:$12 sps:$4 sm:$0xff]  }
 0x1b4   :  { %865 = vmatprep.mubr.bf16.mxu0 %v9986_v17  ;;  %6494 = vmatpush3.bf16.msra.mxu0 %v6876_v34 }
 0x1b5   :  { %6495 = vmatprep.subr.bf16.mxu0 %v6880_v36 }
 0x1b8   :  { %6496 = vmatpush3.bf16.msra.mxu0 %v6880_v36 }
 0x1b9   :  { %6513 = vmatprep.subr.bf16.mxu0 %v6893_v37 }
 0x1bb   :  { %866 = vmatmul.mubr.bf16.gmra.mxu0 %v6842_v27 }
 0x1bc   :  { %875 = vmatprep.mubr.bf16.mxu0 %v9986_v17 }
 0x1c3   :  { %876 = vmatmul.mubr.bf16.gmra.mxu0 %v6843_v28 }
 0x1c4   :  { %885 = vmatprep.mubr.bf16.mxu0 %v9986_v17 }
 0x1cb   :  { %886 = vmatmul.mubr.bf16.gmra.mxu0 %v6844_v29 }
 0x1cc   :  { %895 = vmatprep.mubr.bf16.mxu0 %v9986_v17 }
 0x1d3   :  { %896 = vmatmul.mubr.bf16.gmra.mxu0 %v6845_v30 }
 0x25b   :  { %v827_v38 = vpop.f32.mrf.mxu0 }
 0x25d   :  { %v8195_v39 = vpop.f32.mrf.mxu0 }
 0x25f   :  { %v831_v40 = vpop.f32.mrf.mxu0 }
 0x260   :  { %v906_v42 = vpack.c.bf16 %v831_v40, %v827_v38  ;;  %v6910_v40 = vld [vmem:[#allocation13 + $0x168] ss:$12 sps:$4 sm:$0xff]  }
 0x261   :  { %v8197_v44 = vpop.f32.mrf.mxu0 }
 0x262   :  { %1107 = vmatmul.mubr.bf16.vlgmr.msra.gmra.mxu1 %v906_v42  ;;  %6497 = vmatprep.mubr.bf16.mxu0 %v906_v42  ;;  %v6920_v42 = vld [vmem:[#allocation13 + $0x158] ss:$12 sps:$4 sm:$0xff]  }
 0x263   :  { %v837_v45 = vpop.f32.mrf.mxu0  ;;  %1462 = vmatpush1.bf16.msra.mxu1 %v6877_v41  ;;  %1116 = vmatprep.mubr.bf16.mxu1 %v9986_v17  ;;  %v6916_v41 = vld [vmem:[#allocation13 + $0x154] ss:$12 sps:$4 sm:$0xff]  }
 0x264   :  { %1463 = vmatprep.subr.bf16.mxu1 %v6883_v43  ;;  %v6914_v43 = vld [vmem:[#allocation13 + $0x150] ss:$12 sps:$4 sm:$0xff]  }
 0x265   :  { %v8200_v48 = vpop.f32.mrf.mxu0 }
 0x267   :  { %v841_v49 = vpop.f32.mrf.mxu0  ;;  %1464 = vmatpush1.bf16.msra.mxu1 %v6881_v46  ;;  %v6927_v46 = vld [vmem:[#allocation13 + $0x140] ss:$12 sps:$4 sm:$0xff]  }
 0x268   :  { %v907_v51 = vpack.c.bf16 %v841_v49, %v837_v45  ;;  %1465 = vmatprep.subr.bf16.mxu1 %v6886_v47  ;;  %v6919_v45 = vld [vmem:[#allocation13 + $0x13c] ss:$12 sps:$4 sm:$0xff]   ;;  %v6917_v47 = vld [vmem:[#allocation13 + $0x138] ss:$12 sps:$4 sm:$0xff]  }
 0x269   :  { %v8202_v53 = vpop.f32.mrf.mxu0  ;;  %v6923_v49 = vld [vmem:[#allocation13 + $0x124] ss:$12 sps:$4 sm:$0xff]  }
 0x26a   :  { %1117 = vmatmul.mubr.bf16.gmra.mxu1 %v907_v51  ;;  %6498 = vmatmul.mubr.bf16.vlgmr.msra.gmra.mxu0 %v907_v51  ;;  %v6921_v51 = vld [vmem:[#allocation13 + $0x120] ss:$12 sps:$4 sm:$0xff]  }
 0x26b   :  { %v847_v55 = vpop.f32.mrf.mxu0  ;;  %1126 = vmatprep.mubr.bf16.mxu1 %v9986_v17  ;;  %1466 = vmatpush1.bf16.msra.mxu1 %v6884_v50  ;;  %v6934_v50 = vld [vmem:[#allocation13 + $0x128] ss:$12 sps:$4 sm:$0xff]  }
 0x26c   :  { %1467 = vmatprep.subr.bf16.mxu1 %v6889_v52  ;;  %6514 = vmatpush3.bf16.msra.mxu0 %v6893_v37  ;;  %v6926_v52 = vld [vmem:[#allocation13 + $0x10c] ss:$12 sps:$4 sm:$0xff]  }
 0x26d   :  { %v8205_v58 = vpop.f32.mrf.mxu0  ;;  %6515 = vmatprep.subr.bf16.mxu0 %v6894_v54 }
 0x26f   :  { %v851_v60 = vpop.f32.mrf.mxu0  ;;  %1468 = vmatpush1.bf16.msra.mxu1 %v6887_v56  ;;  %v6938_v56 = vld [vmem:[#allocation13 + $0x110] ss:$12 sps:$4 sm:$0xff]  }
 0x270   :  { %v908_v62 = vpack.c.bf16 %v851_v60, %v847_v55  ;;  %1469 = vmatprep.subr.bf16.mxu1 %v6892_v57  ;;  %6516 = vmatpush3.bf16.msra.mxu0 %v6894_v54  ;;  %v6924_v54 = vld [vmem:[#allocation13 + $0x108] ss:$12 sps:$4 sm:$0xff]   ;;  %v6928_v57 = vld [vmem:[#allocation13 + $0xf0] ss:$12 sps:$4 sm:$0xff]  }
 0x271   :  { %v8207_v1 = vpop.f32.mrf.mxu0  ;;  %6517 = vmatprep.subr.bf16.mxu0 %v6898_v59  ;;  %v6930_v55 = vld [vmem:[#allocation13 + $0xf4] ss:$12 sps:$4 sm:$0xff]   ;;  %v6933_v60 = vld [vmem:[#allocation13 + $0xdc] ss:$12 sps:$4 sm:$0xff]  }
 0x272   :  { %1127 = vmatmul.mubr.bf16.gmra.mxu1 %v908_v62  ;;  %6501 = vmatprep.mubr.bf16.mxu0 %v908_v62  ;;  %v6937_v62 = vld [vmem:[#allocation13 + $0xc4] ss:$12 sps:$4 sm:$0xff]  }
 0x273   :  { %v857_v3 = vpop.f32.mrf.mxu0  ;;  %1136 = vmatprep.mubr.bf16.mxu1 %v9986_v17  ;;  %1470 = vmatpush1.bf16.msra.mxu1 %v6890_v61  ;;  %v6931_v61 = vld [vmem:[#allocation13 + $0xd8] ss:$12 sps:$4 sm:$0xff]  }
 0x274   :  { %1471 = vmatprep.subr.bf16.mxu1 %v6897_v63  ;;  %6518 = vmatpush3.bf16.msra.mxu0 %v6898_v59  ;;  %v6939_v59 = vld [vmem:[#allocation13 + $0xf8] ss:$12 sps:$4 sm:$0xff]   ;;  %v6940_v63 = vld [vmem:[#allocation13 + $0xe0] ss:$12 sps:$4 sm:$0xff]  }
 0x275   :  { %v8210_v6 = vpop.f32.mrf.mxu0  ;;  %6519 = vmatprep.subr.bf16.mxu0 %v6899_v2 }
 0x277   :  { %v861_v8 = vpop.f32.mrf.mxu0  ;;  %1472 = vmatpush1.bf16.msra.mxu1 %v6895_v4  ;;  %v1991_v4 = vpack.c.bf16 %v8197_v44, %v8195_v39  ;;  %v1992_v39 = vpack.c.bf16 %v8202_v53, %v8200_v48  ;;  %v6969_v44 = vld [vmem:[#allocation14 + $0x128] ss:$12 sps:$4 sm:$0xff]   ;;  %v6972_v48 = vld [vmem:[#allocation14 + $0xe0] ss:$12 sps:$4 sm:$0xff]  }
 0x278   :  { %v909_v10 = vpack.c.bf16 %v861_v8, %v857_v3  ;;  %6520 = vmatpush3.bf16.msra.mxu0 %v6899_v2  ;;  %1473 = vmatprep.subr.bf16.mxu1 %v6902_v5  ;;  %v6935_v2 = vld [vmem:[#allocation13 + $0xc0] ss:$12 sps:$4 sm:$0xff]   ;;  %v6966_v3 = vld [vmem:[#allocation14 + $0x170] ss:$12 sps:$4 sm:$0xff]   ;;  %v6941_v5 = vld [vmem:[#allocation13 + $0xc8] ss:$12 sps:$4 sm:$0xff]  }
 0x279   :  { %v8212_v12 = vpop.f32.mrf.mxu0  ;;  %6521 = vmatprep.subr.bf16.mxu0 %v6903_v7  ;;  %v6944_v8 = vld [vmem:[#allocation14 + $0x16c] ss:$12 sps:$4 sm:$0xff]  }
 0x27a   :  { %1137 = vmatmul.mubr.bf16.gmra.mxu1 %v909_v10  ;;  %6502 = vmatmul.mubr.bf16.gmra.mxu0 %v909_v10  ;;  %v6970_v10 = vld [vmem:[#allocation14 + $0x110] ss:$12 sps:$4 sm:$0xff]   ;;  %v1994_v53 = vpack.c.bf16 %v8212_v12, %v8210_v6 }
 0x27b   :  { %v867_v14 = vpop.f32.mrf.mxu0  ;;  %1146 = vmatprep.mubr.bf16.mxu1 %v9986_v17  ;;  %1474 = vmatpush1.bf16.msra.mxu1 %v6900_v9  ;;  %v6968_v9 = vld [vmem:[#allocation14 + $0x140] ss:$12 sps:$4 sm:$0xff]   ;;  %v6945_v6 = vld [vmem:[#allocation14 + $0x150] ss:$12 sps:$4 sm:$0xff]  }
 0x27c   :  { %6522 = vmatpush3.bf16.msra.mxu0 %v6903_v7  ;;  %1475 = vmatprep.subr.bf16.mxu1 %v6907_v11  ;;  %v6967_v7 = vld [vmem:[#allocation14 + $0x158] ss:$12 sps:$4 sm:$0xff]   ;;  %v1993_v11 = vpack.c.bf16 %v8207_v1, %v8205_v58  ;;  %v6942_v58 = vld [vmem:[#allocation14 + $0x168] ss:$12 sps:$4 sm:$0xff]  }
 0x27d   :  { %v8215_v18 = vpop.f32.mrf.mxu0  ;;  %6523 = vmatprep.subr.bf16.mxu0 %v6904_v13  ;;  %v6950_v12 = vld [vmem:[#allocation14 + $0x13c] ss:$12 sps:$4 sm:$0xff]  }
 0x27f   :  { %v871_v20 = vpop.f32.mrf.mxu0  ;;  %1476 = vmatpush1.bf16.msra.mxu1 %v6905_v15  ;;  %v6947_v15 = vld [vmem:[#allocation14 + $0x154] ss:$12 sps:$4 sm:$0xff]  }
 0x280   :  { %v910_v21 = vpack.c.bf16 %v871_v20, %v867_v14  ;;  %6524 = vmatpush3.bf16.msra.mxu0 %v6904_v13  ;;  %6545 = vmatprep.subr.bf16.mxu1 %v6913_v16  ;;  %v6971_v13 = vld [vmem:[#allocation14 + $0xf8] ss:$12 sps:$4 sm:$0xff]   ;;  %v6973_v14 = vld [vmem:[#allocation14 + $0xc8] ss:$12 sps:$4 sm:$0xff]  }
 0x281   :  { %v8217_v22 = vpop.f32.mrf.mxu0  ;;  %6525 = vmatprep.subr.bf16.mxu0 %v6908_v19  ;;  %v6953_v20 = vld [vmem:[#allocation14 + $0x124] ss:$12 sps:$4 sm:$0xff]  }
 0x282   :  { %1147 = vmatmul.mubr.bf16.gmra.mxu1 %v910_v21  ;;  %6505 = vmatprep.mubr.bf16.mxu0 %v910_v21  ;;  %v1995_v1 = vpack.c.bf16 %v8217_v22, %v8215_v18  ;;  %v6951_v18 = vld [vmem:[#allocation14 + $0x120] ss:$12 sps:$4 sm:$0xff]   ;;  %v6954_v22 = vld [vmem:[#allocation14 + $0x108] ss:$12 sps:$4 sm:$0xff]  }
 0x283   :  { %v877_v24 = vpop.f32.mrf.mxu0  ;;  %1156 = vmatprep.mubr.bf16.mxu1 %v9986_v17  ;;  %v6956_v21 = vld [vmem:[#allocation14 + $0x10c] ss:$12 sps:$4 sm:$0xff]  }
 0x284   :  { %6526 = vmatpush3.bf16.msra.mxu0 %v6908_v19 }
 0x285   :  { %v8220_v25 = vpop.f32.mrf.mxu0  ;;  %6527 = vmatprep.subr.bf16.mxu0 %v6909_v23 }
 0x287   :  { %v881_v27 = vpop.f32.mrf.mxu0 }
 0x288   :  { %v911_v28 = vpack.c.bf16 %v881_v27, %v877_v24  ;;  %6528 = vmatpush3.bf16.msra.mxu0 %v6909_v23  ;;  %v6959_v24 = vld [vmem:[#allocation14 + $0xf4] ss:$12 sps:$4 sm:$0xff]  }
 0x289   :  { %v8222_v29 = vpop.f32.mrf.mxu0  ;;  %2160 = vmatprep.subr.bf16.mxu0 %v6912_v26  ;;  %v6962_v26 = vld [vmem:[#allocation14 + $0xdc] ss:$12 sps:$4 sm:$0xff]  }
 0x28a   :  { %1157 = vmatmul.mubr.bf16.gmra.mxu1 %v911_v28  ;;  %6506 = vmatmul.mubr.bf16.gmra.mxu0 %v911_v28  ;;  %v1996_v19 = vpack.c.bf16 %v8222_v29, %v8220_v25  ;;  %v6957_v25 = vld [vmem:[#allocation14 + $0xf0] ss:$12 sps:$4 sm:$0xff]   ;;  %v6960_v28 = vld [vmem:[#allocation14 + $0xd8] ss:$12 sps:$4 sm:$0xff]  }
 0x28b   :  { %v887_v30 = vpop.f32.mrf.mxu0  ;;  %1166 = vmatprep.mubr.bf16.mxu1 %v9986_v17 }
 0x28d   :  { %v8225_v31 = vpop.f32.mrf.mxu0 }
 0x28f   :  { %v891_v32 = vpop.f32.mrf.mxu0 }
 0x290   :  { %v912_v33 = vpack.c.bf16 %v891_v32, %v887_v30  ;;  %v6965_v30 = vld [vmem:[#allocation14 + $0xc4] ss:$12 sps:$4 sm:$0xff]   ;;  %v6974_v32 = vld [vmem:[#allocation11 + $0x38] sm:$0xff]  }
 0x291   :  { %v8227_v34 = vpop.f32.mrf.mxu0 }
 0x292   :  { %1167 = vmatmul.mubr.bf16.gmra.mxu1 %v912_v33  ;;  %6509 = vmatprep.mubr.bf16.mxu0 %v912_v33  ;;  %v1997_v23 = vpack.c.bf16 %v8227_v34, %v8225_v31  ;;  %v6963_v31 = vld [vmem:[#allocation14 + $0xc0] ss:$12 sps:$4 sm:$0xff]   ;;  %v6975_v33 = vld [vmem:[#allocation11 + $0x30] sm:$0xff]  }
 0x293   :  { %v897_v35 = vpop.f32.mrf.mxu0  ;;  %1176 = vmatprep.mubr.bf16.mxu1 %v9986_v17  ;;  %v6976_v34 = vld [vmem:[#allocation11 + $0x28] sm:$0xff]  }
 0x295   :  { %v8230_v36 = vpop.f32.mrf.mxu0 }
 0x297   :  { %v901_v37 = vpop.f32.mrf.mxu0 }
 0x298   :  { %v913_v38 = vpack.c.bf16 %v901_v37, %v897_v35  ;;  %v6977_v35 = vld [vmem:[#allocation11 + $0x20] sm:$0xff]   ;;  %v6978_v37 = vld [vmem:[#allocation11 + $0x18] sm:$0xff]  }
 0x299   :  { %v903_v27 = vpop.f32.mrf.mxu0 }
 0x29a   :  { %1177 = vmatmul.mubr.bf16.gmra.mxu1 %v913_v38  ;;  %6510 = vmatmul.mubr.bf16.gmra.mxu0 %v913_v38  ;;  %v1998_v29 = vpack.c.bf16 %v903_v27, %v8230_v36 }
 0x29b   :  { %1493 = vmatprep.mubr.bf16.mxu1 %v9986_v17  ;;  %6529 = vmatprep.mubr.bf16.mxu0 %v8016_v0 }
 0x2a2   :  { %1494 = vmatmul.mubr.bf16.vlgmr.msra.gmra.mxu1 %v8016_v0  ;;  %6530 = vmatmul.mubr.bf16.vlgmr.msra.gmra.mxu0 %v8016_v0 }
 0x2a3   :  { %2161 = vmatpush1.bf16.msra.mxu0 %v6910_v40  ;;  %6546 = vmatpush3.bf16.msra.mxu1 %v6913_v16  ;;  %v6948_v16 = vld [vmem:[#allocation14 + $0x138] ss:$12 sps:$4 sm:$0xff]  }
 0x2a4   :  { %2162 = vmatprep.subr.bf16.mxu0 %v6916_v41  ;;  %1503 = vmatprep.mubr.bf16.mxu1 %v9986_v17  ;;  %v6979_v41 = vld [vmem:[#allocation11 + $0x10] sm:$0xff]  }
 0x2a5   :  { %6533 = vmatprep.mubr.bf16.mxu0 %v8016_v0  ;;  %6547 = vmatprep.subr.bf16.mxu1 %v6920_v42 }
 0x2a7   :  { %2163 = vmatpush1.bf16.msra.mxu0 %v6914_v43  ;;  %6548 = vmatpush3.bf16.msra.mxu1 %v6920_v42 }
 0x2a8   :  { %2164 = vmatprep.subr.bf16.mxu0 %v6919_v45  ;;  %6549 = vmatprep.subr.bf16.mxu1 %v6927_v46  ;;  %v6980_v45 = vld [vmem:[#allocation11 + $0x8] sm:$0xff]  }
 0x2aa   :  { %1504 = vmatmul.mubr.bf16.gmra.mxu1 %v8016_v0  ;;  %6534 = vmatmul.mubr.bf16.gmra.mxu0 %v8016_v0 }
 0x2ab   :  { %2165 = vmatpush1.bf16.msra.mxu0 %v6917_v47  ;;  %1513 = vmatprep.mubr.bf16.mxu1 %v9986_v17 }
 0x2ac   :  { %2166 = vmatprep.subr.bf16.mxu0 %v6923_v49  ;;  %6537 = vmatprep.mubr.bf16.mxu0 %v8016_v0 }
 0x2ad   :  { %6550 = vmatpush3.bf16.msra.mxu1 %v6927_v46 }
 0x2ae   :  { %6551 = vmatprep.subr.bf16.mxu1 %v6934_v50 }
 0x2af   :  { %2167 = vmatpush1.bf16.msra.mxu0 %v6921_v51 }
 0x2b0   :  { %2168 = vmatprep.subr.bf16.mxu0 %v6926_v52  ;;  %v6981_v52 = vld [vmem:[#allocation11] sm:$0xff]  }
 0x2b1   :  { %6552 = vmatpush3.bf16.msra.mxu1 %v6934_v50 }
 0x2b2   :  { %1514 = vmatmul.mubr.bf16.gmra.mxu1 %v8016_v0  ;;  %6538 = vmatmul.mubr.bf16.gmra.mxu0 %v8016_v0 }
 0x2b3   :  { %2169 = vmatpush1.bf16.msra.mxu0 %v6924_v54  ;;  %1523 = vmatprep.mubr.bf16.mxu1 %v9986_v17 }
 0x2b4   :  { %2170 = vmatprep.subr.bf16.mxu0 %v6930_v55  ;;  %6541 = vmatprep.mubr.bf16.mxu0 %v8016_v0 }
 0x2b5   :  { %6553 = vmatprep.subr.bf16.mxu1 %v6938_v56 }
 0x2b6   :  { %6554 = vmatpush3.bf16.msra.mxu1 %v6938_v56 }
 0x2b7   :  { %2171 = vmatpush1.bf16.msra.mxu0 %v6928_v57  ;;  %6555 = vmatprep.subr.bf16.mxu1 %v6939_v59 }
 0x2b8   :  { %2172 = vmatprep.subr.bf16.mxu0 %v6933_v60 }
 0x2ba   :  { %1524 = vmatmul.mubr.bf16.gmra.mxu1 %v8016_v0  ;;  %6542 = vmatmul.mubr.bf16.gmra.mxu0 %v8016_v0 }
 0x2bb   :  { %2173 = vmatpush1.bf16.msra.mxu0 %v6931_v61  ;;  %1533 = vmatprep.mubr.bf16.mxu1 %v9986_v17 }
 0x2bc   :  { %2174 = vmatprep.subr.bf16.mxu0 %v6937_v62  ;;  %2192 = vmatprep.mubr.bf16.mxu0 %v9986_v17 }
 0x2bd   :  { %6556 = vmatpush3.bf16.msra.mxu1 %v6939_v59 }
 0x2be   :  { %6557 = vmatprep.subr.bf16.mxu1 %v6940_v63 }
 0x2bf   :  { %2175 = vmatpush1.bf16.msra.mxu0 %v6935_v2 }
 0x2c0   :  { %6577 = vmatprep.subr.bf16.mxu0 %v6966_v3 }
 0x2c1   :  { %6558 = vmatpush3.bf16.msra.mxu1 %v6940_v63 }
 0x2c2   :  { %1534 = vmatmul.mubr.bf16.gmra.mxu1 %v8016_v0  ;;  %2193 = vmatmul.mubr.bf16.vlgmr.msra.gmra.mxu0 %v1991_v4 }
 0x2c3   :  { %1543 = vmatprep.mubr.bf16.mxu1 %v9986_v17  ;;  %2202 = vmatprep.mubr.bf16.mxu0 %v9986_v17 }
 0x2c4   :  { %6559 = vmatprep.subr.bf16.mxu1 %v6941_v5  ;;  %6578 = vmatpush3.bf16.msra.mxu0 %v6966_v3 }
 0x2c5   :  { %6560 = vmatpush3.bf16.msra.mxu1 %v6941_v5  ;;  %6579 = vmatprep.subr.bf16.mxu0 %v6967_v7 }
 0x2c6   :  { %2549 = vmatprep.subr.bf16.mxu1 %v6944_v8 }
 0x2c8   :  { %6580 = vmatpush3.bf16.msra.mxu0 %v6967_v7 }
 0x2c9   :  { %6581 = vmatprep.subr.bf16.mxu0 %v6968_v9 }
 0x2ca   :  { %1544 = vmatmul.mubr.bf16.gmra.mxu1 %v8016_v0  ;;  %2203 = vmatmul.mubr.bf16.gmra.mxu0 %v1992_v39 }
 0x2cb   :  { %1553 = vmatprep.mubr.bf16.mxu1 %v9986_v17  ;;  %2212 = vmatprep.mubr.bf16.mxu0 %v9986_v17 }
 0x2cc   :  { %6582 = vmatpush3.bf16.msra.mxu0 %v6968_v9 }
 0x2cd   :  { %6583 = vmatprep.subr.bf16.mxu0 %v6969_v44 }
 0x2d0   :  { %6584 = vmatpush3.bf16.msra.mxu0 %v6969_v44 }
 0x2d1   :  { %6585 = vmatprep.subr.bf16.mxu0 %v6970_v10 }
 0x2d2   :  { %1554 = vmatmul.mubr.bf16.gmra.mxu1 %v8016_v0  ;;  %2213 = vmatmul.mubr.bf16.gmra.mxu0 %v1993_v11 }
 0x2d3   :  { %1563 = vmatprep.mubr.bf16.mxu1 %v9986_v17  ;;  %2222 = vmatprep.mubr.bf16.mxu0 %v9986_v17 }
 0x2d4   :  { %6586 = vmatpush3.bf16.msra.mxu0 %v6970_v10 }
 0x2d5   :  { %6587 = vmatprep.subr.bf16.mxu0 %v6971_v13 }
 0x2d8   :  { %6588 = vmatpush3.bf16.msra.mxu0 %v6971_v13 }
 0x2d9   :  { %6589 = vmatprep.subr.bf16.mxu0 %v6972_v48 }
 0x2da   :  { %1564 = vmatmul.mubr.bf16.gmra.mxu1 %v8016_v0  ;;  %2223 = vmatmul.mubr.bf16.gmra.mxu0 %v1994_v53 }
 0x2db   :  { %6561 = vmatprep.mubr.bf16.mxu1 %v1991_v4  ;;  %2232 = vmatprep.mubr.bf16.mxu0 %v9986_v17 }
 0x2dc   :  { %6590 = vmatpush3.bf16.msra.mxu0 %v6972_v48 }
 0x2dd   :  { %6591 = vmatprep.subr.bf16.mxu0 %v6973_v14 }
 0x2e0   :  { %6592 = vmatpush3.bf16.msra.mxu0 %v6973_v14 }
 0x2e1   :  { %6609 = vmatprep.subr.bf16.mxu0 %v6974_v32 }
 0x2e2   :  { %2233 = vmatmul.mubr.bf16.gmra.mxu0 %v1995_v1  ;;  %6562 = vmatmul.mubr.bf16.vlgmr.msra.gmra.mxu1 %v1992_v39 }
 0x2e3   :  { %6565 = vmatprep.mubr.bf16.mxu1 %v1993_v11  ;;  %2550 = vmatpush1.bf16.msra.mxu1 %v6942_v58  ;;  %v1318_v58 = vlaneseq }
 0x2e4   :  { %2551 = vmatprep.subr.bf16.mxu1 %v6947_v15  ;;  %2242 = vmatprep.mubr.bf16.mxu0 %v9986_v17 }
 0x2e7   :  { %2552 = vmatpush1.bf16.msra.mxu1 %v6945_v6 }
 0x2e8   :  { %2553 = vmatprep.subr.bf16.mxu1 %v6950_v12  ;;  %v8379_v12 = vshrl.u32 %v1318_v58, 7 }
 0x2ea   :  { %2243 = vmatmul.mubr.bf16.gmra.mxu0 %v1996_v19  ;;  %6566 = vmatmul.mubr.bf16.gmra.mxu1 %v1994_v53 }
 0x2eb   :  { %6569 = vmatprep.mubr.bf16.mxu1 %v1995_v1  ;;  %2554 = vmatpush1.bf16.msra.mxu1 %v6948_v16 }
 0x2ec   :  { %2555 = vmatprep.subr.bf16.mxu1 %v6953_v20  ;;  %2252 = vmatprep.mubr.bf16.mxu0 %v9986_v17 }
 0x2ef   :  { %2556 = vmatpush1.bf16.msra.mxu1 %v6951_v18 }
 0x2f0   :  { %2557 = vmatprep.subr.bf16.mxu1 %v6956_v21  ;;  %v8390_v21 = vsub.s32 0, %v8379_v12 }
 0x2f2   :  { %2253 = vmatmul.mubr.bf16.gmra.mxu0 %v1997_v23  ;;  %6570 = vmatmul.mubr.bf16.gmra.mxu1 %v1996_v19  ;;  %10037 = vst [vmem:[#allocation34_spill] sm:$0xff] %v8390_v21 }
 0x2f3   :  { %6573 = vmatprep.mubr.bf16.mxu1 %v1997_v23  ;;  %2558 = vmatpush1.bf16.msra.mxu1 %v6954_v22 }
 0x2f4   :  { %2559 = vmatprep.subr.bf16.mxu1 %v6959_v24  ;;  %2262 = vmatprep.mubr.bf16.mxu0 %v9986_v17  ;;  %v8399_v24 = vld [vmem:[%s9981_s8] sm:$0x7] }
 0x2f5   :  { %v8407_v27 = vrot.slane %v8399_v24, %v8390_v21 }
 0x2f7   :  { %2560 = vmatpush1.bf16.msra.mxu1 %v6957_v25 }
 0x2f8   :  { %2561 = vmatprep.subr.bf16.mxu1 %v6962_v26 }
 0x2fa   :  { %2263 = vmatmul.mubr.bf16.gmra.mxu0 %v1998_v29  ;;  %6574 = vmatmul.mubr.bf16.gmra.mxu1 %v1998_v29  ;;  %v212_v29 = vld [vmem:[#allocation7] sm:$0xff] }
 0x2fb   :  { %2562 = vmatpush1.bf16.msra.mxu1 %v6960_v28  ;;  %2581 = vmatprep.mubr.bf16.mxu1 %v9986_v17  ;;  %v8410_v28 = vsub.s32 1, %v8379_v12 }
 0x2fc   :  { %2563 = vmatprep.subr.bf16.mxu1 %v6965_v30  ;;  %6593 = vmatprep.mubr.bf16.mxu0 %v8016_v0 }
 0x2fd   :  { %10041 = vst [vmem:[#allocation38_spill] sm:$0xff] %v8410_v28 }
 0x2ff   :  { %2564 = vmatpush1.bf16.msra.mxu1 %v6963_v31 }
 0x302   :  { %2582 = vmatmul.mubr.bf16.vlgmr.msra.gmra.mxu1 %v8016_v0  ;;  %6594 = vmatmul.mubr.bf16.vlgmr.msra.gmra.mxu0 %v8016_v0 }
 0x303   :  { %2591 = vmatprep.mubr.bf16.mxu1 %v9986_v17  ;;  %6597 = vmatprep.mubr.bf16.mxu0 %v8016_v0 }
 0x304   :  { %6610 = vmatpush3.bf16.msra.mxu0 %v6974_v32 }
 0x305   :  { %6611 = vmatprep.subr.bf16.mxu0 %v6975_v33 }
 0x308   :  { %6612 = vmatpush3.bf16.msra.mxu0 %v6975_v33 }
 0x309   :  { %6613 = vmatprep.subr.bf16.mxu0 %v6976_v34 }
 0x30a   :  { %2592 = vmatmul.mubr.bf16.gmra.mxu1 %v8016_v0  ;;  %6598 = vmatmul.mubr.bf16.gmra.mxu0 %v8016_v0 }
 0x30b   :  { %2601 = vmatprep.mubr.bf16.mxu1 %v9986_v17  ;;  %6601 = vmatprep.mubr.bf16.mxu0 %v8016_v0 }
 0x30c   :  { %6614 = vmatpush3.bf16.msra.mxu0 %v6976_v34 }
 0x30d   :  { %6615 = vmatprep.subr.bf16.mxu0 %v6977_v35 }
 0x310   :  { %6616 = vmatpush3.bf16.msra.mxu0 %v6977_v35 }
 0x311   :  { %6617 = vmatprep.subr.bf16.mxu0 %v6978_v37 }
 0x312   :  { %2602 = vmatmul.mubr.bf16.gmra.mxu1 %v8016_v0  ;;  %6602 = vmatmul.mubr.bf16.gmra.mxu0 %v8016_v0 }
 0x313   :  { %2611 = vmatprep.mubr.bf16.mxu1 %v9986_v17  ;;  %6605 = vmatprep.mubr.bf16.mxu0 %v8016_v0 }
 0x314   :  { %6618 = vmatpush3.bf16.msra.mxu0 %v6978_v37  ;;  %v8422_v37 = vrot.slane %v8399_v24, %v8410_v28 }
 0x315   :  { %6619 = vmatprep.subr.bf16.mxu0 %v6979_v41 }
 0x318   :  { %6620 = vmatpush3.bf16.msra.mxu0 %v6979_v41  ;;  %v215_v41 = vld [vmem:[#allocation7 + $0x18] sm:$0xff] }
 0x319   :  { %6621 = vmatprep.subr.bf16.mxu0 %v6980_v45 }
 0x31a   :  { %2612 = vmatmul.mubr.bf16.gmra.mxu1 %v8016_v0  ;;  %6606 = vmatmul.mubr.bf16.gmra.mxu0 %v8016_v0 }
 0x31b   :  { %2621 = vmatprep.mubr.bf16.mxu1 %v9986_v17 }
 0x31c   :  { %6622 = vmatpush3.bf16.msra.mxu0 %v6980_v45 }
 0x31d   :  { %6623 = vmatprep.subr.bf16.mxu0 %v6981_v52 }
 0x320   :  { %6624 = vmatpush3.bf16.msra.mxu0 %v6981_v52 }
 0x322   :  { %v8296_v36 = vpop.f32.mrf.mxu1  ;;  %2622 = vmatmul.mubr.bf16.gmra.mxu1 %v8016_v0 }
 0x323   :  { %2631 = vmatprep.mubr.bf16.mxu1 %v9986_v17  ;;  %v1109_v34 = vadd.f32 %v8296_v36, %v212_v29 }
 0x324   :  { %v8300_v38 = vpop.f32.mrf.mxu1 }
 0x326   :  { %v8302_v40 = vpop.f32.mrf.mxu1 }
 0x328   :  { %v8304_v42 = vpop.f32.mrf.mxu1 }
 0x32a   :  { %v8306_v43 = vpop.f32.mrf.mxu1  ;;  %2632 = vmatmul.mubr.bf16.gmra.mxu1 %v8016_v0  ;;  %v8314_v49 = vpop.f32.mrf.mxu0 }
 0x32b   :  { %2641 = vmatprep.mubr.bf16.mxu1 %v9986_v17 }
 0x32c   :  { %v8310_v46 = vpop.f32.mrf.mxu1  ;;  %v8322_v54 = vpop.f32.mrf.mxu0 }
 0x32e   :  { %v8312_v47 = vpop.f32.mrf.mxu1  ;;  %v8328_v57 = vpop.f32.mrf.mxu0 }
 0x330   :  { %v8316_v50 = vpop.f32.mrf.mxu1  ;;  %v8335_v61 = vpop.f32.mrf.mxu0 }
 0x332   :  { %v8318_v51 = vpop.f32.mrf.mxu1  ;;  %2642 = vmatmul.mubr.bf16.gmra.mxu1 %v8016_v0 }
 0x333   :  { %2651 = vmatprep.mubr.bf16.mxu1 %v9986_v17  ;;  %v213_v17 = vld [vmem:[#allocation7 + $0x8] sm:$0xff] }
 0x334   :  { %v8324_v55 = vpop.f32.mrf.mxu1 }
 0x336   :  { %v8326_v56 = vpop.f32.mrf.mxu1 }
 0x338   :  { %v8330_v59 = vpop.f32.mrf.mxu1 }
 0x33a   :  { %v8332_v60 = vpop.f32.mrf.mxu1  ;;  %2652 = vmatmul.mubr.bf16.gmra.mxu1 %v8016_v0  ;;  %v8339_v63 = vpop.f32.mrf.mxu0 }
 0x33c   :  { %v8337_v62 = vpop.f32.mrf.mxu1  ;;  %v8345_v4 = vpop.f32.mrf.mxu0 }
 0x33d   :  { %10030 = vst [vmem:[#allocation27_spill] sm:$0xff] %v8345_v4  ;;  %v221_v4 = vld [vmem:[#allocation7 + $0x48] sm:$0xff] }
 0x33e   :  { %v8341_v2 = vpop.f32.mrf.mxu1  ;;  %v8351_v8 = vpop.f32.mrf.mxu0 }
 0x340   :  { %v8343_v3 = vpop.f32.mrf.mxu1  ;;  %v8357_v39 = vpop.f32.mrf.mxu0 }
 0x341   :  { %10031 = vst [vmem:[#allocation28_spill] sm:$0xff] %v8357_v39 }
 0x342   :  { %v8347_v5 = vpop.f32.mrf.mxu1 }
 0x344   :  { %v8349_v7 = vpop.f32.mrf.mxu1 }
 0x346   :  { %v8353_v9 = vpop.f32.mrf.mxu1 }
 0x348   :  { %v8355_v0 = vpop.f32.mrf.mxu1 }
 0x34a   :  { %v8359_v44 = vpop.f32.mrf.mxu1  ;;  %v8361_v10 = vpop.f32.mrf.mxu0 }
 0x34b   :  { %10032 = vst [vmem:[#allocation29_spill] sm:$0xff] %v8361_v10  ;;  %v1111_v10 = vadd.f32 %v8300_v38, %v213_v17 }
 0x34c   :  { %v8363_v11 = vpop.f32.mrf.mxu1  ;;  %v8367_v48 = vpop.f32.mrf.mxu0 }
 0x34d   :  { %10033 = vst [vmem:[#allocation30_spill] sm:$0xff] %v8367_v48 }
 0x34e   :  { %v8365_v13 = vpop.f32.mrf.mxu1  ;;  %v8373_v1 = vpop.f32.mrf.mxu0 }
 0x34f   :  { %10034 = vst [vmem:[#allocation31_spill] sm:$0xff] %v8373_v1 }
 0x350   :  { %v8369_v53 = vpop.f32.mrf.mxu1  ;;  %v8381_v16 = vpop.f32.mrf.mxu0 }
 0x351   :  { %10035 = vst [vmem:[#allocation32_spill] sm:$0xff] %v8381_v16 }
 0x352   :  { %v8371_v14 = vpop.f32.mrf.mxu1 }
 0x354   :  { %v8375_v15 = vpop.f32.mrf.mxu1 }
 0x356   :  { %v8377_v6 = vpop.f32.mrf.mxu1 }
 0x358   :  { %v8383_v19 = vpop.f32.mrf.mxu1 }
 0x35a   :  { %v8385_v20 = vpop.f32.mrf.mxu1  ;;  %v8387_v18 = vpop.f32.mrf.mxu0 }
 0x35b   :  { %10036 = vst [vmem:[#allocation33_spill] sm:$0xff] %v8387_v18  ;;  %v216_v18 = vld [vmem:[#allocation7 + $0x20] sm:$0xff] }
 0x35c   :  { %v8392_v22 = vpop.f32.mrf.mxu1  ;;  %v8394_v23 = vpop.f32.mrf.mxu0  ;;  %v1115_v16 = vadd.f32 %v8304_v42, %v216_v18  ;;  %v222_v18 = vld [vmem:[#allocation7 + $0x50] sm:$0xff] }
 0x35d   :  { %10038 = vst [vmem:[#allocation35_spill] sm:$0xff] %v8394_v23 }
 0x35e   :  { %v8401_v25 = vpop.f32.mrf.mxu1  ;;  %v8403_v26 = vpop.f32.mrf.mxu0 }
 0x35f   :  { %10039 = vst [vmem:[#allocation36_spill] sm:$0xff] %v8401_v25  ;;  %10040 = vst [vmem:[#allocation37_spill] sm:$0xff] %v8403_v26 }
 0x360   :  { %v8412_v30 = vpop.f32.mrf.mxu1  ;;  %v8414_v31 = vpop.f32.mrf.mxu0 }
 0x361   :  { %10042 = vst [vmem:[#allocation39_spill] sm:$0xff] %v8412_v30  ;;  %10043 = vst [vmem:[#allocation40_spill] sm:$0xff] %v8414_v31  ;;  %v1113_v31 = vadd.f32 %v8302_v40, %v215_v41 }
 0x362   :  { %v1495_v32 = vpop.f32.mrf.mxu1  ;;  %v8416_v33 = vpop.f32.mrf.mxu0 }
 0x363   :  { %v1496_v35 = vadd.f32 %v1495_v32, %v8407_v27  ;;  %v218_v32 = vld [vmem:[#allocation7 + $0x30] sm:$0xff] }
 0x364   :  { %v1497_v45 = vpop.f32.mrf.mxu1  ;;  %v8424_v52 = vpop.f32.mrf.mxu0  ;;  %v1119_v41 = vadd.f32 %v8306_v43, %v218_v32  ;;  %v1123_v43 = vadd.f32 %v8312_v47, %v221_v4 }
 0x365   :  { %v1671_v58 = vadd.f32 %v1496_v35, %v1109_v34  ;;  %v1498_v36 = vadd.f32 %v1497_v45, %v8422_v37  ;;  %v219_v45 = vld [vmem:[#allocation7 + $0x38] sm:$0xff] }
 0x366   :  { %v1499_v26 = vpop.f32.mrf.mxu1  ;;  %v8426_v23 = vpop.f32.mrf.mxu0  ;;  %v1121_v42 = vadd.f32 %v8310_v46, %v219_v45  ;;  %v225_v45 = vld [vmem:[#allocation7 + $0x68] sm:$0xff] }
 0x367   :  { %v5927_v21 = vmul.f32 -1.442695, %v1671_v58  ;;  %v1500_v29 = vadd.f32 %v1499_v26, %v8407_v27  ;;  %v1783_v58 = vadd.f32 %v1498_v36, %v1111_v10  ;;  %v224_v10 = vld [vmem:[#allocation7 + $0x60] sm:$0xff] }
 0x368   :  { %v1501_v28 = vpop.f32.mrf.mxu1  ;;  %v8431_v1 = vpop.f32.mrf.mxu0 }
 0x369   :  { %7126 = vpow2.f32 %v5927_v21  ;;  %v1672_v34 = vadd.f32 %v1500_v29, %v1113_v31  ;;  %v1502_v35 = vadd.f32 %v1501_v28, %v8422_v37  ;;  %v5943_v36 = vmul.f32 -1.442695, %v1783_v58 }
 0x36a   :  { %v1505_v48 = vpop.f32.mrf.mxu1  ;;  %v8436_v40 = vpop.f32.mrf.mxu0 }
 0x36b   :  { %v5928_v26 = vmul.f32 -1.442695, %v1672_v34  ;;  %v1506_v39 = vadd.f32 %v1505_v48, %v8407_v27  ;;  %v1784_v30 = vadd.f32 %v1502_v35, %v1115_v16 }
 0x36c   :  { %v1507_v25 = vpop.f32.mrf.mxu1  ;;  %v8440_v17 = vpop.f32.mrf.mxu0 }
 0x36d   :  { %7128 = vpow2.f32 %v5928_v26  ;;  %v1673_v38 = vadd.f32 %v1506_v39, %v1119_v41  ;;  %v1508_v21 = vadd.f32 %v1507_v25, %v8422_v37  ;;  %v5944_v29 = vmul.f32 -1.442695, %v1784_v30 }
 0x36e   :  { %v1509_v28 = vpop.f32.mrf.mxu1  ;;  %v8444_v31 = vpop.f32.mrf.mxu0  ;;  %v1125_v39 = vadd.f32 %v8316_v50, %v222_v18  ;;  %v1129_v41 = vadd.f32 %v8318_v51, %v224_v10  ;;  %v1131_v50 = vadd.f32 %v8324_v55, %v225_v45  ;;  %v227_v18 = vld [vmem:[#allocation7 + $0x78] sm:$0xff] }
 0x36f   :  { %v5929_v48 = vmul.f32 -1.442695, %v1673_v38  ;;  %v1510_v16 = vadd.f32 %v1509_v28, %v8407_v27  ;;  %v1785_v32 = vadd.f32 %v1508_v21, %v1121_v42 }
 0x370   :  { %v1511_v34 = vpop.f32.mrf.mxu1  ;;  %v8448_v35 = vpop.f32.mrf.mxu0 }
 0x371   :  { %7130 = vpow2.f32 %v5929_v48  ;;  %v1674_v46 = vadd.f32 %v1510_v16, %v1123_v43  ;;  %v1512_v25 = vadd.f32 %v1511_v34, %v8422_v37  ;;  %v5945_v38 = vmul.f32 -1.442695, %v1785_v32  ;;  %v228_v16 = vld [vmem:[#allocation7 + $0x80] sm:$0xff] }
 0x372   :  { %v1515_v47 = vpop.f32.mrf.mxu1  ;;  %v8453_v4 = vpop.f32.mrf.mxu0  ;;  %7132 = vpow2.f32 %v5943_v36  ;;  %v1133_v32 = vadd.f32 %v8326_v56, %v227_v18  ;;  %v231_v18 = vld [vmem:[#allocation7 + $0x98] sm:$0xff] }
 0x373   :  { %v5930_v58 = vmul.f32 -1.442695, %v1674_v46  ;;  %v1786_v26 = vadd.f32 %v1512_v25, %v1125_v39  ;;  %v1516_v30 = vadd.f32 %v1515_v47, %v8407_v27  ;;  %7134 = vpow2.f32 %v5944_v29  ;;  %v230_v46 = vld [vmem:[#allocation7 + $0x90] sm:$0xff] }
 0x374   :  { %v1517_v21 = vpop.f32.mrf.mxu1  ;;  %v8456_v42 = vpop.f32.mrf.mxu0 }
 0x375   :  { %7136 = vpow2.f32 %v5930_v58  ;;  %v1675_v28 = vadd.f32 %v1516_v30, %v1129_v41  ;;  %v1518_v51 = vadd.f32 %v1517_v21, %v8422_v37  ;;  %v5946_v10 = vmul.f32 -1.442695, %v1786_v26 }
 0x376   :  { %v7127_v43 = vpop.eup %7126  ;;  %v1519_v48 = vpop.f32.mrf.mxu1  ;;  %7138 = vpow2.f32 %v5945_v38  ;;  %v1135_v26 = vadd.f32 %v8330_v59, %v228_v16  ;;  %v8469_v30 = vsub.s32 2, %v8379_v12  ;;  %v1139_v38 = vadd.f32 %v8332_v60, %v230_v46 }
 0x377   :  { %v8460_v36 = vpop.f32.mrf.mxu0  ;;  %v1735_v34 = vadd.f32 1.0, %v7127_v43  ;;  %v5931_v39 = vmul.f32 -1.442695, %v1675_v28  ;;  %v1787_v29 = vadd.f32 %v1518_v51, %v1131_v50  ;;  %v1520_v55 = vadd.f32 %v1519_v48, %v8407_v27  ;;  %v233_v43 = vld [vmem:[#allocation7 + $0xa8] sm:$0xff] }
 0x378   :  { %v1521_v25 = vpop.f32.mrf.mxu1  ;;  %10044 = vst [vmem:[#allocation41_spill] sm:$0xff] %v8469_v30  ;;  %v8480_v60 = vrot.slane %v8399_v24, %v8469_v30 }
 0x379   :  { %v8464_v45 = vpop.f32.mrf.mxu0  ;;  %7140 = vrcp.f32 %v1735_v34  ;;  %v5947_v41 = vmul.f32 -1.442695, %v1787_v29  ;;  %v1522_v47 = vadd.f32 %v1521_v25, %v8422_v37  ;;  %v1676_v21 = vadd.f32 %v1520_v55, %v1133_v32  ;;  %v234_v32 = vld [vmem:[#allocation7 + $0xb0] sm:$0xff]  ;;  %v220_v25 = vld [vmem:[#allocation7 + $0x40] sm:$0xff] }
 0x37a   :  { %v7129_v58 = vpop.eup %7128  ;;  %7142 = vpow2.f32 %v5946_v10  ;;  %v1525_v56 = vpop.f32.mrf.mxu1  ;;  %v1141_v29 = vadd.f32 %v8337_v62, %v231_v18 }
 0x37b   :  { %v8471_v50 = vpop.f32.mrf.mxu0  ;;  %v1736_v28 = vadd.f32 1.0, %v7129_v58  ;;  %7144 = vpow2.f32 %v5931_v39  ;;  %v1526_v51 = vadd.f32 %v1525_v56, %v8407_v27  ;;  %v5932_v48 = vmul.f32 -1.442695, %v1676_v21 }
 0x37c   :  { %7146 = vpow2.f32 %v5947_v41  ;;  %v1788_v34 = vadd.f32 %v1522_v47, %v1135_v26  ;;  %v1527_v59 = vpop.f32.mrf.mxu1  ;;  %v1143_v41 = vadd.f32 %v8341_v2, %v233_v43  ;;  %v8492_v43 = vadd.f32 %v8314_v49, %v220_v25 }
 0x37d   :  { %v8475_v16 = vpop.f32.mrf.mxu0  ;;  %7148 = vrcp.f32 %v1736_v28  ;;  %v1677_v12 = vadd.f32 %v1526_v51, %v1139_v38  ;;  %v1528_v39 = vadd.f32 %v1527_v59, %v8422_v37  ;;  %v1145_v28 = vadd.f32 %v8343_v3, %v234_v32  ;;  %v236_v51 = vld [vmem:[#allocation7 + $0xc0] sm:$0xff]  ;;  %v217_v3 = vld [vmem:[#allocation7 + $0x28] sm:$0xff] }
 0x37e   :  { %v7131_v10 = vpop.eup %7130  ;;  %v1529_v46 = vpop.f32.mrf.mxu1  ;;  %7150 = vpow2.f32 %v5932_v48  ;;  %v5948_v62 = vmul.f32 -1.442695, %v1788_v34  ;;  %v1609_v48 = vadd.f32 %v8424_v52, %v8480_v60 }
 0x37f   :  { %v8483_v55 = vpop.f32.mrf.mxu0  ;;  %v1737_v47 = vadd.f32 1.0, %v7131_v10  ;;  %v5933_v58 = vmul.f32 -1.442695, %v1677_v12  ;;  %v1530_v26 = vadd.f32 %v1529_v46, %v8407_v27  ;;  %v7133_v21 = vpop.eup %7132  ;;  %v1789_v56 = vadd.f32 %v1528_v39, %v1141_v29  ;;  %v214_v12 = vld [vmem:[#allocation7 + $0x10] sm:$0xff]  ;;  %v223_v10 = vld [vmem:[#allocation7 + $0x58] sm:$0xff] }
 0x380   :  { %10045 = vst [vmem:[#allocation42_spill] sm:$0xff] %v8483_v55  ;;  %v1531_v38 = vpop.f32.mrf.mxu1  ;;  %v7135_v24 = vpop.eup %7134  ;;  %v6982_v39 = vld [vmem:[#allocation11 + $0x78] sm:$0xff]  }
 0x381   :  { %v8487_v18 = vpop.f32.mrf.mxu0  ;;  %7152 = vrcp.f32 %v1737_v47  ;;  %v1678_v59 = vadd.f32 %v1530_v26, %v1143_v41  ;;  %v1532_v30 = vadd.f32 %v1531_v38, %v8422_v37  ;;  %v5949_v46 = vmul.f32 -1.442695, %v1789_v56  ;;  %6641 = vmatprep.subr.bf16.mxu1 %v6982_v39  ;;  %v237_v56 = vld [vmem:[#allocation7 + $0xc8] sm:$0xff] }
 0x382   :  { %v7137_v2 = vpop.eup %7136  ;;  %7154 = vpow2.f32 %v5933_v58  ;;  %v1535_v34 = vpop.f32.mrf.mxu1  ;;  %v1149_v26 = vadd.f32 %v8347_v5, %v236_v51  ;;  %v1847_v38 = vadd.f32 1.0, %v7133_v21  ;;  %v1222_v58 = vadd.f32 %v8322_v54, %v214_v12  ;;  %6642 = vmatpush3.bf16.msra.mxu1 %v6982_v39  ;;  %v239_v54 = vld [vmem:[#allocation7 + $0xd8] sm:$0xff] }
 0x383   :  { %v8496_v29 = vpop.f32.mrf.mxu0  ;;  %v1738_v32 = vadd.f32 1.0, %v7137_v2  ;;  %v5934_v41 = vmul.f32 -1.442695, %v1678_v59  ;;  %v1790_v47 = vadd.f32 %v1532_v30, %v1145_v28  ;;  %7156 = vpow2.f32 %v5948_v62  ;;  %v7139_v52 = vpop.eup %7138  ;;  %v232_v2 = vld [vmem:[#allocation7 + $0xa0] sm:$0xff] }
 0x384   :  { %10046 = vst [vmem:[#allocation43_spill] sm:$0xff] %v8496_v29  ;;  %v1536_v49 = vadd.f32 %v1535_v34, %v8407_v27  ;;  %v1537_v25 = vpop.f32.mrf.mxu1  ;;  %v8504_v29 = vadd.f32 %v8328_v57, %v223_v10  ;;  %v1848_v59 = vadd.f32 1.0, %v7135_v24  ;;  %v1225_v30 = vadd.f32 %v8335_v61, %v217_v3  ;;  %v6983_v34 = vld [vmem:[#allocation11 + $0x70] sm:$0xff]  }
 0x385   :  { %v8500_v55 = vpop.f32.mrf.mxu0  ;;  %7158 = vrcp.f32 %v1738_v32  ;;  %v5950_v21 = vmul.f32 -1.442695, %v1790_v47  ;;  %v1612_v57 = vadd.f32 %v8431_v1, %v8480_v60  ;;  %v1538_v24 = vadd.f32 %v1537_v25, %v8422_v37  ;;  %6643 = vmatprep.subr.bf16.mxu1 %v6983_v34 }
 0x386   :  { %10047 = vst [vmem:[#allocation44_spill] sm:$0xff] %v8500_v55  ;;  %v7141_v5 = vpop.eup %7140  ;;  %7160 = vpow2.f32 %v5934_v41  ;;  %v1679_v62 = vadd.f32 %v1536_v49, %v1149_v26  ;;  %v1539_v28 = vpop.f32.mrf.mxu1  ;;  %v8513_v39 = vadd.f32 %v8339_v63, %v232_v2  ;;  %v1151_v61 = vadd.f32 %v8349_v7, %v237_v56  ;;  %v240_v26 = vld [vmem:[#allocation7 + $0xe0] sm:$0xff]  ;;  %6644 = vmatpush3.bf16.msra.mxu1 %v6983_v34  ;;  %v242_v2 = vld [vmem:[#allocation7 + $0xf0] sm:$0xff] }
 0x387   :  { %v8507_v51 = vpop.f32.mrf.mxu0  ;;  %v7143_v55 = vpop.eup %7142  ;;  %v1895_v12 = vmul.f32 %v7141_v5, %v1609_v48  ;;  %7162 = vpow2.f32 %v5949_v46  ;;  %v1849_v3 = vadd.f32 1.0, %v7139_v52  ;;  %v235_v48 = vld [vmem:[#allocation7 + $0xb8] sm:$0xff]  ;;  %v1540_v46 = vadd.f32 %v1539_v28, %v8407_v27  ;;  %v6984_v5 = vld [vmem:[#allocation11 + $0x68] sm:$0xff]  }
 0x388   :  { %v7145_v10 = vpop.eup %7144  ;;  %7164 = vrcp.f32 %v1847_v38  ;;  %v1541_v32 = vpop.f32.mrf.mxu1  ;;  %v5935_v1 = vmul.f32 -1.442695, %v1679_v62  ;;  %v1153_v63 = vadd.f32 %v8353_v9, %v239_v54  ;;  %v1617_v7 = vadd.f32 %v8416_v33, %v8480_v60  ;;  %6645 = vmatprep.subr.bf16.mxu1 %v6984_v5 }
 0x389   :  { %v8516_v41 = vpop.f32.mrf.mxu0  ;;  %v7147_v47 = vpop.eup %7146  ;;  %v1911_v49 = vadd.f32 %v1895_v12, %v1222_v58  ;;  %7166 = vrcp.f32 %v1848_v59  ;;  %v1850_v38 = vadd.f32 1.0, %v7143_v55  ;;  %v1739_v59 = vadd.f32 1.0, %v7145_v10  ;;  %v245_v12 = vld [vmem:[#allocation7 + $0x108] sm:$0xff]  ;;  %v246_v10 = vld [vmem:[#allocation7 + $0x110] sm:$0xff] }
 0x38a   :  { %10048 = vst [vmem:[#allocation45_spill] sm:$0xff] %v8516_v41  ;;  %v7149_v25 = vpop.eup %7148  ;;  %7168 = vpow2.f32 %v5950_v21  ;;  %v1545_v52 = vpop.f32.mrf.mxu1  ;;  %v243_v41 = vld [vmem:[#allocation7 + $0xf8] sm:$0xff]  ;;  %v1791_v62 = vadd.f32 %v1538_v24, %v1151_v61  ;;  %v8525_v28 = vadd.f32 %v8351_v8, %v235_v48  ;;  %v1155_v9 = vadd.f32 %v8355_v0, %v240_v26  ;;  %6646 = vmatpush3.bf16.msra.mxu1 %v6984_v5  ;;  %v6985_v48 = vld [vmem:[#allocation11 + $0x60] sm:$0xff]  }
 0x38b   :  { %v8522_v56 = vpop.f32.mrf.mxu0  ;;  %7170 = vtanh.f32 %v1911_v49  ;;  %v1896_v58 = vmul.f32 %v7149_v25, %v1612_v57  ;;  %v1851_v34 = vadd.f32 1.0, %v7147_v47  ;;  %v7151_v55 = vpop.eup %7150  ;;  %v1159_v21 = vadd.f32 %v8359_v44, %v242_v2  ;;  %v248_v26 = vld [vmem:[#allocation7 + $0x120] sm:$0xff]  ;;  %6647 = vmatprep.subr.bf16.mxu1 %v6985_v48 }
 0x38c   :  { %10049 = vst [vmem:[#allocation46_spill] sm:$0xff] %v8522_v56  ;;  %7172 = vrcp.f32 %v1849_v3  ;;  %v1547_v54 = vpop.f32.mrf.mxu1  ;;  %v1680_v57 = vadd.f32 %v1540_v46, %v1153_v63  ;;  %v8532_v8 = vadd.f32 %v8363_v11, %v243_v41  ;;  %v1542_v0 = vadd.f32 %v1541_v32, %v8422_v37 }
 0x38d   :  { %v8528_v33 = vpop.f32.mrf.mxu0  ;;  %v1912_v56 = vadd.f32 %v1896_v58, %v1225_v30  ;;  %7174 = vpow2.f32 %v5935_v1  ;;  %v1546_v61 = vadd.f32 %v1545_v52, %v8407_v27  ;;  %v1620_v30 = vadd.f32 %v8426_v23, %v8480_v60 }
 0x38e   :  { %v7153_v24 = vpop.eup %7152  ;;  %7176 = vrcp.f32 %v1850_v38  ;;  %v1549_v3 = vpop.f32.mrf.mxu1  ;;  %v5951_v1 = vmul.f32 -1.442695, %v1791_v62  ;;  %v1163_v11 = vadd.f32 %v8365_v13, %v245_v12  ;;  %v1165_v2 = vadd.f32 %v8369_v53, %v246_v10  ;;  %6648 = vmatpush3.bf16.msra.mxu1 %v6985_v48  ;;  %v6986_v62 = vld [vmem:[#allocation11 + $0x58] sm:$0xff]   ;;  %v249_v12 = vld [vmem:[#allocation7 + $0x128] sm:$0xff] }
 0x38f   :  { %v8536_v47 = vpop.f32.mrf.mxu0  ;;  %v7155_v44 = vpop.eup %7154  ;;  %v1897_v49 = vmul.f32 %v7153_v24, %v1617_v7  ;;  %7178 = vrcp.f32 %v1739_v59  ;;  %v1550_v32 = vadd.f32 %v1549_v3, %v8407_v27  ;;  %v5936_v23 = vmul.f32 -1.442695, %v1680_v57  ;;  %v251_v24 = vld [vmem:[#allocation7 + $0x138] sm:$0xff]  ;;  %v254_v57 = vld [vmem:[#allocation7 + $0x150] sm:$0xff]  ;;  %6649 = vmatprep.subr.bf16.mxu1 %v6986_v62 }
 0x390   :  { %7180 = vrcp.f32 %v1851_v34  ;;  %v1741_v41 = vadd.f32 1.0, %v7155_v44  ;;  %v1551_v46 = vpop.f32.mrf.mxu1  ;;  %v7157_v63 = vpop.eup %7156  ;;  %v1169_v52 = vadd.f32 %v8371_v14, %v248_v26  ;;  %v1792_v13 = vadd.f32 %v1542_v0, %v1155_v9 }
 0x391   :  { %v8542_v25 = vpop.f32.mrf.mxu0  ;;  %7182 = vtanh.f32 %v1912_v56  ;;  %v1913_v38 = vadd.f32 %v1897_v49, %v8492_v43  ;;  %v1681_v5 = vadd.f32 %v1546_v61, %v1159_v21  ;;  %v1740_v53 = vadd.f32 1.0, %v7151_v55 }
 0x392   :  { %v7159_v7 = vpop.eup %7158  ;;  %7184 = vrcp.f32 %v1741_v41  ;;  %v1555_v58 = vpop.f32.mrf.mxu1  ;;  %v1548_v14 = vadd.f32 %v1547_v54, %v8422_v37  ;;  %v1682_v9 = vadd.f32 %v1550_v32, %v1163_v11  ;;  %v1852_v44 = vadd.f32 1.0, %v7157_v63  ;;  %6650 = vmatpush3.bf16.msra.mxu1 %v6986_v62  ;;  %v6987_v41 = vld [vmem:[#allocation11 + $0x50] sm:$0xff]  }
 0x393   :  { %v8547_v59 = vpop.f32.mrf.mxu0  ;;  %v7161_v34 = vpop.eup %7160  ;;  %v1898_v3 = vmul.f32 %v7159_v7, %v1620_v30  ;;  %7186 = vpow2.f32 %v5951_v1  ;;  %v1556_v43 = vadd.f32 %v1555_v58, %v8407_v27  ;;  %v1552_v55 = vadd.f32 %v1551_v46, %v8422_v37  ;;  %6651 = vmatprep.subr.bf16.mxu1 %v6987_v41 }
 0x394   :  { %v7163_v56 = vpop.eup %7162  ;;  %7188 = vtanh.f32 %v1913_v38  ;;  %v1742_v10 = vadd.f32 1.0, %v7161_v34  ;;  %v1557_v21 = vpop.f32.mrf.mxu1  ;;  %v8560_v30 = vadd.f32 %v8375_v15, %v249_v12  ;;  %v1173_v54 = vadd.f32 %v8377_v6, %v251_v24  ;;  %v252_v12 = vld [vmem:[#allocation7 + $0x140] sm:$0xff]  ;;  %v255_v24 = vld [vmem:[#allocation7 + $0x158] sm:$0xff] }
 0x395   :  { %v8551_v0 = vpop.f32.mrf.mxu0  ;;  %v8553_v61 = vpop.eup %7164  ;;  %v1914_v48 = vadd.f32 %v1898_v3, %v8504_v29  ;;  %7190 = vpow2.f32 %v5936_v23  ;;  %v5937_v49 = vmul.f32 -1.442695, %v1681_v5  ;;  %v1179_v29 = vadd.f32 %v8385_v20, %v254_v57 }
 0x396   :  { %v8557_v26 = vpop.eup %7166  ;;  %7192 = vrcp.f32 %v1742_v10  ;;  %v1559_v1 = vpop.f32.mrf.mxu1  ;;  %v1853_v63 = vadd.f32 1.0, %v7163_v56  ;;  %v1683_v46 = vadd.f32 %v1556_v43, %v1169_v52  ;;  %v5938_v23 = vmul.f32 -1.442695, %v1682_v9  ;;  %6652 = vmatpush3.bf16.msra.mxu1 %v6987_v41  ;;  %v6988_v10 = vld [vmem:[#allocation11 + $0x48] sm:$0xff]  }
 0x397   :  { %v8563_v11 = vpop.f32.mrf.mxu0  ;;  %v7169_v32 = vpop.eup %7168  ;;  %7194 = vrcp.f32 %v1740_v53  ;;  %v1560_v15 = vadd.f32 %v1559_v1, %v8407_v27  ;;  %v1943_v6 = vsub.f32 1.0, %v8553_v61  ;;  %v5952_v62 = vmul.f32 -1.442695, %v1792_v13  ;;  %6653 = vmatprep.subr.bf16.mxu1 %v6988_v10 }
 0x398   :  { %v7171_v38 = vpop.eup %7170  ;;  %7196 = vtanh.f32 %v1914_v48  ;;  %v1561_v7 = vpop.f32.mrf.mxu1  ;;  %v1793_v20 = vadd.f32 %v1548_v14, %v8532_v8  ;;  %v1794_v34 = vadd.f32 %v1552_v55, %v1165_v2  ;;  %v1854_v3 = vadd.f32 1.0, %v7169_v32  ;;  %v257_v32 = vld [vmem:[#allocation7 + $0x168] sm:$0xff] }
 0x399   :  { %v8567_v58 = vpop.f32.mrf.mxu0  ;;  %v8570_v5 = vpop.eup %7172  ;;  %7198 = vrcp.f32 %v1852_v44  ;;  %v1684_v53 = vadd.f32 %v1560_v15, %v1173_v54  ;;  %v1959_v57 = vmul.f32 %v7171_v38, %v1943_v6  ;;  %v1633_v13 = vadd.f32 %v8436_v40, %v8480_v60  ;;  %v6989_v6 = vld [vmem:[#allocation11 + $0x40] sm:$0xff]  }
 0x39a   :  { %v7175_v52 = vpop.eup %7174  ;;  %7200 = vpow2.f32 %v5937_v49  ;;  %v1565_v43 = vpop.f32.mrf.mxu1  ;;  %v5939_v8 = vmul.f32 -1.442695, %v1683_v46  ;;  %v1558_v2 = vadd.f32 %v1557_v21, %v8422_v37  ;;  %v1562_v44 = vadd.f32 %v1561_v7, %v8422_v37  ;;  %6654 = vmatpush3.bf16.msra.mxu1 %v6988_v10 }
 0x39b   :  { %v8573_v56 = vpop.f32.mrf.mxu0  ;;  %v8575_v9 = vpop.eup %7176  ;;  %7202 = vrcp.f32 %v1853_v63  ;;  %v1743_v48 = vadd.f32 1.0, %v7175_v52  ;;  %v1566_v55 = vadd.f32 %v1565_v43, %v8407_v27  ;;  %v1175_v40 = vadd.f32 %v8383_v19, %v252_v12  ;;  %6655 = vmatprep.subr.bf16.mxu1 %v6989_v6 }
 0x39c   :  { %v8580_v14 = vpop.eup %7178  ;;  %7204 = vpow2.f32 %v5938_v23  ;;  %v1567_v54 = vpop.f32.mrf.mxu1  ;;  %v1181_v41 = vadd.f32 %v8392_v22, %v255_v24  ;;  %v5953_v21 = vmul.f32 -1.442695, %v1793_v20  ;;  %v5954_v46 = vmul.f32 -1.442695, %v1794_v34  ;;  %v10050_v20 = vld [vmem:[#allocation36_spill] sm:$0xff] }
 0x39d   :  { %v8584_v49 = vpop.f32.mrf.mxu0  ;;  %v8586_v1 = vpop.eup %7180  ;;  %7206 = vpow2.f32 %v5952_v62  ;;  %v5940_v38 = vmul.f32 -1.442695, %v1684_v53  ;;  %v1685_v23 = vadd.f32 %v1566_v55, %v1179_v29  ;;  %v1795_v43 = vadd.f32 %v1558_v2, %v8560_v30 }
 0x39e   :  { %v7183_v63 = vpop.eup %7182  ;;  %7208 = vrcp.f32 %v1854_v3  ;;  %v1569_v15 = vpop.f32.mrf.mxu1  ;;  %v1568_v19 = vadd.f32 %v1567_v54, %v8422_v37  ;;  %v1944_v22 = vsub.f32 1.0, %v8557_v26  ;;  %v1183_v12 = vadd.f32 %v10050_v20, %v257_v32  ;;  %6656 = vmatpush3.bf16.msra.mxu1 %v6989_v6  ;;  %v258_v32 = vld [vmem:[#allocation7 + $0x170] sm:$0xff] }
 0x39f   :  { %v8590_v7 = vpop.f32.mrf.mxu0  ;;  %v7185_v52 = vpop.eup %7184  ;;  %7210 = vpow2.f32 %v5939_v8  ;;  %v1796_v34 = vadd.f32 %v1562_v44, %v1175_v40  ;;  %v1636_v10 = vadd.f32 %v8444_v31, %v8480_v60  ;;  %v1570_v30 = vadd.f32 %v1569_v15, %v8407_v27 }
 0x3a0   :  { %v7187_v62 = vpop.eup %7186  ;;  %v1901_v24 = vmul.f32 %v7185_v52, %v1633_v13  ;;  %7212 = vrcp.f32 %v1743_v48  ;;  %v1571_v3 = vpop.f32.mrf.mxu1  ;;  %v1960_v8 = vmul.f32 %v7183_v63, %v1944_v22  ;;  %v5941_v13 = vmul.f32 -1.442695, %v1685_v23 }
 0x3a1   :  { %v8596_v29 = vpop.f32.mrf.mxu0  ;;  %v7189_v53 = vpop.eup %7188  ;;  %7214 = vpow2.f32 %v5953_v21  ;;  %v8607_v54 = vadd.f32 %v8553_v61, %v1959_v57  ;;  %v5955_v21 = vmul.f32 -1.442695, %v1795_v43  ;;  %v1797_v27 = vadd.f32 %v1568_v19, %v1181_v41  ;;  %v10053_v41 = vld [vmem:[#allocation39_spill] sm:$0xff] }
 0x3a2   :  { %v7191_v2 = vpop.eup %7190  ;;  %v1917_v55 = vadd.f32 %v1901_v24, %v8513_v39  ;;  %7216 = vpow2.f32 %v5940_v38  ;;  %v8604_v44 = vpop.f32.mrf.mxu1  ;;  %v1945_v15 = vsub.f32 1.0, %v8570_v5  ;;  %v1855_v39 = vadd.f32 1.0, %v7187_v62 }
 0x3a3   :  { %v8602_v48 = vpop.f32.mrf.mxu0  ;;  %10051 = vst [vmem:[#allocation36_spill] sm:$0xff] %v8607_v54  ;;  %v7193_v40 = vpop.eup %7192  ;;  %v1744_v31 = vadd.f32 1.0, %v7191_v2  ;;  %7218 = vpow2.f32 %v5954_v46  ;;  %v5956_v38 = vmul.f32 -1.442695, %v1796_v34  ;;  %v1686_v61 = vadd.f32 %v1570_v30, %v1183_v12 }
 0x3a4   :  { %v7195_v63 = vpop.eup %7194  ;;  %7220 = vtanh.f32 %v1917_v55  ;;  %v8612_v6 = vpop.f32.mrf.mxu1  ;;  %v1902_v22 = vmul.f32 %v7193_v40, %v1636_v10  ;;  %v8615_v57 = vadd.f32 %v8557_v26, %v1960_v8  ;;  %v1185_v43 = vadd.f32 %v10053_v41, %v258_v32 }
 0x3a5   :  { %v8610_v23 = vpop.f32.mrf.mxu0  ;;  %v7197_v52 = vpop.eup %7196  ;;  %7222 = vrcp.f32 %v1744_v31  ;;  %v1946_v19 = vsub.f32 1.0, %v8575_v9  ;;  %v1961_v24 = vmul.f32 %v7189_v53, %v1945_v15  ;;  %v5957_v10 = vmul.f32 -1.442695, %v1797_v27 }
 0x3a6   :  { %10052 = vst [vmem:[#allocation47_spill] sm:$0xff] %v8615_v57  ;;  %v8617_v46 = vpop.eup %7198  ;;  %7224 = vpow2.f32 %v5941_v13  ;;  %v8623_v20 = vpop.f32.mrf.mxu1  ;;  %v1572_v12 = vadd.f32 %v1571_v3, %v8422_v37  ;;  %v8628_v26 = vpack.c.bf16 %v8615_v57, %v8607_v54  ;;  %v1625_v8 = vadd.f32 %v8440_v17, %v8480_v60  ;;  %v10063_v57 = vld [vmem:[#allocation30_spill] sm:$0xff] }
 0x3a7   :  { %v8621_v62 = vpop.f32.mrf.mxu0  ;;  %v7201_v34 = vpop.eup %7200  ;;  %7226 = vpow2.f32 %v5955_v21  ;;  %v1962_v53 = vmul.f32 %v7197_v52, %v1946_v19  ;;  %v1628_v37 = vadd.f32 %v8448_v35, %v8480_v60  ;;  %v1918_v3 = vadd.f32 %v1902_v22, %v8525_v28  ;;  %v226_v35 = vld [vmem:[#allocation7 + $0x70] sm:$0xff]  ;;  %v229_v22 = vld [vmem:[#allocation7 + $0x88] sm:$0xff] }
 0x3a8   :  { %10054 = vst [vmem:[#allocation39_spill] sm:$0xff] %v8628_v26  ;;  %v8630_v30 = vpop.eup %7202  ;;  %7228 = vrcp.f32 %v1855_v39  ;;  %v1745_v2 = vadd.f32 1.0, %v7201_v34  ;;  %v8636_v13 = vpop.f32.mrf.mxu1  ;;  %v5942_v32 = vmul.f32 -1.442695, %v1686_v61  ;;  %6625 = vmatprep.mubr.bf16.mxu0 %v8628_v26  ;;  %v8645_v27 = vadd.f32 %v8570_v5, %v1961_v24 }
 0x3a9   :  { %v8634_v55 = vpop.f32.mrf.mxu0  ;;  %v7205_v40 = vpop.eup %7204  ;;  %7230 = vpow2.f32 %v5956_v38  ;;  %v8648_v15 = vadd.f32 %v8575_v9, %v1962_v53  ;;  %v1798_v28 = vadd.f32 %v1572_v12, %v1185_v43  ;;  %v1899_v61 = vmul.f32 %v8580_v14, %v1625_v8  ;;  %v10059_v12 = vld [vmem:[#allocation27_spill] sm:$0xff]  ;;  %v10061_v8 = vld [vmem:[#allocation28_spill] sm:$0xff] }
 0x3aa   :  { %v7207_v31 = vpop.eup %7206  ;;  %7232 = vrcp.f32 %v1745_v2  ;;  %v1746_v17 = vadd.f32 1.0, %v7205_v40  ;;  %v8642_v21 = vpop.f32.mrf.mxu1  ;;  %10055 = vst [vmem:[#allocation48_spill] sm:$0xff] %v8645_v27  ;;  %v1641_v41 = vadd.f32 %v8456_v42, %v8480_v60  ;;  %v1900_v24 = vmul.f32 %v7195_v63, %v1628_v37  ;;  %v238_v40 = vld [vmem:[#allocation7 + $0xd0] sm:$0xff] }
 0x3ab   :  { %10056 = vst [vmem:[#allocation49_spill] sm:$0xff] %v8648_v15  ;;  %v8650_v39 = vpop.eup %7208  ;;  %7234 = vpow2.f32 %v5957_v10  ;;  %v8652_v38 = vpop.f32.mrf.mxu0  ;;  %v8659_v5 = vpack.c.bf16 %v8648_v15, %v8645_v27  ;;  %v1856_v34 = vadd.f32 1.0, %v7207_v31  ;;  %v1238_v2 = vadd.f32 %v10059_v12, %v226_v35 }
 0x3ac   :  { %v7211_v52 = vpop.eup %7210  ;;  %7236 = vrcp.f32 %v1746_v17  ;;  %v8661_v9 = vpop.f32.mrf.mxu1  ;;  %v1241_v53 = vadd.f32 %v10061_v8, %v229_v22  ;;  %v241_v17 = vld [vmem:[#allocation7 + $0xe8] sm:$0xff]  ;;  %v1644_v15 = vadd.f32 %v8464_v45, %v8480_v60  ;;  %v5958_v63 = vmul.f32 -1.442695, %v1798_v28 }
 0x3ad   :  { %10057 = vst [vmem:[#allocation50_spill] sm:$0xff] %v8659_v5  ;;  %10058 = vst [vmem:[#allocation51_spill] sm:$0xff] %v8661_v9  ;;  %v7213_v19 = vpop.eup %7212  ;;  %v1747_v43 = vadd.f32 1.0, %v7211_v52  ;;  %7238 = vpow2.f32 %v5942_v32  ;;  %6626 = vmatmul.mubr.bf16.vlgmr.msra.gmra.mxu0 %v8659_v5  ;;  %v8670_v37 = vpop.f32.mrf.mxu0  ;;  %v1915_v52 = vadd.f32 %v1899_v61, %v1238_v2  ;;  %v1949_v12 = vsub.f32 1.0, %v8630_v30  ;;  %v10064_v5 = vld [vmem:[#allocation32_spill] sm:$0xff]  ;;  %v268_v9 = vld [vmem:[#allocation7 + $0x1b8] sm:$0xff] }
 0x3ae   :  { %v7215_v10 = vpop.eup %7214  ;;  %7240 = vtanh.f32 %v1918_v3  ;;  %v8665_v14 = vpop.f32.mrf.mxu1  ;;  %v1903_v31 = vmul.f32 %v7213_v19, %v1641_v41  ;;  %v1916_v22 = vadd.f32 %v1900_v24, %v1241_v53  ;;  %v1254_v54 = vadd.f32 %v10063_v57, %v238_v40 }
 0x3af   :  { %10060 = vst [vmem:[#allocation27_spill] sm:$0xff] %v8665_v14  ;;  %v7217_v42 = vpop.eup %7216  ;;  %7242 = vrcp.f32 %v1747_v43  ;;  %v1257_v45 = vadd.f32 %v10064_v5, %v241_v17  ;;  %v1649_v41 = vadd.f32 %v8453_v4, %v8480_v60  ;;  %v1857_v61 = vadd.f32 1.0, %v7215_v10  ;;  %v8681_v2 = vpop.f32.mrf.mxu0  ;;  %v247_v4 = vld [vmem:[#allocation7 + $0x118] sm:$0xff]  ;;  %v10087_v14 = vld [vmem:[#allocation44_spill] sm:$0xff] }
 0x3b0   :  { %v7219_v32 = vpop.eup %7218  ;;  %v1748_v35 = vadd.f32 1.0, %v7217_v42  ;;  %v8672_v3 = vpop.f32.mrf.mxu1  ;;  %7244 = vrcp.f32 %v1856_v34  ;;  %10066 = vst [vmem:[#allocation32_spill] sm:$0xff] %v8681_v2  ;;  %v1919_v5 = vadd.f32 %v1903_v31, %v1254_v54 }
 0x3b1   :  { %10062 = vst [vmem:[#allocation28_spill] sm:$0xff] %v8672_v3  ;;  %v7221_v27 = vpop.eup %7220  ;;  %v1858_v10 = vadd.f32 1.0, %v7219_v32  ;;  %v8699_v31 = vpop.f32.mrf.mxu0 }
 0x3b2   :  { %v7223_v8 = vpop.eup %7222  ;;  %7246 = vrcp.f32 %v1748_v35  ;;  %v8677_v28 = vpop.f32.mrf.mxu1  ;;  %v1965_v43 = vmul.f32 %v7221_v27, %v1949_v12  ;;  %v244_v27 = vld [vmem:[#allocation7 + $0x100] sm:$0xff]  ;;  %10070 = vst [vmem:[#allocation55_spill] sm:$0xff] %v8699_v31 }
 0x3b3   :  { %10065 = vst [vmem:[#allocation30_spill] sm:$0xff] %v8677_v28  ;;  %v7225_v26 = vpop.eup %7224  ;;  %v1904_v19 = vmul.f32 %v7223_v8, %v1644_v15  ;;  %7248 = vpow2.f32 %v5958_v63  ;;  %v1652_v15 = vadd.f32 %v8460_v36, %v8480_v60  ;;  %v259_v28 = vld [vmem:[#allocation7 + $0x178] sm:$0xff] }
 0x3b4   :  { %v7227_v34 = vpop.eup %7226  ;;  %v1749_v24 = vadd.f32 1.0, %v7225_v26  ;;  %7250 = vtanh.f32 %v1915_v52  ;;  %v8683_v42 = vpop.f32.mrf.mxu1  ;;  %v8686_v57 = vadd.f32 %v8630_v30, %v1965_v43  ;;  %v8697_v26 = vld [vmem:[%s9981_s8 + $0x3] sm:$0x7]  ;;  %v10071_v52 = vld [vmem:[#allocation29_spill] sm:$0xff] }
 0x3b5   :  { %10067 = vst [vmem:[#allocation52_spill] sm:$0xff] %v8683_v42  ;;  %v8688_v53 = vpop.eup %7228  ;;  %7252 = vtanh.f32 %v1916_v22  ;;  %v1920_v30 = vadd.f32 %v1904_v19, %v1257_v45  ;;  %v1859_v63 = vadd.f32 1.0, %v7227_v34  ;;  %v1262_v12 = vadd.f32 %v10071_v52, %v244_v27  ;;  %v256_v22 = vld [vmem:[#allocation7 + $0x160] sm:$0xff]  ;;  %v10074_v45 = vld [vmem:[#allocation34_spill] sm:$0xff]  ;;  %v250_v34 = vld [vmem:[#allocation7 + $0x130] sm:$0xff]  ;;  %v8720_v42 = vpop.f32.mrf.mxu0 }
 0x3b6   :  { %10068 = vst [vmem:[#allocation53_spill] sm:$0xff] %v8686_v57  ;;  %v7231_v40 = vpop.eup %7230  ;;  %7254 = vrcp.f32 %v1749_v24  ;;  %v8692_v17 = vpop.f32.mrf.mxu1  ;;  %v10073_v43 = vld [vmem:[#allocation31_spill] sm:$0xff]  ;;  %v8709_v19 = vrot.slane %v8697_v26, %v10074_v45 }
 0x3b7   :  { %10069 = vst [vmem:[#allocation54_spill] sm:$0xff] %v8692_v17  ;;  %v7233_v54 = vpop.eup %7232  ;;  %7256 = vrcp.f32 %v1857_v61  ;;  %v1265_v24 = vadd.f32 %v10073_v43, %v247_v4  ;;  %v1657_v17 = vadd.f32 %v8475_v16, %v8480_v60  ;;  %v10077_v43 = vld [vmem:[#allocation33_spill] sm:$0xff]  ;;  %v1860_v45 = vadd.f32 1.0, %v7231_v40  ;;  %v262_v40 = vld [vmem:[#allocation7 + $0x188] sm:$0xff] }
 0x3b8   :  { %v7235_v35 = vpop.eup %7234  ;;  %v1905_v36 = vmul.f32 %v7233_v54, %v1649_v41  ;;  %v8702_v32 = vpop.f32.mrf.mxu1  ;;  %7258 = vtanh.f32 %v1919_v5  ;;  %v10076_v5 = vld [vmem:[#allocation38_spill] sm:$0xff]  ;;  %v8718_v16 = vadd.f32 %v10077_v43, %v256_v22  ;;  %10078 = vst [vmem:[#allocation33_spill] sm:$0xff] %v8720_v42  ;;  %v10081_v22 = vld [vmem:[#allocation37_spill] sm:$0xff]  ;;  %v10082_v42 = vld [vmem:[#allocation40_spill] sm:$0xff]  ;;  %v2197_v2 = vadd.f32 %v10087_v14, %v262_v40 }
 0x3b9   :  { %10072 = vst [vmem:[#allocation29_spill] sm:$0xff] %v8702_v32  ;;  %v7237_v8 = vpop.eup %7236  ;;  %7260 = vtanh.f32 %v1920_v30  ;;  %v8715_v54 = vrot.slane %v8697_v26, %v10076_v5  ;;  %v253_v32 = vld [vmem:[#allocation7 + $0x148] sm:$0xff]  ;;  %v8729_v43 = vadd.f32 %v10081_v22, %v259_v28 }
 0x3ba   :  { %v7239_v61 = vpop.eup %7238  ;;  %v1921_v27 = vadd.f32 %v1905_v36, %v1262_v12  ;;  %v1906_v52 = vmul.f32 %v7237_v8, %v1652_v15  ;;  %7262 = vrcp.f32 %v1858_v10  ;;  %v8711_v41 = vpop.f32.mrf.mxu1  ;;  %v1660_v15 = vadd.f32 %v8487_v18, %v8480_v60  ;;  %v10080_v8 = vld [vmem:[#allocation35_spill] sm:$0xff] }
 0x3bb   :  { %10075 = vst [vmem:[#allocation31_spill] sm:$0xff] %v8711_v41  ;;  %v7241_v4 = vpop.eup %7240  ;;  %7264 = vrcp.f32 %v1859_v63  ;;  %v1750_v30 = vadd.f32 1.0, %v7239_v61  ;;  %v1950_v12 = vsub.f32 1.0, %v8650_v39  ;;  %v1270_v5 = vadd.f32 %v10080_v8, %v250_v34  ;;  %v261_v63 = vld [vmem:[#allocation7 + $0x180] sm:$0xff]  ;;  %v10084_v8 = vld [vmem:[#allocation42_spill] sm:$0xff] }
 0x3bc   :  { %v7243_v3 = vpop.eup %7242  ;;  %7266 = vtanh.f32 %v1921_v27  ;;  %v1922_v10 = vadd.f32 %v1906_v52, %v1265_v24  ;;  %v8725_v36 = vpop.f32.mrf.mxu1  ;;  %v1273_v31 = vadd.f32 %v10082_v42, %v253_v32  ;;  %v1665_v18 = vadd.f32 %v8471_v50, %v8480_v60  ;;  %v264_v24 = vld [vmem:[#allocation7 + $0x198] sm:$0xff]  ;;  %v265_v27 = vld [vmem:[#allocation7 + $0x1a0] sm:$0xff]  ;;  %v267_v52 = vld [vmem:[#allocation7 + $0x1b0] sm:$0xff] }
 0x3bd   :  { %10079 = vst [vmem:[#allocation56_spill] sm:$0xff] %v8725_v36  ;;  %v1907_v61 = vmul.f32 %v7243_v3, %v1657_v17  ;;  %7268 = vrcp.f32 %v1750_v30  ;;  %v8731_v41 = vpop.eup %7244  ;;  %v1966_v36 = vmul.f32 %v7241_v4, %v1950_v12  ;;  %v8740_v22 = vadd.f32 %v10084_v8, %v8480_v60  ;;  %v8742_v17 = vpop.f32.mrf.mxu0  ;;  %v10086_v30 = vld [vmem:[#allocation43_spill] sm:$0xff]  ;;  %v10088_v8 = vld [vmem:[#allocation45_spill] sm:$0xff] }
 0x3be   :  { %7270 = vtanh.f32 %v1922_v10  ;;  %v8736_v34 = vpop.f32.mrf.mxu1  ;;  %v1861_v3 = vadd.f32 1.0, %v7235_v35  ;;  %10085 = vst [vmem:[#allocation37_spill] sm:$0xff] %v8742_v17  ;;  %v2195_v50 = vadd.f32 %v10086_v30, %v261_v63  ;;  %v1947_v4 = vsub.f32 1.0, %v8586_v1  ;;  %v10089_v35 = vld [vmem:[#allocation46_spill] sm:$0xff] }
 0x3bf   :  { %10083 = vst [vmem:[#allocation35_spill] sm:$0xff] %v8736_v34  ;;  %v7247_v28 = vpop.eup %7246  ;;  %7272 = vrcp.f32 %v1860_v45  ;;  %v1923_v42 = vadd.f32 %v1907_v61, %v1270_v5  ;;  %v2199_v60 = vadd.f32 %v8507_v51, %v264_v24  ;;  %v8751_v45 = vadd.f32 %v10088_v8, %v265_v27  ;;  %v8763_v24 = vpop.f32.mrf.mxu0 }
 0x3c0   :  { %v7249_v32 = vpop.eup %7248  ;;  %v1908_v10 = vmul.f32 %v7247_v28, %v1660_v15  ;;  %v8747_v12 = vpop.f32.mrf.mxu1  ;;  %v8754_v17 = vadd.f32 %v10089_v35, %v267_v52  ;;  %v1948_v5 = vsub.f32 1.0, %v8617_v46  ;;  %v8758_v14 = vadd.f32 %v8650_v39, %v1966_v36 }
 0x3c1   :  { %v7251_v34 = vpop.eup %7250  ;;  %7274 = vtanh.f32 %v1923_v42  ;;  %v8761_v30 = vadd.f32 %v8528_v33, %v268_v9  ;;  %v1951_v39 = vsub.f32 1.0, %v8688_v53  ;;  %v1952_v9 = vsub.f32 1.0, %v8731_v41 }
 0x3c2   :  { %v7253_v63 = vpop.eup %7252  ;;  %v1963_v61 = vmul.f32 %v7251_v34, %v1947_v4  ;;  %10090 = vst [vmem:[#allocation40_spill] sm:$0xff] %v8758_v14  ;;  %v2583_v15 = vpop.f32.mrf.mxu1  ;;  %v1924_v40 = vadd.f32 %v1908_v10, %v1273_v31  ;;  %7276 = vrcp.f32 %v1861_v3 }
 0x3c3   :  { %v7255_v28 = vpop.eup %7254  ;;  %v1964_v51 = vmul.f32 %v7253_v63, %v1948_v5  ;;  %v2584_v27 = vadd.f32 %v2583_v15, %v8709_v19 }
 0x3c4   :  { %v7257_v52 = vpop.eup %7256  ;;  %v1909_v8 = vmul.f32 %v7255_v28, %v1665_v18  ;;  %v8767_v34 = vadd.f32 %v8586_v1, %v1963_v61  ;;  %v2585_v36 = vpop.f32.mrf.mxu1  ;;  %7278 = vtanh.f32 %v1924_v40  ;;  %v1862_v18 = vadd.f32 1.0, %v7249_v32 }
 0x3c5   :  { %v7259_v31 = vpop.eup %7258  ;;  %v8771_v42 = vadd.f32 %v8617_v46, %v1964_v51  ;;  %v2759_v33 = vadd.f32 %v2584_v27, %v2195_v50  ;;  %v2586_v3 = vadd.f32 %v2585_v36, %v8715_v54  ;;  %v8778_v1 = vpack.c.bf16 %v8758_v14, %v8686_v57  ;;  %v8784_v50 = vpop.f32.mrf.mxu0  ;;  %v10109_v57 = vld [vmem:[#allocation37_spill] sm:$0xff] }
 0x3c6   :  { %10091 = vst [vmem:[#allocation42_spill] sm:$0xff] %v8767_v34  ;;  %v7261_v10 = vpop.eup %7260  ;;  %v1925_v4 = vadd.f32 %v1909_v8, %v8718_v16  ;;  %v1967_v35 = vmul.f32 %v7259_v31, %v1951_v39  ;;  %v2587_v5 = vpop.f32.mrf.mxu1  ;;  %v1953_v27 = vsub.f32 1.0, %v7257_v52 }
 0x3c7   :  { %10092 = vst [vmem:[#allocation43_spill] sm:$0xff] %v8771_v42  ;;  %v7263_v63 = vpop.eup %7262  ;;  %v8782_v46 = vpack.c.bf16 %v8771_v42, %v8767_v34  ;;  %v6008_v61 = vmul.f32 -1.442695, %v2759_v33  ;;  %v1968_v15 = vmul.f32 %v7261_v10, %v1952_v9  ;;  %v2871_v40 = vadd.f32 %v2586_v3, %v2197_v2  ;;  %v270_v33 = vld [vmem:[#allocation7 + $0x1c8] sm:$0xff] }
 0x3c8   :  { %v8786_v28 = vpop.eup %7264  ;;  %7280 = vtanh.f32 %v1925_v4  ;;  %v8789_v16 = vadd.f32 %v8688_v53, %v1967_v35  ;;  %v2588_v32 = vadd.f32 %v2587_v5, %v8709_v19  ;;  %v2589_v51 = vpop.f32.mrf.mxu1  ;;  %v1954_v3 = vsub.f32 1.0, %v7263_v63 }
 0x3c9   :  { %v7267_v8 = vpop.eup %7266  ;;  %6629 = vmatprep.mubr.bf16.mxu0 %v8782_v46  ;;  %7282 = vpow2.f32 %v6008_v61  ;;  %v8794_v39 = vadd.f32 %v8731_v41, %v1968_v15  ;;  %v6024_v36 = vmul.f32 -1.442695, %v2871_v40  ;;  %v2590_v2 = vadd.f32 %v2589_v51, %v8715_v54  ;;  %v8799_v5 = vpop.f32.mrf.mxu0 }
 0x3ca   :  { %10093 = vst [vmem:[#allocation44_spill] sm:$0xff] %v8789_v16  ;;  %v7269_v31 = vpop.eup %7268  ;;  %7284 = vrcp.f32 %v1862_v18  ;;  %6630 = vmatmul.mubr.bf16.gmra.mxu0 %v8778_v1  ;;  %v2760_v53 = vadd.f32 %v2588_v32, %v2199_v60  ;;  %v2593_v9 = vpop.f32.mrf.mxu1  ;;  %v1969_v10 = vmul.f32 %v7267_v8, %v1953_v27  ;;  %v2209_v27 = vadd.f32 %v8536_v47, %v270_v33 }
 0x3cb   :  { %10094 = vst [vmem:[#allocation45_spill] sm:$0xff] %v8794_v39  ;;  %v7271_v4 = vpop.eup %7270  ;;  %v1910_v35 = vmul.f32 %v7269_v31, %v8740_v22  ;;  %v8803_v41 = vpack.c.bf16 %v8794_v39, %v8789_v16  ;;  %7286 = vpow2.f32 %v6024_v36  ;;  %v2872_v61 = vadd.f32 %v2590_v2, %v8751_v45  ;;  %v271_v36 = vld [vmem:[#allocation7 + $0x1d0] sm:$0xff]  ;;  %v8817_v47 = vpop.f32.mrf.mxu0 }
 0x3cc   :  { %v7273_v15 = vpop.eup %7272  ;;  %v6009_v18 = vmul.f32 -1.442695, %v2760_v53  ;;  %v2594_v40 = vadd.f32 %v2593_v9, %v8709_v19  ;;  %v1970_v60 = vmul.f32 %v7271_v4, %v1954_v3  ;;  %v8807_v32 = vadd.f32 %v7257_v52, %v1969_v10  ;;  %v2595_v51 = vpop.f32.mrf.mxu1  ;;  %v273_v3 = vld [vmem:[#allocation7 + $0x1e0] sm:$0xff] }
 0x3cd   :  { %v1926_v22 = vadd.f32 %v1910_v35, %v8729_v43  ;;  %6633 = vmatprep.mubr.bf16.mxu0 %v8803_v41  ;;  %v6025_v8 = vmul.f32 -1.442695, %v2872_v61  ;;  %v2596_v31 = vadd.f32 %v2595_v51, %v8715_v54  ;;  %v1955_v52 = vsub.f32 1.0, %v8786_v28 }
 0x3ce   :  { %10095 = vst [vmem:[#allocation46_spill] sm:$0xff] %v8807_v32  ;;  %7288 = vpow2.f32 %v6009_v18  ;;  %v2761_v45 = vadd.f32 %v2594_v40, %v8754_v17  ;;  %v8814_v2 = vadd.f32 %v7263_v63, %v1970_v60  ;;  %v2597_v53 = vpop.f32.mrf.mxu1  ;;  %v7275_v9 = vpop.eup %7274  ;;  %v1956_v10 = vsub.f32 1.0, %v7273_v15  ;;  %v274_v60 = vld [vmem:[#allocation7 + $0x1e8] sm:$0xff] }
 0x3cf   :  { %7290 = vtanh.f32 %v1926_v22  ;;  %v2873_v43 = vadd.f32 %v2596_v31, %v8761_v30  ;;  %v2598_v33 = vadd.f32 %v2597_v53, %v8709_v19  ;;  %v7277_v4 = vpop.eup %7276  ;;  %v1971_v61 = vmul.f32 %v7275_v9, %v1955_v52 }
 0x3d0   :  { %10096 = vst [vmem:[#allocation57_spill] sm:$0xff] %v8814_v2  ;;  %7292 = vpow2.f32 %v6025_v8  ;;  %v6010_v35 = vmul.f32 -1.442695, %v2761_v45  ;;  %v8823_v17 = vpack.c.bf16 %v8814_v2, %v8807_v32  ;;  %v2599_v63 = vpop.f32.mrf.mxu1  ;;  %v2211_v40 = vadd.f32 %v8542_v25, %v271_v36  ;;  %v8832_v2 = vpop.f32.mrf.mxu0 }
 0x3d1   :  { %v7279_v18 = vpop.eup %7278  ;;  %v6026_v51 = vmul.f32 -1.442695, %v2873_v43  ;;  %v2762_v22 = vadd.f32 %v2598_v33, %v2209_v27  ;;  %v2600_v30 = vadd.f32 %v2599_v63, %v8715_v54  ;;  %v2215_v31 = vadd.f32 %v8547_v59, %v273_v3  ;;  %v276_v33 = vld [vmem:[#allocation7 + $0x1f8] sm:$0xff] }
 0x3d2   :  { %7294 = vpow2.f32 %v6010_v35  ;;  %6634 = vmatmul.mubr.bf16.gmra.mxu0 %v8823_v17  ;;  %v2603_v8 = vpop.f32.mrf.mxu1  ;;  %v1972_v45 = vmul.f32 %v7279_v18, %v1956_v10  ;;  %v8830_v53 = vadd.f32 %v8786_v28, %v1971_v61  ;;  %v2217_v27 = vadd.f32 %v8551_v0, %v274_v60  ;;  %v277_v61 = vld [vmem:[#allocation7 + $0x200] sm:$0xff]  ;;  %v8843_v60 = vpop.f32.mrf.mxu0 }
 0x3d3   :  { %7296 = vpow2.f32 %v6026_v51  ;;  %v6011_v52 = vmul.f32 -1.442695, %v2762_v22  ;;  %v2874_v25 = vadd.f32 %v2600_v30, %v2211_v40  ;;  %v2604_v36 = vadd.f32 %v2603_v8, %v8709_v19 }
 0x3d4   :  { %10097 = vst [vmem:[#allocation58_spill] sm:$0xff] %v8830_v53  ;;  %v8836_v9 = vadd.f32 %v7273_v15, %v1972_v45  ;;  %v2605_v59 = vpop.f32.mrf.mxu1  ;;  %v1957_v3 = vsub.f32 1.0, %v7277_v4  ;;  %v279_v15 = vld [vmem:[#allocation7 + $0x210] sm:$0xff] }
 0x3d5   :  { %v7281_v43 = vpop.eup %7280  ;;  %7298 = vpow2.f32 %v6011_v52  ;;  %v6027_v10 = vmul.f32 -1.442695, %v2874_v25  ;;  %v2763_v35 = vadd.f32 %v2604_v36, %v2215_v31  ;;  %v2606_v28 = vadd.f32 %v2605_v59, %v8715_v54  ;;  %v280_v52 = vld [vmem:[#allocation7 + $0x218] sm:$0xff] }
 0x3d6   :  { %10098 = vst [vmem:[#allocation59_spill] sm:$0xff] %v8836_v9  ;;  %v7283_v63 = vpop.eup %7282  ;;  %v8841_v18 = vpack.c.bf16 %v8836_v9, %v8830_v53  ;;  %v2607_v40 = vpop.f32.mrf.mxu1  ;;  %v1973_v51 = vmul.f32 %v7281_v43, %v1957_v3  ;;  %v2219_v31 = vadd.f32 %v8563_v11, %v276_v33  ;;  %v2221_v3 = vadd.f32 %v8567_v58, %v277_v61  ;;  %v283_v58 = vld [vmem:[#allocation7 + $0x230] sm:$0xff] }
 0x3d7   :  { %v7285_v0 = vpop.eup %7284  ;;  %v2823_v22 = vadd.f32 1.0, %v7283_v63  ;;  %7300 = vpow2.f32 %v6027_v10  ;;  %v6012_v30 = vmul.f32 -1.442695, %v2763_v35  ;;  %v2875_v8 = vadd.f32 %v2606_v28, %v2217_v27  ;;  %v8852_v10 = vpop.f32.mrf.mxu0  ;;  %v10100_v35 = vld [vmem:[#allocation41_spill] sm:$0xff] }
 0x3d8   :  { %v7287_v45 = vpop.eup %7286  ;;  %6637 = vmatprep.mubr.bf16.mxu0 %v8841_v18  ;;  %v2608_v25 = vadd.f32 %v2607_v40, %v8709_v19  ;;  %v2609_v36 = vpop.f32.mrf.mxu1  ;;  %v8848_v59 = vadd.f32 %v7277_v4, %v1973_v51  ;;  %v2225_v27 = vadd.f32 %v8573_v56, %v279_v15  ;;  %v8857_v28 = vrot.slane %v8697_v26, %v10100_v35  ;;  %v282_v51 = vld [vmem:[#allocation7 + $0x228] sm:$0xff] }
 0x3d9   :  { %7302 = vrcp.f32 %v2823_v22  ;;  %v6028_v43 = vmul.f32 -1.442695, %v2875_v8  ;;  %v2610_v63 = vadd.f32 %v2609_v36, %v8715_v54  ;;  %v2227_v4 = vadd.f32 %v8584_v49, %v280_v52  ;;  %v2696_v39 = vpop.f32.mrf.mxu0 }
 0x3da   :  { %10099 = vst [vmem:[#allocation60_spill] sm:$0xff] %v8848_v59  ;;  %7304 = vpow2.f32 %v6012_v30  ;;  %v2764_v11 = vadd.f32 %v2608_v25, %v2219_v31  ;;  %v2613_v33 = vpop.f32.mrf.mxu1  ;;  %v1958_v8 = vsub.f32 1.0, %v7285_v0  ;;  %v2935_v9 = vadd.f32 1.0, %v7287_v45 }
 0x3db   :  { %v7289_v40 = vpop.eup %7288  ;;  %v2876_v61 = vadd.f32 %v2610_v63, %v2221_v3  ;;  %v2614_v22 = vadd.f32 %v2613_v33, %v8709_v19  ;;  %7306 = vpow2.f32 %v6028_v43  ;;  %v2229_v49 = vadd.f32 %v8590_v7, %v282_v51  ;;  %v285_v3 = vld [vmem:[#allocation7 + $0x240] sm:$0xff]  ;;  %v8873_v51 = vpop.f32.mrf.mxu0 }
 0x3dc   :  { %v7291_v36 = vpop.eup %7290  ;;  %v2824_v53 = vadd.f32 1.0, %v7289_v40  ;;  %v6013_v56 = vmul.f32 -1.442695, %v2764_v11  ;;  %v2615_v15 = vpop.f32.mrf.mxu1  ;;  %v2231_v52 = vadd.f32 %v8596_v29, %v283_v58  ;;  %v2235_v7 = vadd.f32 %v8602_v48, %v285_v3 }
 0x3dd   :  { %v7293_v30 = vpop.eup %7292  ;;  %v6029_v31 = vmul.f32 -1.442695, %v2876_v61  ;;  %v2765_v25 = vadd.f32 %v2614_v22, %v2225_v27  ;;  %v1974_v26 = vmul.f32 %v7291_v36, %v1958_v8  ;;  %v2616_v32 = vadd.f32 %v2615_v15, %v8715_v54  ;;  %v286_v36 = vld [vmem:[#allocation7 + $0x248] sm:$0xff] }
 0x3de   :  { %7308 = vrcp.f32 %v2824_v53  ;;  %v2617_v63 = vpop.f32.mrf.mxu1  ;;  %v2936_v45 = vadd.f32 1.0, %v7293_v30  ;;  %v2697_v53 = vadd.f32 %v2696_v39, %v8857_v28  ;;  %v288_v39 = vld [vmem:[#allocation7 + $0x258] sm:$0xff] }
 0x3df   :  { %v7295_v33 = vpop.eup %7294  ;;  %7310 = vpow2.f32 %v6013_v56  ;;  %v8864_v43 = vadd.f32 %v7285_v0, %v1974_v26  ;;  %v2877_v11 = vadd.f32 %v2616_v32, %v2227_v4  ;;  %v6014_v61 = vmul.f32 -1.442695, %v2765_v25  ;;  %v263_v56 = vld [vmem:[#allocation7 + $0x190] sm:$0xff] }
 0x3e0   :  { %v7297_v40 = vpop.eup %7296  ;;  %7312 = vrcp.f32 %v2935_v9  ;;  %v2825_v27 = vadd.f32 1.0, %v7295_v33  ;;  %v2618_v22 = vadd.f32 %v2617_v63, %v8709_v19  ;;  %v2619_v8 = vpop.f32.mrf.mxu1  ;;  %v10102_v63 = vmov 0  }
 0x3e1   :  { %10101 = vst [vmem:[#allocation41_spill] sm:$0xff] %v8864_v43  ;;  %7314 = vpow2.f32 %v6029_v31  ;;  %v8870_v29 = vpack.c.bf16 %v8864_v43, %v8848_v59  ;;  %v2937_v32 = vadd.f32 1.0, %v7297_v40  ;;  %v2620_v4 = vadd.f32 %v2619_v8, %v8715_v54 }
 0x3e2   :  { %v7299_v0 = vpop.eup %7298  ;;  %7316 = vrcp.f32 %v2825_v27  ;;  %v2766_v9 = vadd.f32 %v2618_v22, %v2229_v49  ;;  %v2623_v58 = vpop.f32.mrf.mxu1  ;;  %v6030_v15 = vmul.f32 -1.442695, %v2877_v11  ;;  %v269_v22 = vld [vmem:[#allocation7 + $0x1c0] sm:$0xff]  ;;  %v2237_v11 = vadd.f32 %v8610_v23, %v286_v36 }
 0x3e3   :  { %7318 = vrcp.f32 %v2936_v45  ;;  %v2826_v48 = vadd.f32 1.0, %v7299_v0  ;;  %6638 = vmatmul.mubr.bf16.gmra.mxu0 %v8870_v29  ;;  %v2624_v30 = vadd.f32 %v2623_v58, %v8709_v19  ;;  %v2878_v26 = vadd.f32 %v2620_v4, %v2231_v52  ;;  %v2699_v45 = vpop.f32.mrf.mxu0  ;;  %v272_v0 = vld [vmem:[#allocation7 + $0x1d8] sm:$0xff] }
 0x3e4   :  { %v7301_v31 = vpop.eup %7300  ;;  %7320 = vpow2.f32 %v6014_v61  ;;  %v6015_v25 = vmul.f32 -1.442695, %v2766_v9  ;;  %v2625_v3 = vpop.f32.mrf.mxu1  ;;  %3514 = vmatprep.mubr.bf16.mxu0 %v10102_v63  ;;  %v2308_v8 = vadd.f32 %v8612_v6, %v263_v56  ;;  %v2239_v4 = vadd.f32 %v8621_v62, %v288_v39 }
 0x3e5   :  { %7322 = vrcp.f32 %v2826_v48  ;;  %v2938_v49 = vadd.f32 1.0, %v7301_v31  ;;  %v2767_v33 = vadd.f32 %v2624_v30, %v2235_v7  ;;  %v2626_v40 = vadd.f32 %v2625_v3, %v8715_v54  ;;  %v289_v7 = vld [vmem:[#allocation7 + $0x260] sm:$0xff]  ;;  %v266_v30 = vld [vmem:[#allocation7 + $0x1a8] sm:$0xff]  ;;  %v291_v31 = vld [vmem:[#allocation7 + $0x270] sm:$0xff] }
 0x3e6   :  { %v7303_v27 = vpop.eup %7302  ;;  %7324 = vrcp.f32 %v2937_v32  ;;  %v6031_v61 = vmul.f32 -1.442695, %v2878_v26  ;;  %v2627_v9 = vpop.f32.mrf.mxu1  ;;  %v2700_v6 = vadd.f32 %v2699_v45, %v8857_v28  ;;  %v8886_v32 = vadd.f32 %v8604_v44, %v269_v22  ;;  %v292_v44 = vld [vmem:[#allocation7 + $0x278] sm:$0xff]  ;;  %v275_v22 = vld [vmem:[#allocation7 + $0x1f0] sm:$0xff] }
 0x3e7   :  { %v7305_v52 = vpop.eup %7304  ;;  %7326 = vpow2.f32 %v6030_v15  ;;  %v6016_v58 = vmul.f32 -1.442695, %v2767_v33  ;;  %v2983_v48 = vmul.f32 %v7303_v27, %v2697_v53  ;;  %v2628_v43 = vadd.f32 %v2627_v9, %v8709_v19  ;;  %v281_v9 = vld [vmem:[#allocation7 + $0x220] sm:$0xff] }
 0x3e8   :  { %v2827_v3 = vadd.f32 1.0, %v7305_v52  ;;  %7328 = vpow2.f32 %v6015_v25  ;;  %v2629_v23 = vpop.f32.mrf.mxu1  ;;  %v7307_v36 = vpop.eup %7306  ;;  %v8889_v56 = vadd.f32 %v8623_v20, %v272_v0  ;;  %v2879_v62 = vadd.f32 %v2626_v40, %v2237_v11 }
 0x3e9   :  { %7330 = vrcp.f32 %v2938_v49  ;;  %v2939_v53 = vadd.f32 1.0, %v7307_v36  ;;  %v2999_v15 = vadd.f32 %v2983_v48, %v2308_v8  ;;  %v2768_v39 = vadd.f32 %v2628_v43, %v2239_v4  ;;  %v8896_v8 = vpop.f32.mrf.mxu0  ;;  %v10103_v48 = vld [vmem:[#allocation51_spill] sm:$0xff] }
 0x3ea   :  { %7332 = vpow2.f32 %v6031_v61  ;;  %v2633_v26 = vpop.f32.mrf.mxu1  ;;  %v2241_v33 = vadd.f32 %v8634_v55, %v289_v7  ;;  %v2311_v27 = vadd.f32 %v8636_v13, %v266_v30  ;;  %v2245_v45 = vadd.f32 %v8652_v38, %v291_v31  ;;  %v294_v55 = vld [vmem:[#allocation7 + $0x288] sm:$0xff]  ;;  %v284_v13 = vld [vmem:[#allocation7 + $0x238] sm:$0xff]  ;;  %v295_v30 = vld [vmem:[#allocation7 + $0x290] sm:$0xff] }
 0x3eb   :  { %v7309_v25 = vpop.eup %7308  ;;  %7334 = vpow2.f32 %v6016_v58  ;;  %v2705_v49 = vadd.f32 %v8852_v10, %v8857_v28  ;;  %v6017_v40 = vmul.f32 -1.442695, %v2768_v39  ;;  %v6032_v61 = vmul.f32 -1.442695, %v2879_v62  ;;  %v278_v31 = vld [vmem:[#allocation7 + $0x208] sm:$0xff] }
 0x3ec   :  { %v7311_v20 = vpop.eup %7310  ;;  %7336 = vrcp.f32 %v2827_v3  ;;  %v2984_v11 = vmul.f32 %v7309_v25, %v2700_v6  ;;  %v2635_v43 = vpop.f32.mrf.mxu1  ;;  %v2634_v52 = vadd.f32 %v2633_v26, %v8709_v19  ;;  %v8902_v58 = vadd.f32 %v8642_v21, %v281_v9  ;;  %v10104_v39 = vld [vmem:[#allocation32_spill] sm:$0xff]  ;;  %v10105_v26 = vld [vmem:[#allocation27_spill] sm:$0xff] }
 0x3ed   :  { %v8898_v0 = vpop.eup %7312  ;;  %7338 = vrcp.f32 %v2939_v53  ;;  %v2828_v38 = vadd.f32 1.0, %v7311_v20  ;;  %v8905_v10 = vadd.f32 %v8670_v37, %v292_v44  ;;  %v8908_v7 = vadd.f32 %v10103_v48, %v275_v22  ;;  %v297_v9 = vld [vmem:[#allocation7 + $0x2a0] sm:$0xff]  ;;  %v2712_v22 = vpop.f32.mrf.mxu0 }
 0x3ee   :  { %v7315_v4 = vpop.eup %7314  ;;  %7340 = vtanh.f32 %v2999_v15  ;;  %v2637_v3 = vpop.f32.mrf.mxu1  ;;  %v2708_v36 = vadd.f32 %v8873_v51, %v8857_v28  ;;  %v2630_v62 = vadd.f32 %v2629_v23, %v8715_v54  ;;  %v3000_v53 = vadd.f32 %v2984_v11, %v2311_v27  ;;  %v10107_v51 = vld [vmem:[#allocation28_spill] sm:$0xff]  ;;  %v300_v27 = vld [vmem:[#allocation7 + $0x2b8] sm:$0xff]  ;;  %v301_v11 = vld [vmem:[#allocation7 + $0x2c0] sm:$0xff] }
 0x3ef   :  { %v7317_v6 = vpop.eup %7316  ;;  %7342 = vrcp.f32 %v2828_v38  ;;  %v2249_v37 = vadd.f32 %v10104_v39, %v294_v55  ;;  %v8917_v25 = vadd.f32 %v10105_v26, %v284_v13  ;;  %v10106_v38 = vld [vmem:[#allocation55_spill] sm:$0xff]  ;;  %v8923_v59 = vadd.f32 %v10107_v51, %v278_v31  ;;  %v298_v23 = vld [vmem:[#allocation7 + $0x2a8] sm:$0xff] }
 0x3f0   :  { %v8913_v21 = vpop.eup %7318  ;;  %v2985_v44 = vmul.f32 %v7317_v6, %v2705_v49  ;;  %7344 = vpow2.f32 %v6017_v40  ;;  %v2639_v15 = vpop.f32.mrf.mxu1  ;;  %v8920_v48 = vadd.f32 %v10106_v38, %v295_v30  ;;  %v2769_v55 = vadd.f32 %v2634_v52, %v2245_v45  ;;  %v10108_v30 = vld [vmem:[#allocation33_spill] sm:$0xff] }
 0x3f1   :  { %v7321_v20 = vpop.eup %7320  ;;  %7346 = vpow2.f32 %v6032_v61  ;;  %v2940_v13 = vadd.f32 1.0, %v7315_v4  ;;  %v2638_v40 = vadd.f32 %v2637_v3, %v8709_v19  ;;  %v2255_v38 = vadd.f32 %v10108_v30, %v297_v9  ;;  %v303_v52 = vld [vmem:[#allocation7 + $0x2d0] sm:$0xff]  ;;  %v6600_v4 = vpop.f32.mrf.mxu0 }
 0x3f2   :  { %v7323_v39 = vpop.eup %7322  ;;  %v2829_v26 = vadd.f32 1.0, %v7321_v20  ;;  %v3001_v49 = vadd.f32 %v2985_v44, %v8886_v32  ;;  %v2643_v6 = vpop.f32.mrf.mxu1  ;;  %v2880_v31 = vadd.f32 %v2630_v62, %v2241_v33  ;;  %7348 = vtanh.f32 %v3000_v53 }
 0x3f3   :  { %v8927_v16 = vpop.eup %7324  ;;  %v2986_v14 = vmul.f32 %v7323_v39, %v2708_v36  ;;  %v2257_v42 = vadd.f32 %v10109_v57, %v298_v23  ;;  %v2259_v45 = vadd.f32 %v8763_v24, %v300_v27  ;;  %v8933_v61 = vadd.f32 %v8784_v50, %v301_v11 }
 0x3f4   :  { %v7327_v51 = vpop.eup %7326  ;;  %7350 = vrcp.f32 %v2829_v26  ;;  %v2645_v32 = vpop.f32.mrf.mxu1  ;;  %v2636_v36 = vadd.f32 %v2635_v43, %v8715_v54  ;;  %v2644_v33 = vadd.f32 %v2643_v6, %v8709_v19  ;;  %v6018_v24 = vmul.f32 -1.442695, %v2769_v55 }
 0x3f5   :  { %v7329_v3 = vpop.eup %7328  ;;  %7352 = vtanh.f32 %v3001_v49  ;;  %v3002_v44 = vadd.f32 %v2986_v14, %v8889_v56  ;;  %v2770_v53 = vadd.f32 %v2638_v40, %v2249_v37  ;;  %v2265_v20 = vadd.f32 %v8799_v5, %v303_v52  ;;  %v2715_v37 = vpop.f32.mrf.mxu0 }
 0x3f6   :  { %v8938_v62 = vpop.eup %7330  ;;  %7354 = vrcp.f32 %v2940_v13  ;;  %v2830_v57 = vadd.f32 1.0, %v7329_v3  ;;  %v2647_v50 = vpop.f32.mrf.mxu1  ;;  %v6033_v23 = vmul.f32 -1.442695, %v2880_v31  ;;  %v2640_v27 = vadd.f32 %v2639_v15, %v8715_v54 }
 0x3f7   :  { %v7333_v9 = vpop.eup %7332  ;;  %7356 = vtanh.f32 %v3002_v44  ;;  %v2721_v14 = vadd.f32 %v8896_v8, %v8857_v28  ;;  %v2713_v56 = vadd.f32 %v2712_v22, %v8857_v28  ;;  %v8946_v43 = vadd.f32 %v6600_v4, %v8857_v28  ;;  %v8955_v4 = vpop.f32.mrf.mxu0 }
 0x3f8   :  { %v7335_v11 = vpop.eup %7334  ;;  %7358 = vrcp.f32 %v2830_v57  ;;  %v2649_v55 = vpop.f32.mrf.mxu1  ;;  %v2941_v13 = vadd.f32 1.0, %v7327_v51  ;;  %v2771_v5 = vadd.f32 %v2644_v33, %v2255_v38  ;;  %v2648_v49 = vadd.f32 %v2647_v50, %v8709_v19 }
 0x3f9   :  { %v7337_v39 = vpop.eup %7336  ;;  %v2831_v26 = vadd.f32 1.0, %v7335_v11  ;;  %7360 = vpow2.f32 %v6018_v24  ;;  %v2881_v15 = vadd.f32 %v2636_v36, %v8905_v10  ;;  %v6019_v6 = vmul.f32 -1.442695, %v2770_v53 }
 0x3fa   :  { %v8949_v40 = vpop.eup %7338  ;;  %v2646_v8 = vadd.f32 %v2645_v32, %v8715_v54  ;;  %v2653_v22 = vpop.f32.mrf.mxu1  ;;  %v2942_v31 = vadd.f32 1.0, %v7333_v9  ;;  %7362 = vpow2.f32 %v6033_v23  ;;  %v2882_v52 = vadd.f32 %v2640_v27, %v8920_v48 }
 0x3fb   :  { %v7341_v30 = vpop.eup %7340  ;;  %v2716_v51 = vadd.f32 %v2715_v37, %v8857_v28  ;;  %7364 = vrcp.f32 %v2831_v26  ;;  %v2987_v3 = vmul.f32 %v7337_v39, %v2713_v56  ;;  %v3031_v44 = vsub.f32 1.0, %v8898_v0  ;;  %v2728_v56 = vpop.f32.mrf.mxu0 }
 0x3fc   :  { %v7343_v38 = vpop.eup %7342  ;;  %v3032_v10 = vsub.f32 1.0, %v8913_v21  ;;  %7366 = vrcp.f32 %v2941_v13  ;;  %v6020_v32 = vmul.f32 -1.442695, %v2771_v5  ;;  %v2772_v33 = vadd.f32 %v2648_v49, %v2259_v45  ;;  %v8960_v24 = vpop.f32.mrf.mxu1 }
 0x3fd   :  { %v7345_v36 = vpop.eup %7344  ;;  %v2654_v57 = vadd.f32 %v2653_v22, %v8709_v19  ;;  %v6034_v50 = vmul.f32 -1.442695, %v2881_v15  ;;  %7368 = vpow2.f32 %v6019_v6  ;;  %v2883_v9 = vadd.f32 %v2646_v8, %v2257_v42 }
 0x3fe   :  { %v8962_v48 = vpop.eup %7346  ;;  %v2832_v53 = vadd.f32 1.0, %v7345_v36  ;;  %7370 = vrcp.f32 %v2942_v31  ;;  %v6035_v23 = vmul.f32 -1.442695, %v2882_v52  ;;  %v2988_v27 = vmul.f32 %v7343_v38, %v2716_v51  ;;  %v2657_v42 = vpop.f32.mrf.mxu1  ;;  %v306_v52 = vld [vmem:[#allocation7 + $0x2e8] sm:$0xff] }
 0x3ff   :  { %v3047_v11 = vmul.f32 %v7341_v30, %v3031_v44  ;;  %v7349_v37 = vpop.eup %7348  ;;  %v3033_v39 = vsub.f32 1.0, %v8927_v16  ;;  %v3034_v45 = vsub.f32 1.0, %v8938_v62  ;;  %v3003_v13 = vadd.f32 %v2987_v3, %v8908_v7  ;;  %v8974_v3 = vpop.f32.mrf.mxu0 }
 0x400   :  { %7372 = vrcp.f32 %v2832_v53  ;;  %v6021_v5 = vmul.f32 -1.442695, %v2772_v33  ;;  %v2650_v49 = vadd.f32 %v2649_v55, %v8715_v54  ;;  %v2773_v15 = vadd.f32 %v2654_v57, %v2265_v20 }
 0x401   :  { %v7351_v26 = vpop.eup %7350  ;;  %7374 = vpow2.f32 %v6020_v32  ;;  %v6036_v22 = vmul.f32 -1.442695, %v2883_v9  ;;  %v3048_v30 = vmul.f32 %v7349_v37, %v3032_v10  ;;  %v3004_v38 = vadd.f32 %v2988_v27, %v8923_v59  ;;  %v304_v37 = vld [vmem:[#allocation7 + $0x2d8] sm:$0xff] }
 0x402   :  { %v7353_v6 = vpop.eup %7352  ;;  %7376 = vpow2.f32 %v6034_v50  ;;  %v2989_v8 = vmul.f32 %v7351_v26, %v2721_v14  ;;  %v8972_v7 = vadd.f32 %v8898_v0, %v3047_v11  ;;  %v2658_v14 = vadd.f32 %v2657_v42, %v8709_v19  ;;  %v2659_v11 = vpop.f32.mrf.mxu1 }
 0x403   :  { %v8968_v31 = vpop.eup %7354  ;;  %v3049_v51 = vmul.f32 %v7353_v6, %v3033_v39  ;;  %7378 = vpow2.f32 %v6035_v23  ;;  %v8979_v44 = vadd.f32 %v8913_v21, %v3048_v30  ;;  %v2884_v32 = vadd.f32 %v2650_v49, %v8933_v61  ;;  %v2731_v21 = vpop.f32.mrf.mxu0 }
 0x404   :  { %10110 = vst [vmem:[#allocation51_spill] sm:$0xff] %v8972_v7  ;;  %v7357_v55 = vpop.eup %7356  ;;  %v3005_v20 = vadd.f32 %v2989_v8, %v8902_v58  ;;  %7380 = vtanh.f32 %v3003_v13  ;;  %v6022_v59 = vmul.f32 -1.442695, %v2773_v15  ;;  %v2269_v0 = vadd.f32 %v8832_v2, %v306_v52  ;;  %v290_v52 = vld [vmem:[#allocation7 + $0x268] sm:$0xff] }
 0x405   :  { %10111 = vst [vmem:[#allocation32_spill] sm:$0xff] %v8979_v44  ;;  %v7359_v10 = vpop.eup %7358  ;;  %v3050_v36 = vmul.f32 %v7357_v55, %v3034_v45  ;;  %7382 = vpow2.f32 %v6021_v5  ;;  %v8986_v58 = vpack.c.bf16 %v8979_v44, %v8972_v7  ;;  %v2729_v19 = vadd.f32 %v2728_v56, %v8857_v28  ;;  %v307_v45 = vld [vmem:[#allocation7 + $0x2f0] sm:$0xff] }
 0x406   :  { %7384 = vpow2.f32 %v6036_v22  ;;  %v2990_v33 = vmul.f32 %v7359_v10, %v8946_v43  ;;  %v7361_v57 = vpop.eup %7360  ;;  %v8990_v53 = vadd.f32 %v8927_v16, %v3049_v51  ;;  %v2774_v43 = vadd.f32 %v2658_v14, %v2269_v0  ;;  %v10114_v22 = vld [vmem:[#allocation52_spill] sm:$0xff] }
 0x407   :  { %7386 = vtanh.f32 %v3005_v20  ;;  %v8993_v61 = vadd.f32 %v8938_v62, %v3050_v36  ;;  %v7363_v50 = vpop.eup %7362  ;;  %v2833_v2 = vadd.f32 1.0, %v7361_v57  ;;  %6657 = vmatprep.mubr.bf16.mxu1 %v8986_v58  ;;  %v6037_v27 = vmul.f32 -1.442695, %v2884_v32  ;;  %v287_v62 = vld [vmem:[#allocation7 + $0x250] sm:$0xff] }
 0x408   :  { %10112 = vst [vmem:[#allocation27_spill] sm:$0xff] %v8990_v53  ;;  %v3006_v9 = vadd.f32 %v2990_v33, %v8917_v25  ;;  %7388 = vtanh.f32 %v3004_v38  ;;  %v7365_v23 = vpop.eup %7364  ;;  %v2732_v39 = vadd.f32 %v2731_v21, %v8857_v28  ;;  %v2943_v13 = vadd.f32 1.0, %v8962_v48  ;;  %v9015_v33 = vpop.f32.mrf.mxu0 }
 0x409   :  { %10113 = vst [vmem:[#allocation55_spill] sm:$0xff] %v8993_v61  ;;  %7390 = vpow2.f32 %v6022_v59  ;;  %v8999_v56 = vpack.c.bf16 %v8993_v61, %v8990_v53  ;;  %v9001_v16 = vpop.eup %7366  ;;  %v2656_v26 = vadd.f32 %v8960_v24, %v8715_v54  ;;  %v6023_v15 = vmul.f32 -1.442695, %v2774_v43  ;;  %v312_v53 = vld [vmem:[#allocation8 + $0x18] sm:$0xff] }
 0x40a   :  { %7392 = vrcp.f32 %v2833_v2  ;;  %v7369_v25 = vpop.eup %7368  ;;  %v2660_v42 = vadd.f32 %v2659_v11, %v8715_v54  ;;  %v2991_v6 = vmul.f32 %v7365_v23, %v2729_v19  ;;  %v2340_v30 = vadd.f32 %v10114_v22, %v287_v62  ;;  %v10115_v54 = vld [vmem:[#allocation29_spill] sm:$0xff]  ;;  %v293_v19 = vld [vmem:[#allocation7 + $0x280] sm:$0xff] }
 0x40b   :  { %7394 = vtanh.f32 %v3006_v9  ;;  %6658 = vmatmul.mubr.bf16.vlgmr.msra.gmra.mxu1 %v8999_v56  ;;  %v9008_v5 = vpop.eup %7370  ;;  %v2834_v49 = vadd.f32 1.0, %v7369_v25  ;;  %v2267_v51 = vadd.f32 %v8817_v47, %v304_v37  ;;  %v2271_v38 = vadd.f32 %v8843_v60, %v307_v45  ;;  %v2744_v37 = vpop.f32.mrf.mxu0  ;;  %v10116_v25 = vld [vmem:[#allocation30_spill] sm:$0xff] }
 0x40c   :  { %7396 = vpow2.f32 %v6037_v27  ;;  %v2944_v24 = vadd.f32 1.0, %v7363_v50  ;;  %v2343_v32 = vadd.f32 %v10115_v54, %v290_v52  ;;  %v3007_v0 = vadd.f32 %v2991_v6, %v2340_v30 }
 0x40d   :  { %v7373_v8 = vpop.eup %7372  ;;  %7398 = vrcp.f32 %v2834_v49  ;;  %v2885_v10 = vadd.f32 %v2656_v26, %v2267_v51  ;;  %v2886_v59 = vadd.f32 %v2660_v42, %v2271_v38  ;;  %v3035_v21 = vsub.f32 1.0, %v8949_v40  ;;  %v9032_v38 = vpop.f32.mrf.mxu0 }
 0x40e   :  { %v7375_v48 = vpop.eup %7374  ;;  %v2992_v55 = vmul.f32 %v7373_v8, %v2732_v39  ;;  %7400 = vrcp.f32 %v2943_v13  ;;  %v2737_v43 = vadd.f32 %v8955_v4, %v8857_v28  ;;  %v3036_v11 = vsub.f32 1.0, %v8968_v31 }
 0x40f   :  { %v7377_v20 = vpop.eup %7376  ;;  %v2835_v14 = vadd.f32 1.0, %v7375_v48  ;;  %7402 = vpow2.f32 %v6023_v15  ;;  %v6038_v9 = vmul.f32 -1.442695, %v2885_v10  ;;  %v6039_v27 = vmul.f32 -1.442695, %v2886_v59 }
 0x410   :  { %v7379_v36 = vpop.eup %7378  ;;  %v3008_v60 = vadd.f32 %v2992_v55, %v2343_v32  ;;  %v2348_v45 = vadd.f32 %v10116_v25, %v293_v19  ;;  %v2740_v13 = vadd.f32 %v8974_v3, %v8857_v28  ;;  %v3037_v26 = vsub.f32 1.0, %v9001_v16 }
 0x411   :  { %v7381_v47 = vpop.eup %7380  ;;  %7404 = vrcp.f32 %v2835_v14  ;;  %v2945_v15 = vadd.f32 1.0, %v7377_v20  ;;  %v3038_v42 = vsub.f32 1.0, %v9008_v5  ;;  %v2946_v8 = vadd.f32 1.0, %v7379_v36 }
 0x412   :  { %v7383_v57 = vpop.eup %7382  ;;  %7406 = vrcp.f32 %v2944_v24  ;;  %v3051_v62 = vmul.f32 %v7381_v47, %v3035_v21  ;;  %v296_v24 = vld [vmem:[#allocation7 + $0x298] sm:$0xff]  ;;  %v2745_v36 = vadd.f32 %v2744_v37, %v8857_v28  ;;  %v302_v37 = vld [vmem:[#allocation7 + $0x2c8] sm:$0xff] }
 0x413   :  { %v7385_v50 = vpop.eup %7384  ;;  %v2836_v2 = vadd.f32 1.0, %v7383_v57  ;;  %7408 = vtanh.f32 %v3007_v0  ;;  %v10121_v0 = vld [vmem:[#allocation54_spill] sm:$0xff]  ;;  %v299_v57 = vld [vmem:[#allocation7 + $0x2b0] sm:$0xff] }
 0x414   :  { %v7387_v23 = vpop.eup %7386  ;;  %v9027_v48 = vadd.f32 %v8949_v40, %v3051_v62  ;;  %v2947_v40 = vadd.f32 1.0, %v7385_v50  ;;  %v2351_v47 = vadd.f32 %v10121_v0, %v296_v24 }
 0x415   :  { %v7389_v39 = vpop.eup %7388  ;;  %7410 = vrcp.f32 %v2836_v2  ;;  %v3053_v30 = vmul.f32 %v7387_v23, %v3037_v26  ;;  %v10122_v23 = vld [vmem:[#allocation56_spill] sm:$0xff] }
 0x416   :  { %v7391_v49 = vpop.eup %7390  ;;  %7412 = vtanh.f32 %v3008_v60  ;;  %v3052_v4 = vmul.f32 %v7389_v39, %v3036_v11  ;;  %10117 = vst [vmem:[#allocation28_spill] sm:$0xff] %v9027_v48  ;;  %v2747_v60 = vpop.f32.mrf.mxu0 }
 0x417   :  { %v7393_v6 = vpop.eup %7392  ;;  %v2837_v22 = vadd.f32 1.0, %v7391_v49  ;;  %7414 = vpow2.f32 %v6038_v9  ;;  %v9040_v32 = vadd.f32 %v9001_v16, %v3053_v30  ;;  %v2748_v62 = vadd.f32 %v2747_v60, %v8857_v28  ;;  %v305_v30 = vld [vmem:[#allocation7 + $0x2e0] sm:$0xff] }
 0x418   :  { %v7395_v52 = vpop.eup %7394  ;;  %7416 = vpow2.f32 %v6039_v27  ;;  %v2993_v51 = vmul.f32 %v7393_v6, %v2737_v43  ;;  %v9030_v3 = vadd.f32 %v8968_v31, %v3052_v4  ;;  %v2356_v27 = vadd.f32 %v10122_v23, %v299_v57  ;;  %v10126_v23 = vld [vmem:[#allocation35_spill] sm:$0xff] }
 0x419   :  { %7418 = vrcp.f32 %v2837_v22  ;;  %v3054_v55 = vmul.f32 %v7395_v52, %v3038_v42  ;;  %v7397_v20 = vpop.eup %7396  ;;  %10119 = vst [vmem:[#allocation37_spill] sm:$0xff] %v9040_v32  ;;  %v2359_v4 = vadd.f32 %v8747_v12, %v302_v37  ;;  %v2753_v52 = vadd.f32 %v9015_v33, %v8857_v28 }
 0x41a   :  { %10118 = vst [vmem:[#allocation33_spill] sm:$0xff] %v9030_v3  ;;  %v3009_v14 = vadd.f32 %v2993_v51, %v2348_v45  ;;  %v9036_v10 = vpack.c.bf16 %v9030_v3, %v9027_v48  ;;  %v7399_v54 = vpop.eup %7398  ;;  %7420 = vrcp.f32 %v2945_v15  ;;  %v2948_v2 = vadd.f32 1.0, %v7397_v20 }
 0x41b   :  { %v9043_v31 = vadd.f32 %v9008_v5, %v3054_v55  ;;  %v7401_v59 = vpop.eup %7400  ;;  %7422 = vrcp.f32 %v2946_v8  ;;  %v2994_v19 = vmul.f32 %v7399_v54, %v2740_v13  ;;  %v10125_v54 = vld [vmem:[#allocation31_spill] sm:$0xff] }
 0x41c   :  { %6661 = vmatprep.mubr.bf16.mxu1 %v9036_v10  ;;  %v7403_v21 = vpop.eup %7402  ;;  %7424 = vtanh.f32 %v3009_v14  ;;  %v3039_v39 = vsub.f32 1.0, %v7401_v59  ;;  %v2364_v12 = vadd.f32 %v10125_v54, %v305_v30 }
 0x41d   :  { %10120 = vst [vmem:[#allocation52_spill] sm:$0xff] %v9043_v31  ;;  %v9049_v50 = vpack.c.bf16 %v9043_v31, %v9040_v32  ;;  %v2838_v9 = vadd.f32 1.0, %v7403_v21  ;;  %v3010_v5 = vadd.f32 %v2994_v19, %v2351_v47  ;;  %7426 = vrcp.f32 %v2947_v40 }
 0x41e   :  { %v7405_v16 = vpop.eup %7404 }
 0x41f   :  { %v7407_v43 = vpop.eup %7406  ;;  %v2995_v11 = vmul.f32 %v7405_v16, %v2745_v36  ;;  %6662 = vmatmul.mubr.bf16.gmra.mxu1 %v9049_v50  ;;  %7428 = vrcp.f32 %v2838_v9  ;;  %v2756_v16 = vadd.f32 %v9032_v38, %v8857_v28 }
 0x420   :  { %v7409_v25 = vpop.eup %7408  ;;  %7430 = vtanh.f32 %v3010_v5  ;;  %v3040_v26 = vsub.f32 1.0, %v7407_v43 }
 0x421   :  { %v3011_v45 = vadd.f32 %v2995_v11, %v2356_v27  ;;  %7432 = vrcp.f32 %v2948_v2  ;;  %v3055_v49 = vmul.f32 %v7409_v25, %v3039_v39 }
 0x422   :  { %v7411_v13 = vpop.eup %7410 }
 0x423   :  { %v7413_v15 = vpop.eup %7412  ;;  %7434 = vtanh.f32 %v3011_v45  ;;  %v2996_v42 = vmul.f32 %v7411_v13, %v2748_v62  ;;  %v9057_v55 = vadd.f32 %v7401_v59, %v3055_v49  ;;  %v308_v59 = vld [vmem:[#allocation7 + $0x2f8] sm:$0xff] }
 0x424   :  { %v7415_v6 = vpop.eup %7414  ;;  %v3056_v8 = vmul.f32 %v7413_v15, %v3040_v26  ;;  %v2367_v27 = vadd.f32 %v10126_v23, %v308_v59 }
 0x425   :  { %v7417_v22 = vpop.eup %7416  ;;  %v3012_v51 = vadd.f32 %v2996_v42, %v2359_v4  ;;  %10123 = vst [vmem:[#allocation29_spill] sm:$0xff] %v9057_v55  ;;  %v2949_v40 = vadd.f32 1.0, %v7415_v6 }
 0x426   :  { %v7419_v24 = vpop.eup %7418  ;;  %v9059_v20 = vadd.f32 %v7407_v43, %v3056_v8  ;;  %v2950_v57 = vadd.f32 1.0, %v7417_v22 }
 0x427   :  { %v2997_v14 = vmul.f32 %v7419_v24, %v2753_v52  ;;  %7436 = vtanh.f32 %v3012_v51  ;;  %v7421_v36 = vpop.eup %7420 }
 0x428   :  { %10124 = vst [vmem:[#allocation30_spill] sm:$0xff] %v9059_v20  ;;  %v9064_v0 = vpack.c.bf16 %v9059_v20, %v9057_v55  ;;  %v7423_v47 = vpop.eup %7422  ;;  %v3041_v60 = vsub.f32 1.0, %v7421_v36  ;;  %7438 = vrcp.f32 %v2949_v40 }
 0x429   :  { %v7425_v19 = vpop.eup %7424  ;;  %v3013_v33 = vadd.f32 %v2997_v14, %v2364_v12  ;;  %7440 = vrcp.f32 %v2950_v57  ;;  %v3042_v9 = vsub.f32 1.0, %v7423_v47 }
 0x42a   :  { %6665 = vmatprep.mubr.bf16.mxu1 %v9064_v0  ;;  %v7427_v21 = vpop.eup %7426  ;;  %v3057_v5 = vmul.f32 %v7425_v19, %v3041_v60 }
 0x42b   :  { %7442 = vtanh.f32 %v3013_v33  ;;  %v3043_v26 = vsub.f32 1.0, %v7427_v21 }
 0x42c   :  { %v7429_v2 = vpop.eup %7428  ;;  %v9070_v45 = vadd.f32 %v7421_v36, %v3057_v5  ;;  %v7000_v5 = vld [vmem:[#allocation16 + $0xac] ss:$12 sps:$4 sm:$0xff]  }
 0x42d   :  { %v7431_v43 = vpop.eup %7430  ;;  %v2998_v11 = vmul.f32 %v7429_v2, %v2756_v16  ;;  %3763 = vmatprep.subr.bf16.mxu1 %v7000_v5 }
 0x42e   :  { %v7433_v62 = vpop.eup %7432  ;;  %v3058_v37 = vmul.f32 %v7431_v43, %v3042_v9  ;;  %10127 = vst [vmem:[#allocation54_spill] sm:$0xff] %v9070_v45  ;;  %v6998_v9 = vld [vmem:[#allocation16 + $0xa8] ss:$12 sps:$4 sm:$0xff]  }
 0x42f   :  { %v3014_v25 = vadd.f32 %v2998_v11, %v2367_v27  ;;  %v3044_v38 = vsub.f32 1.0, %v7433_v62  ;;  %v7003_v43 = vld [vmem:[#allocation16 + $0x94] ss:$12 sps:$4 sm:$0xff]   ;;  %3764 = vmatpush1.bf16.msra.mxu1 %v6998_v9  ;;  %v7001_v27 = vld [vmem:[#allocation16 + $0x90] ss:$12 sps:$4 sm:$0xff]  }
 0x430   :  { %v7435_v39 = vpop.eup %7434  ;;  %v9072_v13 = vadd.f32 %v7423_v47, %v3058_v37  ;;  %3765 = vmatprep.subr.bf16.mxu1 %v7003_v43  ;;  %v7022_v9 = vld [vmem:[#allocation16 + $0x1c] ss:$12 sps:$4 sm:$0xff]  }
 0x431   :  { %7444 = vtanh.f32 %v3014_v25  ;;  %v3059_v49 = vmul.f32 %v7435_v39, %v3043_v26  ;;  %v7004_v39 = vld [vmem:[#allocation16 + $0x78] ss:$12 sps:$4 sm:$0xff]  }
 0x432   :  { %10128 = vst [vmem:[#allocation56_spill] sm:$0xff] %v9072_v13  ;;  %v9076_v28 = vpack.c.bf16 %v9072_v13, %v9070_v45  ;;  %v7010_v26 = vld [vmem:[#allocation16 + $0x64] ss:$12 sps:$4 sm:$0xff]  }
 0x433   :  { %v9079_v42 = vadd.f32 %v7427_v21, %v3059_v49  ;;  %3766 = vmatpush1.bf16.msra.mxu1 %v7001_v27  ;;  %v7008_v49 = vld [vmem:[#allocation16 + $0x60] ss:$12 sps:$4 sm:$0xff]   ;;  %v7020_v27 = vld [vmem:[#allocation16 + $0x18] ss:$12 sps:$4 sm:$0xff]  }
 0x434   :  { %v7437_v15 = vpop.eup %7436  ;;  %6666 = vmatmul.mubr.bf16.gmra.mxu1 %v9076_v28 }
 0x435   :  { %v3060_v4 = vmul.f32 %v7437_v15, %v3044_v38  ;;  %10129 = vst [vmem:[#allocation31_spill] sm:$0xff] %v9079_v42  ;;  %v7439_v8 = vpop.eup %7438 }
 0x436   :  { %v7441_v30 = vpop.eup %7440  ;;  %v3045_v51 = vsub.f32 1.0, %v7439_v8 }
 0x437   :  { %v9081_v6 = vadd.f32 %v7433_v62, %v3060_v4  ;;  %v3046_v24 = vsub.f32 1.0, %v7441_v30  ;;  %v7006_v62 = vld [vmem:[#allocation16 + $0x7c] ss:$12 sps:$4 sm:$0xff]   ;;  %v7014_v4 = vld [vmem:[#allocation16 + $0x4c] ss:$12 sps:$4 sm:$0xff]  }
 0x438   :  { %v7443_v52 = vpop.eup %7442  ;;  %3767 = vmatprep.subr.bf16.mxu1 %v7006_v62 }
 0x439   :  { %10130 = vst [vmem:[#allocation35_spill] sm:$0xff] %v9081_v6  ;;  %v9085_v22 = vpack.c.bf16 %v9081_v6, %v9079_v42  ;;  %v3061_v14 = vmul.f32 %v7443_v52, %v3045_v51  ;;  %3768 = vmatpush1.bf16.msra.mxu1 %v7004_v39  ;;  %v7012_v52 = vld [vmem:[#allocation16 + $0x48] ss:$12 sps:$4 sm:$0xff]  }
 0x43a   :  { %3769 = vmatprep.subr.bf16.mxu1 %v7010_v26  ;;  %v7018_v51 = vld [vmem:[#allocation16 + $0x34] ss:$12 sps:$4 sm:$0xff]  }
 0x43b   :  { %6669 = vmatprep.mubr.bf16.mxu1 %v9085_v22  ;;  %v9088_v12 = vadd.f32 %v7439_v8, %v3061_v14 }
 0x43d   :  { %10131 = vst [vmem:[#allocation61_spill] sm:$0xff] %v9088_v12  ;;  %3770 = vmatpush1.bf16.msra.mxu1 %v7008_v49 }
 0x43e   :  { %v7445_v36 = vpop.eup %7444  ;;  %3771 = vmatprep.subr.bf16.mxu1 %v7014_v4 }
 0x43f   :  { %v3062_v54 = vmul.f32 %v7445_v36, %v3046_v24 }
 0x441   :  { %v9090_v40 = vadd.f32 %v7441_v30, %v3062_v54  ;;  %3772 = vmatpush1.bf16.msra.mxu1 %v7012_v52  ;;  %v7016_v54 = vld [vmem:[#allocation16 + $0x30] ss:$12 sps:$4 sm:$0xff]  }
 0x442   :  { %3773 = vmatprep.subr.bf16.mxu1 %v7018_v51 }
 0x443   :  { %10132 = vst [vmem:[#allocation62_spill] sm:$0xff] %v9090_v40  ;;  %v9094_v47 = vpack.c.bf16 %v9090_v40, %v9088_v12 }
 0x445   :  { %6670 = vmatmul.mubr.bf16.gmra.mxu1 %v9094_v47 }
 0x446   :  { %3795 = vmatprep.mubr.bf16.mxu1 %v10102_v63  ;;  %3774 = vmatpush1.bf16.msra.mxu1 %v7016_v54 }
 0x447   :  { %3775 = vmatprep.subr.bf16.mxu1 %v7022_v9 }
 0x44a   :  { %3776 = vmatpush1.bf16.msra.mxu1 %v7020_v27 }
 0x46d   :  { %v9098_v57 = vpop.f32.mrf.mxu0 }
 0x46f   :  { %v9100_v19 = vpop.f32.mrf.mxu0 }
 0x471   :  { %v9104_v59 = vpop.f32.mrf.mxu0 }
 0x473   :  { %v9108_v21 = vpop.f32.mrf.mxu0 }
 0x48a   :  { %v9112_v2 = vpop.f32.mrf.mxu0 }
 0x48c   :  { %v9116_v11 = vpop.f32.mrf.mxu0 }
 0x48e   :  { %v6632_v25 = vpop.f32.mrf.mxu0 }
 0x490   :  { %v3204_v15 = vpop.f32.mrf.mxu0 }
 0x492   :  { %v6635_v30 = vpop.f32.mrf.mxu0 }
 0x494   :  { %v3217_v14 = vpop.f32.mrf.mxu0 }
 0x496   :  { %v6636_v5 = vpop.f32.mrf.mxu0 }
 0x497   :  { %v3253_v27 = vpack.c.bf16 %v6636_v5, %v6635_v30  ;;  %v7032_v30 = vld [vmem:[#allocation16 + $0x8] ss:$12 sps:$4 sm:$0xff]  }
 0x498   :  { %v3220_v62 = vpop.f32.mrf.mxu0 }
 0x499   :  { %v3252_v31 = vpack.c.bf16 %v3220_v62, %v3217_v14 }
 0x4a3   :  { %v6639_v26 = vpop.f32.mrf.mxu0 }
 0x4a5   :  { %v3233_v40 = vpop.f32.mrf.mxu0 }
 0x4a7   :  { %v6640_v6 = vpop.f32.mrf.mxu0 }
 0x4a8   :  { %v3255_v52 = vpack.c.bf16 %v6640_v6, %v6639_v26 }
 0x4a9   :  { %v3236_v51 = vpop.f32.mrf.mxu0 }
 0x4aa   :  { %v3254_v54 = vpack.c.bf16 %v3236_v51, %v3233_v40  ;;  %v7011_v40 = vld [vmem:[#allocation16 + $0x98] ss:$12 sps:$4 sm:$0xff]   ;;  %v7038_v51 = vld [vmem:[#allocation17 + $0x7c] ss:$12 sps:$4 sm:$0xff]  }
 0x4cb   :  { %v9102_v33 = vpop.f32.mrf.mxu1 }
 0x4cd   :  { %v9106_v60 = vpop.f32.mrf.mxu1 }
 0x4cf   :  { %v9110_v16 = vpop.f32.mrf.mxu1 }
 0x4d1   :  { %v9114_v23 = vpop.f32.mrf.mxu1 }
 0x4df   :  { %v6663_v37 = vpop.f32.mrf.mxu1 }
 0x4e1   :  { %v3379_v38 = vpop.f32.mrf.mxu1 }
 0x4e3   :  { %v6664_v8 = vpop.f32.mrf.mxu1 }
 0x4e4   :  { %v3429_v32 = vpack.c.bf16 %v6664_v8, %v6663_v37  ;;  %v7024_v37 = vld [vmem:[#allocation16] ss:$12 sps:$4 sm:$0xff]  }
 0x4e5   :  { %v3382_v24 = vpop.f32.mrf.mxu1  ;;  %v7031_v8 = vld [vmem:[#allocation17 + $0xac] ss:$12 sps:$4 sm:$0xff]  }
 0x4e6   :  { %v3428_v6 = vpack.c.bf16 %v3382_v24, %v3379_v38  ;;  %v7027_v38 = vld [vmem:[#allocation16 + $0x38] ss:$12 sps:$4 sm:$0xff]   ;;  %v7045_v24 = vld [vmem:[#allocation17 + $0xb0] ss:$12 sps:$4 sm:$0xff]  }
 0x4f4   :  { %v6667_v36 = vpop.f32.mrf.mxu1 }
 0x4f6   :  { %v3395_v43 = vpop.f32.mrf.mxu1 }
 0x4f8   :  { %v6668_v39 = vpop.f32.mrf.mxu1 }
 0x4f9   :  { %v3431_v9 = vpack.c.bf16 %v6668_v39, %v6667_v36  ;;  %v7035_v39 = vld [vmem:[#allocation17 + $0x94] ss:$12 sps:$4 sm:$0xff]  }
 0x4fa   :  { %v3398_v49 = vpop.f32.mrf.mxu1 }
 0x4fb   :  { %v3430_v55 = vpack.c.bf16 %v3398_v49, %v3395_v43  ;;  %v7029_v43 = vld [vmem:[#allocation17 + $0xa8] ss:$12 sps:$4 sm:$0xff]  }
 0x505   :  { %v6671_v4 = vpop.f32.mrf.mxu1 }
 0x507   :  { %v3411_v12 = vpop.f32.mrf.mxu1 }
 0x509   :  { %v6672_v42 = vpop.f32.mrf.mxu1 }
 0x50a   :  { %v3433_v13 = vpack.c.bf16 %v6672_v42, %v6671_v4  ;;  %v3251_v42 = vpack.c.bf16 %v6632_v25, %v9112_v2  ;;  %v6995_v2 = vld [vmem:[#allocation5 + $0x28] sm:$0xff]   ;;  %v7026_v25 = vld [vmem:[#allocation16 + $0x4] ss:$12 sps:$4 sm:$0xff]  }
 0x50b   :  { %v3414_v45 = vpop.f32.mrf.mxu1  ;;  %3777 = vmatprep.subr.bf16.mxu1 %v7026_v25  ;;  %v7055_v25 = vld [vmem:[#allocation17 + $0x50] ss:$12 sps:$4 sm:$0xff]  }
 0x50c   :  { %v3432_v20 = vpack.c.bf16 %v3414_v45, %v3411_v12  ;;  %3482 = vmatprep.subr.bf16.mxu0 %v3433_v13  ;;  %v3250_v45 = vpack.c.bf16 %v3204_v15, %v9116_v11  ;;  %v3249_v13 = vpack.c.bf16 %v9104_v59, %v9098_v57  ;;  %v6990_v12 = vld [vmem:[#allocation5] sm:$0xff]   ;;  %v6991_v57 = vld [vmem:[#allocation5 + $0x8] sm:$0xff]   ;;  %v6997_v11 = vld [vmem:[#allocation5 + $0x38] sm:$0xff]   ;;  %3778 = vmatpush1.bf16.msra.mxu1 %v7024_v37 }
 0x50d   :  { %3483 = vmatpush1.bf16.msra.mxu0 %v3255_v52  ;;  %v7019_v59 = vld [vmem:[#allocation16 + $0x68] ss:$12 sps:$4 sm:$0xff]   ;;  %v7028_v15 = vld [vmem:[#allocation16 + $0x20] ss:$12 sps:$4 sm:$0xff]   ;;  %4150 = vmatprep.subr.bf16.mxu1 %v7031_v8  ;;  %v7033_v52 = vld [vmem:[#allocation17 + $0x90] ss:$12 sps:$4 sm:$0xff]  }
 0x50e   :  { %3484 = vmatprep.subr.bf16.mxu0 %v3432_v20  ;;  %v3427_v20 = vpack.c.bf16 %v9110_v16, %v9102_v33  ;;  %v7015_v33 = vld [vmem:[#allocation16 + $0x80] ss:$12 sps:$4 sm:$0xff]  }
 0x50f   :  { %v6994_v16 = vld [vmem:[#allocation5 + $0x20] sm:$0xff]  }
 0x511   :  { %3485 = vmatpush1.bf16.msra.mxu0 %v3254_v54 }
 0x512   :  { %3486 = vmatprep.subr.bf16.mxu0 %v3431_v9 }
 0x515   :  { %3487 = vmatpush1.bf16.msra.mxu0 %v3253_v27  ;;  %v7036_v27 = vld [vmem:[#allocation17 + $0x78] ss:$12 sps:$4 sm:$0xff]  }
 0x516   :  { %3488 = vmatprep.subr.bf16.mxu0 %v3430_v55  ;;  %v3426_v55 = vpack.c.bf16 %v9114_v23, %v9106_v60  ;;  %v6992_v60 = vld [vmem:[#allocation5 + $0x10] sm:$0xff]  }
 0x517   :  { %v6996_v23 = vld [vmem:[#allocation5 + $0x30] sm:$0xff]  }
 0x519   :  { %3489 = vmatpush1.bf16.msra.mxu0 %v3252_v31  ;;  %v3248_v31 = vpack.c.bf16 %v9108_v21, %v9100_v19  ;;  %v7023_v19 = vld [vmem:[#allocation16 + $0x50] ss:$12 sps:$4 sm:$0xff]  }
 0x51a   :  { %3490 = vmatprep.subr.bf16.mxu0 %v3429_v32  ;;  %v7007_v32 = vld [vmem:[#allocation16 + $0xb0] ss:$12 sps:$4 sm:$0xff]  }
 0x51b   :  { %v6993_v21 = vld [vmem:[#allocation5 + $0x18] sm:$0xff]  }
 0x51d   :  { %3491 = vmatpush1.bf16.msra.mxu0 %v3251_v42 }
 0x51e   :  { %3492 = vmatprep.subr.bf16.mxu0 %v3428_v6  ;;  %v7041_v6 = vld [vmem:[#allocation17 + $0x64] ss:$12 sps:$4 sm:$0xff]  }
 0x521   :  { %3493 = vmatpush1.bf16.msra.mxu0 %v3250_v45 }
 0x522   :  { %3494 = vmatprep.subr.bf16.mxu0 %v3427_v20  ;;  %v7046_v20 = vld [vmem:[#allocation17 + $0x98] ss:$12 sps:$4 sm:$0xff]  }
 0x525   :  { %3495 = vmatpush1.bf16.msra.mxu0 %v3249_v13 }
 0x526   :  { %3496 = vmatprep.subr.bf16.mxu0 %v3426_v55 }
 0x529   :  { %3497 = vmatpush1.bf16.msra.mxu0 %v3248_v31  ;;  %v7044_v31 = vld [vmem:[#allocation17 + $0x4c] ss:$12 sps:$4 sm:$0xff]  }
 0x52a   :  { %6673 = vmatprep.subr.bf16.mxu0 %v7007_v32 }
 0x52c   :  { %3515 = vmatmul.mubr.bf16.vlgmr.msra.gmra.mxu0 %v6990_v12 }
 0x52d   :  { %3524 = vmatprep.mubr.bf16.mxu0 %v10102_v63  ;;  %6674 = vmatpush3.bf16.msra.mxu0 %v7007_v32  ;;  %v7039_v32 = vld [vmem:[#allocation17 + $0x60] ss:$12 sps:$4 sm:$0xff]  }
 0x52e   :  { %6675 = vmatprep.subr.bf16.mxu0 %v7011_v40 }
 0x531   :  { %6676 = vmatpush3.bf16.msra.mxu0 %v7011_v40  ;;  %v7050_v40 = vld [vmem:[#allocation17 + $0x80] ss:$12 sps:$4 sm:$0xff]  }
 0x532   :  { %6677 = vmatprep.subr.bf16.mxu0 %v7015_v33 }
 0x534   :  { %3525 = vmatmul.mubr.bf16.gmra.mxu0 %v6991_v57  ;;  %v7042_v57 = vld [vmem:[#allocation17 + $0x48] ss:$12 sps:$4 sm:$0xff]  }
 0x535   :  { %3534 = vmatprep.mubr.bf16.mxu0 %v10102_v63  ;;  %6678 = vmatpush3.bf16.msra.mxu0 %v7015_v33 }
 0x536   :  { %6679 = vmatprep.subr.bf16.mxu0 %v7019_v59 }
 0x539   :  { %6680 = vmatpush3.bf16.msra.mxu0 %v7019_v59 }
 0x53a   :  { %6681 = vmatprep.subr.bf16.mxu0 %v7023_v19 }
 0x53c   :  { %3535 = vmatmul.mubr.bf16.gmra.mxu0 %v6992_v60 }
 0x53d   :  { %3544 = vmatprep.mubr.bf16.mxu0 %v10102_v63  ;;  %6682 = vmatpush3.bf16.msra.mxu0 %v7023_v19  ;;  %v7049_v19 = vld [vmem:[#allocation17 + $0x34] ss:$12 sps:$4 sm:$0xff]  }
 0x53e   :  { %6683 = vmatprep.subr.bf16.mxu0 %v7027_v38 }
 0x541   :  { %6684 = vmatpush3.bf16.msra.mxu0 %v7027_v38 }
 0x542   :  { %6685 = vmatprep.subr.bf16.mxu0 %v7028_v15 }
 0x544   :  { %3545 = vmatmul.mubr.bf16.gmra.mxu0 %v6993_v21  ;;  %v7051_v21 = vld [vmem:[#allocation17 + $0x68] ss:$12 sps:$4 sm:$0xff]  }
 0x545   :  { %3554 = vmatprep.mubr.bf16.mxu0 %v10102_v63  ;;  %6686 = vmatpush3.bf16.msra.mxu0 %v7028_v15  ;;  %v7052_v15 = vld [vmem:[#allocation17 + $0x18] ss:$12 sps:$4 sm:$0xff]  }
 0x546   :  { %6687 = vmatprep.subr.bf16.mxu0 %v7032_v30 }
 0x549   :  { %6688 = vmatpush3.bf16.msra.mxu0 %v7032_v30  ;;  %v7059_v30 = vld [vmem:[#allocation17 + $0x4] ss:$12 sps:$4 sm:$0xff]  }
 0x54a   :  { %6705 = vmatprep.subr.bf16.mxu0 %v7045_v24 }
 0x54c   :  { %3555 = vmatmul.mubr.bf16.gmra.mxu0 %v6994_v16 }
 0x54d   :  { %3564 = vmatprep.mubr.bf16.mxu0 %v10102_v63 }
 0x554   :  { %3565 = vmatmul.mubr.bf16.gmra.mxu0 %v6995_v2 }
 0x555   :  { %3574 = vmatprep.mubr.bf16.mxu0 %v10102_v63 }
 0x55c   :  { %3575 = vmatmul.mubr.bf16.gmra.mxu0 %v6996_v23  ;;  %v7047_v23 = vld [vmem:[#allocation17 + $0x30] ss:$12 sps:$4 sm:$0xff]  }
 0x55d   :  { %3584 = vmatprep.mubr.bf16.mxu0 %v10102_v63 }
 0x564   :  { %3585 = vmatmul.mubr.bf16.gmra.mxu0 %v6997_v11  ;;  %v7054_v11 = vld [vmem:[#allocation17 + $0x1c] ss:$12 sps:$4 sm:$0xff]  }
 0x5ec   :  { %v3516_v14 = vpop.f32.mrf.mxu0 }
 0x5ee   :  { %v3518_v36 = vpop.f32.mrf.mxu0 }
 0x5f0   :  { %v3520_v5 = vpop.f32.mrf.mxu0 }
 0x5f1   :  { %v3595_v62 = vpack.c.bf16 %v3520_v5, %v3516_v14  ;;  %v7056_v14 = vld [vmem:[#allocation17 + $0x38] ss:$12 sps:$4 sm:$0xff]  }
 0x5f2   :  { %v3522_v26 = vpop.f32.mrf.mxu0 }
 0x5f3   :  { %v9135_v49 = vpack.c.bf16 %v3522_v26, %v3518_v36  ;;  %3796 = vmatmul.mubr.bf16.vlgmr.msra.gmra.mxu1 %v3595_v62  ;;  %6689 = vmatprep.mubr.bf16.mxu0 %v3595_v62  ;;  %v7065_v62 = vld [vmem:[#allocation16 + $0x170] ss:$12 sps:$4 sm:$0xff]   ;;  %v7060_v26 = vld [vmem:[#allocation17 + $0x20] ss:$12 sps:$4 sm:$0xff]  }
 0x5f4   :  { %v3526_v4 = vpop.f32.mrf.mxu0  ;;  %4151 = vmatpush1.bf16.msra.mxu1 %v7029_v43  ;;  %3805 = vmatprep.mubr.bf16.mxu1 %v10102_v63  ;;  %v7057_v43 = vld [vmem:[#allocation17] ss:$12 sps:$4 sm:$0xff]  }
 0x5f5   :  { %4152 = vmatprep.subr.bf16.mxu1 %v7035_v39 }
 0x5f6   :  { %v3528_v54 = vpop.f32.mrf.mxu0 }
 0x5f8   :  { %v3530_v9 = vpop.f32.mrf.mxu0  ;;  %4153 = vmatpush1.bf16.msra.mxu1 %v7033_v52 }
 0x5f9   :  { %v3596_v42 = vpack.c.bf16 %v3530_v9, %v3526_v4  ;;  %4154 = vmatprep.subr.bf16.mxu1 %v7038_v51 }
 0x5fa   :  { %v3532_v45 = vpop.f32.mrf.mxu0 }
 0x5fb   :  { %v9138_v13 = vpack.c.bf16 %v3532_v45, %v3528_v54  ;;  %3806 = vmatmul.mubr.bf16.gmra.mxu1 %v3596_v42  ;;  %6690 = vmatmul.mubr.bf16.vlgmr.msra.gmra.mxu0 %v3596_v42  ;;  %v7061_v54 = vld [vmem:[#allocation17 + $0x8] ss:$12 sps:$4 sm:$0xff]  }
 0x5fc   :  { %v3536_v55 = vpop.f32.mrf.mxu0  ;;  %3815 = vmatprep.mubr.bf16.mxu1 %v10102_v63  ;;  %4155 = vmatpush1.bf16.msra.mxu1 %v7036_v27 }
 0x5fd   :  { %4156 = vmatprep.subr.bf16.mxu1 %v7041_v6  ;;  %6706 = vmatpush3.bf16.msra.mxu0 %v7045_v24  ;;  %v7064_v6 = vld [vmem:[#allocation16 + $0x16c] ss:$12 sps:$4 sm:$0xff]  }
 0x5fe   :  { %v3538_v12 = vpop.f32.mrf.mxu0  ;;  %6707 = vmatprep.subr.bf16.mxu0 %v7046_v20 }
 0x600   :  { %v3540_v33 = vpop.f32.mrf.mxu0  ;;  %4157 = vmatpush1.bf16.msra.mxu1 %v7039_v32 }
 0x601   :  { %v3597_v59 = vpack.c.bf16 %v3540_v33, %v3536_v55  ;;  %4158 = vmatprep.subr.bf16.mxu1 %v7044_v31  ;;  %6708 = vmatpush3.bf16.msra.mxu0 %v7046_v20 }
 0x602   :  { %v3542_v60 = vpop.f32.mrf.mxu0  ;;  %6709 = vmatprep.subr.bf16.mxu0 %v7050_v40 }
 0x603   :  { %v9141_v16 = vpack.c.bf16 %v3542_v60, %v3538_v12  ;;  %3816 = vmatmul.mubr.bf16.gmra.mxu1 %v3597_v59  ;;  %6693 = vmatprep.mubr.bf16.mxu0 %v3597_v59 }
 0x604   :  { %v3546_v2 = vpop.f32.mrf.mxu0  ;;  %3825 = vmatprep.mubr.bf16.mxu1 %v10102_v63  ;;  %4159 = vmatpush1.bf16.msra.mxu1 %v7042_v57 }
 0x605   :  { %4160 = vmatprep.subr.bf16.mxu1 %v7049_v19  ;;  %6710 = vmatpush3.bf16.msra.mxu0 %v7050_v40 }
 0x606   :  { %v3548_v37 = vpop.f32.mrf.mxu0  ;;  %6711 = vmatprep.subr.bf16.mxu0 %v7051_v21 }
 0x608   :  { %v3550_v38 = vpop.f32.mrf.mxu0  ;;  %4161 = vmatpush1.bf16.msra.mxu1 %v7047_v23  ;;  %v10133_v23 = vld [vmem:[#allocation39_spill] sm:$0xff] }
 0x609   :  { %v3598_v8 = vpack.c.bf16 %v3550_v38, %v3546_v2  ;;  %6712 = vmatpush3.bf16.msra.mxu0 %v7051_v21  ;;  %4162 = vmatprep.subr.bf16.mxu1 %v7054_v11  ;;  %v7062_v11 = vld [vmem:[#allocation16 + $0x168] ss:$12 sps:$4 sm:$0xff]   ;;  %v10134_v38 = vld [vmem:[#allocation50_spill] sm:$0xff] }
 0x60a   :  { %v3552_v24 = vpop.f32.mrf.mxu0  ;;  %6713 = vmatprep.subr.bf16.mxu0 %v7055_v25 }
 0x60b   :  { %v9144_v36 = vpack.c.bf16 %v3552_v24, %v3548_v37  ;;  %3826 = vmatmul.mubr.bf16.gmra.mxu1 %v3598_v8  ;;  %6694 = vmatmul.mubr.bf16.gmra.mxu0 %v3598_v8  ;;  %v7068_v37 = vld [vmem:[#allocation16 + $0x154] ss:$12 sps:$4 sm:$0xff]   ;;  %v7071_v8 = vld [vmem:[#allocation16 + $0x13c] ss:$12 sps:$4 sm:$0xff]   ;;  %v7069_v24 = vld [vmem:[#allocation16 + $0x138] ss:$12 sps:$4 sm:$0xff]  }
 0x60c   :  { %v3556_v5 = vpop.f32.mrf.mxu0  ;;  %3835 = vmatprep.mubr.bf16.mxu1 %v10102_v63  ;;  %4163 = vmatpush1.bf16.msra.mxu1 %v7052_v15  ;;  %v7066_v15 = vld [vmem:[#allocation16 + $0x150] ss:$12 sps:$4 sm:$0xff]  }
 0x60d   :  { %6714 = vmatpush3.bf16.msra.mxu0 %v7055_v25  ;;  %4164 = vmatprep.subr.bf16.mxu1 %v7059_v30  ;;  %v7072_v25 = vld [vmem:[#allocation16 + $0x158] ss:$12 sps:$4 sm:$0xff]   ;;  %v7079_v30 = vld [vmem:[#allocation16 + $0x140] ss:$12 sps:$4 sm:$0xff]  }
 0x60e   :  { %v3558_v39 = vpop.f32.mrf.mxu0  ;;  %6715 = vmatprep.subr.bf16.mxu0 %v7056_v14 }
 0x610   :  { %v3560_v4 = vpop.f32.mrf.mxu0  ;;  %4165 = vmatpush1.bf16.msra.mxu1 %v7057_v43  ;;  %v7073_v43 = vld [vmem:[#allocation16 + $0x120] ss:$12 sps:$4 sm:$0xff]  }
 0x611   :  { %v3599_v52 = vpack.c.bf16 %v3560_v4, %v3556_v5  ;;  %6716 = vmatpush3.bf16.msra.mxu0 %v7056_v14  ;;  %6737 = vmatprep.subr.bf16.mxu1 %v7065_v62  ;;  %v7075_v14 = vld [vmem:[#allocation16 + $0x124] ss:$12 sps:$4 sm:$0xff]   ;;  %v7086_v5 = vld [vmem:[#allocation16 + $0x128] ss:$12 sps:$4 sm:$0xff]  }
 0x612   :  { %v3562_v51 = vpop.f32.mrf.mxu0  ;;  %6717 = vmatprep.subr.bf16.mxu0 %v7060_v26  ;;  %v7090_v4 = vld [vmem:[#allocation16 + $0x110] ss:$12 sps:$4 sm:$0xff]  }
 0x613   :  { %v9147_v9 = vpack.c.bf16 %v3562_v51, %v3558_v39  ;;  %3836 = vmatmul.mubr.bf16.gmra.mxu1 %v3599_v52  ;;  %6697 = vmatprep.mubr.bf16.mxu0 %v3599_v52  ;;  %v7076_v39 = vld [vmem:[#allocation16 + $0x108] ss:$12 sps:$4 sm:$0xff]   ;;  %v7080_v52 = vld [vmem:[#allocation16 + $0xf0] ss:$12 sps:$4 sm:$0xff]   ;;  %v7091_v51 = vld [vmem:[#allocation16 + $0xf8] ss:$12 sps:$4 sm:$0xff]  }
 0x614   :  { %v3566_v27 = vpop.f32.mrf.mxu0  ;;  %3845 = vmatprep.mubr.bf16.mxu1 %v10102_v63 }
 0x615   :  { %6718 = vmatpush3.bf16.msra.mxu0 %v7060_v26  ;;  %v7082_v26 = vld [vmem:[#allocation16 + $0xf4] ss:$12 sps:$4 sm:$0xff]  }
 0x616   :  { %v3568_v42 = vpop.f32.mrf.mxu0  ;;  %6719 = vmatprep.subr.bf16.mxu0 %v7061_v54 }
 0x618   :  { %v3570_v45 = vpop.f32.mrf.mxu0 }
 0x619   :  { %v3600_v20 = vpack.c.bf16 %v3570_v45, %v3566_v27  ;;  %6720 = vmatpush3.bf16.msra.mxu0 %v7061_v54  ;;  %v7085_v54 = vld [vmem:[#allocation16 + $0xdc] ss:$12 sps:$4 sm:$0xff]   ;;  %v7083_v27 = vld [vmem:[#allocation16 + $0xd8] ss:$12 sps:$4 sm:$0xff]  }
 0x61a   :  { %v3572_v55 = vpop.f32.mrf.mxu0  ;;  %4865 = vmatprep.subr.bf16.mxu0 %v7064_v6  ;;  %v7087_v6 = vld [vmem:[#allocation16 + $0xc0] ss:$12 sps:$4 sm:$0xff]   ;;  %v7097_v45 = vld [vmem:[#allocation17 + $0x170] ss:$12 sps:$4 sm:$0xff]  }
 0x61b   :  { %v9150_v32 = vpack.c.bf16 %v3572_v55, %v3568_v42  ;;  %3846 = vmatmul.mubr.bf16.gmra.mxu1 %v3600_v20  ;;  %6698 = vmatmul.mubr.bf16.gmra.mxu0 %v3600_v20  ;;  %v7089_v42 = vld [vmem:[#allocation16 + $0xc4] ss:$12 sps:$4 sm:$0xff]   ;;  %v7093_v20 = vld [vmem:[#allocation16 + $0xc8] ss:$12 sps:$4 sm:$0xff]  }
 0x61c   :  { %v3576_v31 = vpop.f32.mrf.mxu0  ;;  %3855 = vmatprep.mubr.bf16.mxu1 %v10102_v63  ;;  %v7101_v55 = vld [vmem:[#allocation17 + $0x158] ss:$12 sps:$4 sm:$0xff]  }
 0x61e   :  { %v3578_v12 = vpop.f32.mrf.mxu0 }
 0x620   :  { %v3580_v40 = vpop.f32.mrf.mxu0 }
 0x621   :  { %v3601_v33 = vpack.c.bf16 %v3580_v40, %v3576_v31  ;;  %v7105_v31 = vld [vmem:[#allocation17 + $0x140] ss:$12 sps:$4 sm:$0xff]   ;;  %v7117_v40 = vld [vmem:[#allocation17 + $0xf8] ss:$12 sps:$4 sm:$0xff]  }
 0x622   :  { %v3582_v57 = vpop.f32.mrf.mxu0 }
 0x623   :  { %v9153_v59 = vpack.c.bf16 %v3582_v57, %v3578_v12  ;;  %3856 = vmatmul.mubr.bf16.gmra.mxu1 %v3601_v33  ;;  %6701 = vmatprep.mubr.bf16.mxu0 %v3601_v33  ;;  %v7109_v12 = vld [vmem:[#allocation17 + $0x128] ss:$12 sps:$4 sm:$0xff]  }
 0x624   :  { %v3586_v19 = vpop.f32.mrf.mxu0  ;;  %3865 = vmatprep.mubr.bf16.mxu1 %v10102_v63  ;;  %v7125_v33 = vld [vmem:[#allocation17 + $0xc8] ss:$12 sps:$4 sm:$0xff]  }
 0x625   :  { %v7100_v57 = vld [vmem:[#allocation17 + $0x154] ss:$12 sps:$4 sm:$0xff]  }
 0x626   :  { %v9156_v60 = vpop.f32.mrf.mxu0 }
 0x628   :  { %v3590_v21 = vpop.f32.mrf.mxu0 }
 0x629   :  { %v3602_v2 = vpack.c.bf16 %v3590_v21, %v3586_v19  ;;  %v7098_v19 = vld [vmem:[#allocation17 + $0x150] ss:$12 sps:$4 sm:$0xff]  }
 0x62a   :  { %v7108_v21 = vld [vmem:[#allocation17 + $0x124] ss:$12 sps:$4 sm:$0xff]  }
 0x62b   :  { %3866 = vmatmul.mubr.bf16.gmra.mxu1 %v3602_v2  ;;  %6702 = vmatmul.mubr.bf16.gmra.mxu0 %v3602_v2  ;;  %v7110_v2 = vld [vmem:[#allocation17 + $0x108] ss:$12 sps:$4 sm:$0xff]  }
 0x62c   :  { %6721 = vmatprep.mubr.bf16.mxu0 %v10133_v23  ;;  %4182 = vmatprep.mubr.bf16.mxu1 %v10102_v63 }
 0x633   :  { %4183 = vmatmul.mubr.bf16.vlgmr.msra.gmra.mxu1 %v10133_v23  ;;  %6722 = vmatmul.mubr.bf16.vlgmr.msra.gmra.mxu0 %v10134_v38  ;;  %v7116_v23 = vld [vmem:[#allocation17 + $0xf4] ss:$12 sps:$4 sm:$0xff]  }
 0x634   :  { %6725 = vmatprep.mubr.bf16.mxu0 %v8782_v46  ;;  %4866 = vmatpush1.bf16.msra.mxu0 %v7062_v11  ;;  %v3592_v11 = vpop.f32.mrf.mxu0 }
 0x635   :  { %6738 = vmatpush3.bf16.msra.mxu1 %v7065_v62  ;;  %4867 = vmatprep.subr.bf16.mxu0 %v7068_v37  ;;  %v7078_v62 = vld [vmem:[#allocation16 + $0x10c] ss:$12 sps:$4 sm:$0xff]  }
 0x636   :  { %4192 = vmatprep.mubr.bf16.mxu1 %v10102_v63  ;;  %6739 = vmatprep.subr.bf16.mxu1 %v7072_v25  ;;  %v7118_v37 = vld [vmem:[#allocation17 + $0xd8] ss:$12 sps:$4 sm:$0xff]  }
 0x638   :  { %4868 = vmatpush1.bf16.msra.mxu0 %v7066_v15 }
 0x639   :  { %4869 = vmatprep.subr.bf16.mxu0 %v7071_v8  ;;  %6740 = vmatpush3.bf16.msra.mxu1 %v7072_v25  ;;  %v4703_v25 = vpack.c.bf16 %v3592_v11, %v9156_v60 }
 0x63a   :  { %6741 = vmatprep.subr.bf16.mxu1 %v7079_v30 }
 0x63b   :  { %4193 = vmatmul.mubr.bf16.gmra.mxu1 %v10134_v38  ;;  %6726 = vmatmul.mubr.bf16.gmra.mxu0 %v8778_v1  ;;  %v7124_v38 = vld [vmem:[#allocation17 + $0xc4] ss:$12 sps:$4 sm:$0xff]  }
 0x63c   :  { %6729 = vmatprep.mubr.bf16.mxu0 %v8803_v41  ;;  %4870 = vmatpush1.bf16.msra.mxu0 %v7069_v24 }
 0x63d   :  { %4871 = vmatprep.subr.bf16.mxu0 %v7075_v14  ;;  %4202 = vmatprep.mubr.bf16.mxu1 %v10102_v63 }
 0x63e   :  { %6742 = vmatpush3.bf16.msra.mxu1 %v7079_v30 }
 0x63f   :  { %6743 = vmatprep.subr.bf16.mxu1 %v7086_v5 }
 0x640   :  { %4872 = vmatpush1.bf16.msra.mxu0 %v7073_v43 }
 0x641   :  { %4873 = vmatprep.subr.bf16.mxu0 %v7078_v62 }
 0x642   :  { %6744 = vmatpush3.bf16.msra.mxu1 %v7086_v5 }
 0x643   :  { %4203 = vmatmul.mubr.bf16.gmra.mxu1 %v8782_v46  ;;  %6730 = vmatmul.mubr.bf16.gmra.mxu0 %v8823_v17  ;;  %v7092_v46 = vld [vmem:[#allocation16 + $0xe0] ss:$12 sps:$4 sm:$0xff]  }
 0x644   :  { %6733 = vmatprep.mubr.bf16.mxu0 %v8841_v18  ;;  %4874 = vmatpush1.bf16.msra.mxu0 %v7076_v39 }
 0x645   :  { %4875 = vmatprep.subr.bf16.mxu0 %v7082_v26  ;;  %4212 = vmatprep.mubr.bf16.mxu1 %v10102_v63 }
 0x646   :  { %6745 = vmatprep.subr.bf16.mxu1 %v7090_v4 }
 0x647   :  { %6746 = vmatpush3.bf16.msra.mxu1 %v7090_v4 }
 0x648   :  { %4876 = vmatpush1.bf16.msra.mxu0 %v7080_v52  ;;  %6747 = vmatprep.subr.bf16.mxu1 %v7091_v51 }
 0x649   :  { %4877 = vmatprep.subr.bf16.mxu0 %v7085_v54 }
 0x64b   :  { %4213 = vmatmul.mubr.bf16.gmra.mxu1 %v8778_v1  ;;  %6734 = vmatmul.mubr.bf16.gmra.mxu0 %v8870_v29  ;;  %v7096_v1 = vld [vmem:[#allocation17 + $0x16c] ss:$12 sps:$4 sm:$0xff]  }
 0x64c   :  { %4878 = vmatpush1.bf16.msra.mxu0 %v7083_v27  ;;  %4222 = vmatprep.mubr.bf16.mxu1 %v10102_v63 }
 0x64d   :  { %4879 = vmatprep.subr.bf16.mxu0 %v7089_v42  ;;  %4897 = vmatprep.mubr.bf16.mxu0 %v10102_v63 }
 0x64e   :  { %6748 = vmatpush3.bf16.msra.mxu1 %v7091_v51 }
 0x64f   :  { %6749 = vmatprep.subr.bf16.mxu1 %v7092_v46 }
 0x650   :  { %4880 = vmatpush1.bf16.msra.mxu0 %v7087_v6 }
 0x651   :  { %6769 = vmatprep.subr.bf16.mxu0 %v7097_v45 }
 0x652   :  { %6750 = vmatpush3.bf16.msra.mxu1 %v7092_v46 }
 0x653   :  { %4223 = vmatmul.mubr.bf16.gmra.mxu1 %v8803_v41  ;;  %4898 = vmatmul.mubr.bf16.vlgmr.msra.gmra.mxu0 %v9135_v49  ;;  %v7113_v41 = vld [vmem:[#allocation17 + $0x110] ss:$12 sps:$4 sm:$0xff]  }
 0x654   :  { %4232 = vmatprep.mubr.bf16.mxu1 %v10102_v63  ;;  %4907 = vmatprep.mubr.bf16.mxu0 %v10102_v63 }
 0x655   :  { %6751 = vmatprep.subr.bf16.mxu1 %v7093_v20  ;;  %6770 = vmatpush3.bf16.msra.mxu0 %v7097_v45 }
 0x656   :  { %6752 = vmatpush3.bf16.msra.mxu1 %v7093_v20  ;;  %6771 = vmatprep.subr.bf16.mxu0 %v7101_v55 }
 0x657   :  { %5254 = vmatprep.subr.bf16.mxu1 %v7096_v1 }
 0x659   :  { %6772 = vmatpush3.bf16.msra.mxu0 %v7101_v55 }
 0x65a   :  { %6773 = vmatprep.subr.bf16.mxu0 %v7105_v31 }
 0x65b   :  { %4233 = vmatmul.mubr.bf16.gmra.mxu1 %v8823_v17  ;;  %4908 = vmatmul.mubr.bf16.gmra.mxu0 %v9138_v13  ;;  %v7121_v17 = vld [vmem:[#allocation17 + $0xe0] ss:$12 sps:$4 sm:$0xff]  }
 0x65c   :  { %4242 = vmatprep.mubr.bf16.mxu1 %v10102_v63  ;;  %4917 = vmatprep.mubr.bf16.mxu0 %v10102_v63 }
 0x65d   :  { %6774 = vmatpush3.bf16.msra.mxu0 %v7105_v31 }
 0x65e   :  { %6775 = vmatprep.subr.bf16.mxu0 %v7109_v12 }
 0x661   :  { %6776 = vmatpush3.bf16.msra.mxu0 %v7109_v12 }
 0x662   :  { %6777 = vmatprep.subr.bf16.mxu0 %v7113_v41 }
 0x663   :  { %4243 = vmatmul.mubr.bf16.gmra.mxu1 %v8841_v18  ;;  %4918 = vmatmul.mubr.bf16.gmra.mxu0 %v9141_v16  ;;  %v7094_v18 = vld [vmem:[#allocation17 + $0x168] ss:$12 sps:$4 sm:$0xff]  }
 0x664   :  { %4252 = vmatprep.mubr.bf16.mxu1 %v10102_v63  ;;  %4927 = vmatprep.mubr.bf16.mxu0 %v10102_v63 }
 0x665   :  { %6778 = vmatpush3.bf16.msra.mxu0 %v7113_v41 }
 0x666   :  { %6779 = vmatprep.subr.bf16.mxu0 %v7117_v40 }
 0x669   :  { %6780 = vmatpush3.bf16.msra.mxu0 %v7117_v40 }
 0x66a   :  { %6781 = vmatprep.subr.bf16.mxu0 %v7121_v17 }
 0x66b   :  { %4253 = vmatmul.mubr.bf16.gmra.mxu1 %v8870_v29  ;;  %4928 = vmatmul.mubr.bf16.gmra.mxu0 %v9144_v36  ;;  %v7104_v29 = vld [vmem:[#allocation17 + $0x13c] ss:$12 sps:$4 sm:$0xff]  }
 0x66c   :  { %6753 = vmatprep.mubr.bf16.mxu1 %v9135_v49  ;;  %4937 = vmatprep.mubr.bf16.mxu0 %v10102_v63  ;;  %v7102_v49 = vld [vmem:[#allocation17 + $0x138] ss:$12 sps:$4 sm:$0xff]  }
 0x66d   :  { %6782 = vmatpush3.bf16.msra.mxu0 %v7121_v17 }
 0x66e   :  { %6783 = vmatprep.subr.bf16.mxu0 %v7125_v33 }
 0x671   :  { %6784 = vmatpush3.bf16.msra.mxu0 %v7125_v33 }
 0x673   :  { %4938 = vmatmul.mubr.bf16.gmra.mxu0 %v9147_v9  ;;  %6754 = vmatmul.mubr.bf16.vlgmr.msra.gmra.mxu1 %v9138_v13  ;;  %v7106_v13 = vld [vmem:[#allocation17 + $0x120] ss:$12 sps:$4 sm:$0xff]  }
 0x674   :  { %6757 = vmatprep.mubr.bf16.mxu1 %v9141_v16  ;;  %5255 = vmatpush1.bf16.msra.mxu1 %v7094_v18  ;;  %v7112_v16 = vld [vmem:[#allocation17 + $0x10c] ss:$12 sps:$4 sm:$0xff]  }
 0x675   :  { %5256 = vmatprep.subr.bf16.mxu1 %v7100_v57  ;;  %4947 = vmatprep.mubr.bf16.mxu0 %v10102_v63 }
 0x678   :  { %5257 = vmatpush1.bf16.msra.mxu1 %v7098_v19 }
 0x679   :  { %5258 = vmatprep.subr.bf16.mxu1 %v7104_v29 }
 0x67b   :  { %4948 = vmatmul.mubr.bf16.gmra.mxu0 %v9150_v32  ;;  %6758 = vmatmul.mubr.bf16.gmra.mxu1 %v9144_v36  ;;  %v7114_v36 = vld [vmem:[#allocation17 + $0xf0] ss:$12 sps:$4 sm:$0xff]  }
 0x67c   :  { %6761 = vmatprep.mubr.bf16.mxu1 %v9147_v9  ;;  %5259 = vmatpush1.bf16.msra.mxu1 %v7102_v49  ;;  %v7120_v9 = vld [vmem:[#allocation17 + $0xdc] ss:$12 sps:$4 sm:$0xff]  }
 0x67d   :  { %5260 = vmatprep.subr.bf16.mxu1 %v7108_v21  ;;  %4957 = vmatprep.mubr.bf16.mxu0 %v10102_v63  ;;  %v9318_v21 = vld [vmem:[%s9984_s11] sm:$0x7] }
 0x680   :  { %5261 = vmatpush1.bf16.msra.mxu1 %v7106_v13 }
 0x681   :  { %5262 = vmatprep.subr.bf16.mxu1 %v7112_v16 }
 0x683   :  { %4958 = vmatmul.mubr.bf16.gmra.mxu0 %v9153_v59  ;;  %6762 = vmatmul.mubr.bf16.gmra.mxu1 %v9150_v32  ;;  %v7122_v32 = vld [vmem:[#allocation17 + $0xc0] ss:$12 sps:$4 sm:$0xff]  }
 0x684   :  { %6765 = vmatprep.mubr.bf16.mxu1 %v9153_v59  ;;  %5263 = vmatpush1.bf16.msra.mxu1 %v7110_v2  ;;  %v10143_v2 = vld [vmem:[#allocation34_spill] sm:$0xff] }
 0x685   :  { %5264 = vmatprep.subr.bf16.mxu1 %v7116_v23  ;;  %4967 = vmatprep.mubr.bf16.mxu0 %v10102_v63  ;;  %v9326_v23 = vrot.slane %v9318_v21, %v10143_v2 }
 0x688   :  { %5265 = vmatpush1.bf16.msra.mxu1 %v7114_v36  ;;  %v309_v36 = vld [vmem:[#allocation8] sm:$0xff] }
 0x689   :  { %5266 = vmatprep.subr.bf16.mxu1 %v7120_v9 }
 0x68b   :  { %4968 = vmatmul.mubr.bf16.gmra.mxu0 %v4703_v25  ;;  %6766 = vmatmul.mubr.bf16.gmra.mxu1 %v4703_v25 }
 0x68c   :  { %5267 = vmatpush1.bf16.msra.mxu1 %v7118_v37  ;;  %6785 = vmatprep.mubr.bf16.mxu0 %v8986_v58  ;;  %v10146_v37 = vld [vmem:[#allocation38_spill] sm:$0xff] }
 0x68d   :  { %5268 = vmatprep.subr.bf16.mxu1 %v7124_v38  ;;  %5286 = vmatprep.mubr.bf16.mxu1 %v10102_v63  ;;  %v9334_v25 = vrot.slane %v9318_v21, %v10146_v37  ;;  %v310_v38 = vld [vmem:[#allocation8 + $0x8] sm:$0xff] }
 0x690   :  { %5269 = vmatpush1.bf16.msra.mxu1 %v7122_v32 }
 0x693   :  { %5287 = vmatmul.mubr.bf16.vlgmr.msra.gmra.mxu1 %v8986_v58  ;;  %6786 = vmatmul.mubr.bf16.vlgmr.msra.gmra.mxu0 %v8999_v56 }
 0x694   :  { %6789 = vmatprep.mubr.bf16.mxu0 %v9036_v10  ;;  %5296 = vmatprep.mubr.bf16.mxu1 %v10102_v63 }
 0x69b   :  { %5297 = vmatmul.mubr.bf16.gmra.mxu1 %v8999_v56  ;;  %6790 = vmatmul.mubr.bf16.gmra.mxu0 %v9049_v50 }
 0x69c   :  { %6793 = vmatprep.mubr.bf16.mxu0 %v9064_v0  ;;  %5306 = vmatprep.mubr.bf16.mxu1 %v10102_v63 }
 0x6a3   :  { %5307 = vmatmul.mubr.bf16.gmra.mxu1 %v9036_v10  ;;  %6794 = vmatmul.mubr.bf16.gmra.mxu0 %v9076_v28 }
 0x6a4   :  { %6797 = vmatprep.mubr.bf16.mxu0 %v9085_v22  ;;  %5316 = vmatprep.mubr.bf16.mxu1 %v10102_v63 }
 0x6ab   :  { %5317 = vmatmul.mubr.bf16.gmra.mxu1 %v9049_v50  ;;  %6798 = vmatmul.mubr.bf16.gmra.mxu0 %v9094_v47 }
 0x6ac   :  { %5326 = vmatprep.mubr.bf16.mxu1 %v10102_v63 }
 0x6b3   :  { %v3797_v58 = vpop.f32.mrf.mxu1  ;;  %5327 = vmatmul.mubr.bf16.gmra.mxu1 %v9064_v0 }
 0x6b4   :  { %5336 = vmatprep.mubr.bf16.mxu1 %v10102_v63  ;;  %v3798_v48 = vadd.f32 %v3797_v58, %v309_v36 }
 0x6b5   :  { %v9224_v56 = vpop.f32.mrf.mxu1 }
 0x6b7   :  { %v9226_v10 = vpop.f32.mrf.mxu1 }
 0x6b9   :  { %v9228_v59 = vpop.f32.mrf.mxu1 }
 0x6bb   :  { %v9230_v60 = vpop.f32.mrf.mxu1  ;;  %5337 = vmatmul.mubr.bf16.gmra.mxu1 %v9076_v28  ;;  %v9238_v8 = vpop.f32.mrf.mxu0 }
 0x6bc   :  { %5346 = vmatprep.mubr.bf16.mxu1 %v10102_v63 }
 0x6bd   :  { %v9234_v50 = vpop.f32.mrf.mxu1  ;;  %v9246_v24 = vpop.f32.mrf.mxu0 }
 0x6bf   :  { %v9236_v15 = vpop.f32.mrf.mxu1  ;;  %v9252_v5 = vpop.f32.mrf.mxu0 }
 0x6c1   :  { %v9240_v0 = vpop.f32.mrf.mxu1  ;;  %v9259_v39 = vpop.f32.mrf.mxu0 }
 0x6c3   :  { %v9242_v30 = vpop.f32.mrf.mxu1  ;;  %5347 = vmatmul.mubr.bf16.gmra.mxu1 %v9085_v22 }
 0x6c4   :  { %5356 = vmatprep.mubr.bf16.mxu1 %v10102_v63 }
 0x6c5   :  { %v9248_v14 = vpop.f32.mrf.mxu1 }
 0x6c7   :  { %v9250_v28 = vpop.f32.mrf.mxu1 }
 0x6c9   :  { %v9254_v43 = vpop.f32.mrf.mxu1 }
 0x6cb   :  { %v9256_v62 = vpop.f32.mrf.mxu1  ;;  %5357 = vmatmul.mubr.bf16.gmra.mxu1 %v9094_v47  ;;  %v9263_v22 = vpop.f32.mrf.mxu0 }
 0x6cd   :  { %v9261_v26 = vpop.f32.mrf.mxu1  ;;  %v9269_v52 = vpop.f32.mrf.mxu0 }
 0x6cf   :  { %v9265_v63 = vpop.f32.mrf.mxu1  ;;  %v9275_v27 = vpop.f32.mrf.mxu0 }
 0x6d1   :  { %v9267_v4 = vpop.f32.mrf.mxu1  ;;  %v9281_v46 = vpop.f32.mrf.mxu0 }
 0x6d3   :  { %v9271_v51 = vpop.f32.mrf.mxu1 }
 0x6d5   :  { %v9273_v54 = vpop.f32.mrf.mxu1 }
 0x6d7   :  { %v9277_v42 = vpop.f32.mrf.mxu1 }
 0x6d9   :  { %v9279_v47 = vpop.f32.mrf.mxu1 }
 0x6db   :  { %v9283_v6 = vpop.f32.mrf.mxu1  ;;  %v9285_v45 = vpop.f32.mrf.mxu0 }
 0x6dc   :  { %10135 = vst [vmem:[#allocation39_spill] sm:$0xff] %v9285_v45 }
 0x6dd   :  { %v9287_v20 = vpop.f32.mrf.mxu1  ;;  %v9291_v1 = vpop.f32.mrf.mxu0 }
 0x6de   :  { %10136 = vst [vmem:[#allocation50_spill] sm:$0xff] %v9291_v1 }
 0x6df   :  { %v9289_v55 = vpop.f32.mrf.mxu1  ;;  %v9297_v41 = vpop.f32.mrf.mxu0 }
 0x6e0   :  { %10137 = vst [vmem:[#allocation63_spill] sm:$0xff] %v9297_v41  ;;  %v3802_v41 = vadd.f32 %v9226_v10, %v312_v53  ;;  %v316_v10 = vld [vmem:[#allocation8 + $0x38] sm:$0xff] }
 0x6e1   :  { %v9293_v31 = vpop.f32.mrf.mxu1  ;;  %v9303_v33 = vpop.f32.mrf.mxu0 }
 0x6e2   :  { %10138 = vst [vmem:[#allocation64_spill] sm:$0xff] %v9303_v33 }
 0x6e3   :  { %v9295_v12 = vpop.f32.mrf.mxu1 }
 0x6e5   :  { %v9299_v40 = vpop.f32.mrf.mxu1 }
 0x6e7   :  { %v9301_v17 = vpop.f32.mrf.mxu1 }
 0x6e9   :  { %v9305_v18 = vpop.f32.mrf.mxu1 }
 0x6eb   :  { %v9307_v57 = vpop.f32.mrf.mxu1  ;;  %v9309_v19 = vpop.f32.mrf.mxu0 }
 0x6ec   :  { %10139 = vst [vmem:[#allocation65_spill] sm:$0xff] %v9309_v19 }
 0x6ed   :  { %v9311_v29 = vpop.f32.mrf.mxu1  ;;  %v9313_v49 = vpop.f32.mrf.mxu0 }
 0x6ee   :  { %10140 = vst [vmem:[#allocation66_spill] sm:$0xff] %v9311_v29  ;;  %10141 = vst [vmem:[#allocation67_spill] sm:$0xff] %v9313_v49  ;;  %v313_v49 = vld [vmem:[#allocation8 + $0x20] sm:$0xff] }
 0x6ef   :  { %v9320_v13 = vpop.f32.mrf.mxu1  ;;  %v9322_v16 = vpop.f32.mrf.mxu0  ;;  %v3804_v36 = vadd.f32 %v9228_v59, %v313_v49  ;;  %v318_v59 = vld [vmem:[#allocation8 + $0x48] sm:$0xff] }
 0x6f0   :  { %10142 = vst [vmem:[#allocation68_spill] sm:$0xff] %v9322_v16  ;;  %v3800_v16 = vadd.f32 %v9224_v56, %v310_v38 }
 0x6f1   :  { %v9328_v9 = vpop.f32.mrf.mxu1  ;;  %v9330_v11 = vpop.f32.mrf.mxu0 }
 0x6f2   :  { %10144 = vst [vmem:[#allocation69_spill] sm:$0xff] %v9328_v9  ;;  %10145 = vst [vmem:[#allocation70_spill] sm:$0xff] %v9330_v11 }
 0x6f3   :  { %v4184_v32 = vpop.f32.mrf.mxu1  ;;  %v9336_v3 = vpop.f32.mrf.mxu0 }
 0x6f4   :  { %v4185_v61 = vadd.f32 %v4184_v32, %v9326_v23  ;;  %v315_v32 = vld [vmem:[#allocation8 + $0x30] sm:$0xff] }
 0x6f5   :  { %v4186_v44 = vpop.f32.mrf.mxu1  ;;  %v9339_v7 = vpop.f32.mrf.mxu0  ;;  %v3808_v53 = vadd.f32 %v9230_v60, %v315_v32 }
 0x6f6   :  { %v4360_v19 = vadd.f32 %v4185_v61, %v3798_v48  ;;  %v4187_v11 = vadd.f32 %v4186_v44, %v9334_v25 }
 0x6f7   :  { %v4188_v2 = vpop.f32.mrf.mxu1  ;;  %v9343_v37 = vpop.f32.mrf.mxu0 }
 0x6f8   :  { %v6112_v45 = vmul.f32 -1.442695, %v4360_v19  ;;  %v4472_v33 = vadd.f32 %v4187_v11, %v3800_v16  ;;  %v4189_v58 = vadd.f32 %v4188_v2, %v9326_v23 }
 0x6f9   :  { %v4190_v9 = vpop.f32.mrf.mxu1  ;;  %v9348_v29 = vpop.f32.mrf.mxu0 }
 0x6fa   :  { %7446 = vpow2.f32 %v6112_v45  ;;  %v6128_v56 = vmul.f32 -1.442695, %v4472_v33  ;;  %v4361_v61 = vadd.f32 %v4189_v58, %v3802_v41  ;;  %v4191_v44 = vadd.f32 %v4190_v9, %v9334_v25  ;;  %v319_v9 = vld [vmem:[#allocation8 + $0x50] sm:$0xff] }
 0x6fb   :  { %v4194_v48 = vpop.f32.mrf.mxu1  ;;  %v9351_v38 = vpop.f32.mrf.mxu0  ;;  %v3810_v33 = vadd.f32 %v9234_v50, %v316_v10  ;;  %v322_v10 = vld [vmem:[#allocation8 + $0x68] sm:$0xff] }
 0x6fc   :  { %v6113_v19 = vmul.f32 -1.442695, %v4361_v61  ;;  %v4473_v16 = vadd.f32 %v4191_v44, %v3804_v36  ;;  %v4195_v2 = vadd.f32 %v4194_v48, %v9326_v23  ;;  %7448 = vpow2.f32 %v6128_v56  ;;  %v321_v56 = vld [vmem:[#allocation8 + $0x60] sm:$0xff] }
 0x6fd   :  { %v4196_v49 = vpop.f32.mrf.mxu1  ;;  %v9355_v11 = vpop.f32.mrf.mxu0  ;;  %v3812_v36 = vadd.f32 %v9236_v15, %v318_v59  ;;  %v3818_v15 = vadd.f32 %v9242_v30, %v321_v56  ;;  %v327_v30 = vld [vmem:[#allocation8 + $0x90] sm:$0xff] }
 0x6fe   :  { %7450 = vpow2.f32 %v6113_v19  ;;  %v4362_v45 = vadd.f32 %v4195_v2, %v3808_v53  ;;  %v4197_v41 = vadd.f32 %v4196_v49, %v9334_v25  ;;  %v6129_v58 = vmul.f32 -1.442695, %v4473_v16 }
 0x6ff   :  { %v4198_v34 = vpop.f32.mrf.mxu1  ;;  %v9359_v60 = vpop.f32.mrf.mxu0  ;;  %v3814_v53 = vadd.f32 %v9240_v0, %v319_v9  ;;  %v3820_v0 = vadd.f32 %v9248_v14, %v322_v10  ;;  %v324_v9 = vld [vmem:[#allocation8 + $0x78] sm:$0xff] }
 0x700   :  { %v6114_v32 = vmul.f32 -1.442695, %v4362_v45  ;;  %v4199_v61 = vadd.f32 %v4198_v34, %v9326_v23  ;;  %v4474_v44 = vadd.f32 %v4197_v41, %v3810_v33 }
 0x701   :  { %v4200_v48 = vpop.f32.mrf.mxu1  ;;  %v9363_v1 = vpop.f32.mrf.mxu0 }
 0x702   :  { %7452 = vpow2.f32 %v6114_v32  ;;  %v4363_v19 = vadd.f32 %v4199_v61, %v3812_v36  ;;  %v4201_v50 = vadd.f32 %v4200_v48, %v9334_v25  ;;  %v6130_v45 = vmul.f32 -1.442695, %v4474_v44  ;;  %v325_v61 = vld [vmem:[#allocation8 + $0x80] sm:$0xff] }
 0x703   :  { %7454 = vpow2.f32 %v6129_v58  ;;  %v4204_v16 = vpop.f32.mrf.mxu1  ;;  %v9367_v2 = vpop.f32.mrf.mxu0 }
 0x704   :  { %10147 = vst [vmem:[#allocation71_spill] sm:$0xff] %v9367_v2  ;;  %v6115_v59 = vmul.f32 -1.442695, %v4363_v19  ;;  %v4475_v34 = vadd.f32 %v4201_v50, %v3814_v53  ;;  %v4205_v49 = vadd.f32 %v4204_v16, %v9326_v23  ;;  %v3822_v50 = vadd.f32 %v9250_v28, %v324_v9 }
 0x705   :  { %v4206_v41 = vpop.f32.mrf.mxu1  ;;  %v9371_v33 = vpop.f32.mrf.mxu0 }
 0x706   :  { %7456 = vpow2.f32 %v6115_v59  ;;  %v4364_v36 = vadd.f32 %v4205_v49, %v3818_v15  ;;  %v4207_v58 = vadd.f32 %v4206_v41, %v9334_v25  ;;  %v6131_v53 = vmul.f32 -1.442695, %v4475_v34  ;;  %v311_v34 = vld [vmem:[#allocation8 + $0x10] sm:$0xff] }
 0x707   :  { %v7447_v32 = vpop.eup %7446  ;;  %v4208_v48 = vpop.f32.mrf.mxu1  ;;  %7458 = vpow2.f32 %v6130_v45  ;;  %v3824_v59 = vadd.f32 %v9254_v43, %v325_v61  ;;  %v9389_v61 = vrot.slane %v9318_v21, %v10100_v35 }
 0x708   :  { %v9375_v2 = vpop.f32.mrf.mxu0  ;;  %v4424_v56 = vadd.f32 1.0, %v7447_v32  ;;  %v6116_v19 = vmul.f32 -1.442695, %v4364_v36  ;;  %v4476_v44 = vadd.f32 %v4207_v58, %v3820_v0  ;;  %v4209_v14 = vadd.f32 %v4208_v48, %v9326_v23  ;;  %v317_v32 = vld [vmem:[#allocation8 + $0x40] sm:$0xff]  ;;  %v328_v36 = vld [vmem:[#allocation8 + $0x98] sm:$0xff]  ;;  %v330_v58 = vld [vmem:[#allocation8 + $0xa8] sm:$0xff] }
 0x709   :  { %10148 = vst [vmem:[#allocation72_spill] sm:$0xff] %v9375_v2  ;;  %v4210_v10 = vpop.f32.mrf.mxu1  ;;  %v7449_v15 = vpop.eup %7448  ;;  %v3828_v0 = vadd.f32 %v9256_v62, %v327_v30  ;;  %v3830_v21 = vadd.f32 %v9261_v26, %v328_v36 }
 0x70a   :  { %v9379_v16 = vpop.f32.mrf.mxu0  ;;  %7460 = vrcp.f32 %v4424_v56  ;;  %v6132_v49 = vmul.f32 -1.442695, %v4476_v44  ;;  %v4211_v41 = vadd.f32 %v4210_v10, %v9334_v25  ;;  %v4365_v28 = vadd.f32 %v4209_v14, %v3822_v50 }
 0x70b   :  { %10149 = vst [vmem:[#allocation73_spill] sm:$0xff] %v9379_v16  ;;  %v7451_v2 = vpop.eup %7450  ;;  %7462 = vpow2.f32 %v6116_v19  ;;  %v4214_v45 = vpop.f32.mrf.mxu1  ;;  %v4536_v56 = vadd.f32 1.0, %v7449_v15  ;;  %v9394_v19 = vadd.f32 %v9238_v8, %v317_v32  ;;  %v9397_v50 = vadd.f32 %v9246_v24, %v311_v34  ;;  %v329_v32 = vld [vmem:[#allocation8 + $0xa0] sm:$0xff] }
 0x70c   :  { %v9384_v9 = vpop.f32.mrf.mxu0  ;;  %v4425_v48 = vadd.f32 1.0, %v7451_v2  ;;  %7464 = vpow2.f32 %v6131_v53  ;;  %v4477_v16 = vadd.f32 %v4211_v41, %v3824_v59  ;;  %v4215_v43 = vadd.f32 %v4214_v45, %v9326_v23  ;;  %v320_v2 = vld [vmem:[#allocation8 + $0x58] sm:$0xff]  ;;  %v314_v53 = vld [vmem:[#allocation8 + $0x28] sm:$0xff]  ;;  %v331_v59 = vld [vmem:[#allocation8 + $0xb0] sm:$0xff] }
 0x70d   :  { %7466 = vpow2.f32 %v6132_v49  ;;  %v6117_v44 = vmul.f32 -1.442695, %v4365_v28  ;;  %v4216_v62 = vpop.f32.mrf.mxu1  ;;  %v3832_v15 = vadd.f32 %v9265_v63, %v330_v58  ;;  %v9409_v26 = vadd.f32 %v9259_v39, %v314_v53 }
 0x70e   :  { %v9391_v30 = vpop.f32.mrf.mxu0  ;;  %7468 = vrcp.f32 %v4425_v48  ;;  %v4366_v14 = vadd.f32 %v4215_v43, %v3828_v0  ;;  %v4217_v49 = vadd.f32 %v4216_v62, %v9334_v25  ;;  %v6133_v34 = vmul.f32 -1.442695, %v4477_v16  ;;  %v323_v43 = vld [vmem:[#allocation8 + $0x70] sm:$0xff]  ;;  %v333_v62 = vld [vmem:[#allocation8 + $0xc0] sm:$0xff] }
 0x70f   :  { %v7453_v10 = vpop.eup %7452  ;;  %7470 = vpow2.f32 %v6117_v44  ;;  %v4218_v41 = vpop.f32.mrf.mxu1  ;;  %v9406_v0 = vadd.f32 %v9252_v5, %v320_v2  ;;  %v3834_v44 = vadd.f32 %v9267_v4, %v331_v59  ;;  %v9416_v5 = vadd.f32 %v9263_v22, %v329_v32  ;;  %v332_v2 = vld [vmem:[#allocation8 + $0xb8] sm:$0xff]  ;;  %v337_v32 = vld [vmem:[#allocation8 + $0xe0] sm:$0xff] }
 0x710   :  { %v9402_v28 = vpop.f32.mrf.mxu0  ;;  %v7455_v8 = vpop.eup %7454  ;;  %v4426_v24 = vadd.f32 1.0, %v7453_v10  ;;  %v6118_v45 = vmul.f32 -1.442695, %v4366_v14  ;;  %v4219_v48 = vadd.f32 %v4218_v41, %v9326_v23  ;;  %7472 = vrcp.f32 %v4536_v56  ;;  %v334_v41 = vld [vmem:[#allocation8 + $0xc8] sm:$0xff]  ;;  %v336_v22 = vld [vmem:[#allocation8 + $0xd8] sm:$0xff] }
 0x711   :  { %v4478_v63 = vadd.f32 %v4217_v49, %v3830_v21  ;;  %v4220_v36 = vpop.f32.mrf.mxu1  ;;  %v4537_v39 = vadd.f32 1.0, %v7455_v8  ;;  %v326_v49 = vld [vmem:[#allocation8 + $0x88] sm:$0xff] }
 0x712   :  { %v9411_v58 = vpop.f32.mrf.mxu0  ;;  %7474 = vrcp.f32 %v4426_v24  ;;  %v4367_v16 = vadd.f32 %v4219_v48, %v3832_v15  ;;  %v4221_v14 = vadd.f32 %v4220_v36, %v9334_v25  ;;  %v9421_v15 = vadd.f32 %v9269_v52, %v323_v43 }
 0x713   :  { %10150 = vst [vmem:[#allocation74_spill] sm:$0xff] %v9411_v58  ;;  %v7457_v10 = vpop.eup %7456  ;;  %7476 = vpow2.f32 %v6118_v45  ;;  %v6134_v56 = vmul.f32 -1.442695, %v4478_v63  ;;  %v4224_v53 = vpop.f32.mrf.mxu1  ;;  %v3838_v24 = vadd.f32 %v9271_v51, %v333_v62  ;;  %v9428_v36 = vadd.f32 %v9275_v27, %v332_v2 }
 0x714   :  { %v9418_v21 = vpop.f32.mrf.mxu0  ;;  %v4427_v58 = vadd.f32 1.0, %v7457_v10  ;;  %7478 = vpow2.f32 %v6133_v34  ;;  %v6119_v4 = vmul.f32 -1.442695, %v4367_v16  ;;  %v4479_v59 = vadd.f32 %v4221_v14, %v3834_v44  ;;  %v7459_v63 = vpop.eup %7458 }
 0x715   :  { %7480 = vpow2.f32 %v6134_v56  ;;  %v4225_v8 = vadd.f32 %v4224_v53, %v9326_v23  ;;  %v4226_v45 = vpop.f32.mrf.mxu1  ;;  %v4298_v34 = vadd.f32 %v9339_v7, %v9389_v61  ;;  %v9433_v51 = vadd.f32 %v9281_v46, %v326_v49  ;;  %v339_v7 = vld [vmem:[#allocation8 + $0xf0] sm:$0xff]  ;;  %v342_v56 = vld [vmem:[#allocation8 + $0x108] sm:$0xff] }
 0x716   :  { %v9425_v48 = vpop.f32.mrf.mxu0  ;;  %7482 = vrcp.f32 %v4427_v58  ;;  %v6135_v52 = vmul.f32 -1.442695, %v4479_v59  ;;  %v3840_v44 = vadd.f32 %v9273_v54, %v334_v41  ;;  %v3842_v27 = vadd.f32 %v9277_v42, %v336_v22  ;;  %v340_v58 = vld [vmem:[#allocation8 + $0xf8] sm:$0xff]  ;;  %v343_v49 = vld [vmem:[#allocation8 + $0x110] sm:$0xff] }
 0x717   :  { %v7461_v43 = vpop.eup %7460  ;;  %7484 = vpow2.f32 %v6119_v4  ;;  %v4368_v62 = vadd.f32 %v4225_v8, %v3838_v24  ;;  %v4228_v16 = vpop.f32.mrf.mxu1  ;;  %v9440_v2 = vadd.f32 %v9279_v47, %v337_v32  ;;  %v4538_v59 = vadd.f32 1.0, %v7459_v63 }
 0x718   :  { %v9436_v14 = vpop.f32.mrf.mxu0  ;;  %v7463_v10 = vpop.eup %7462  ;;  %v4584_v53 = vmul.f32 %v7461_v43, %v4298_v34  ;;  %7486 = vrcp.f32 %v4537_v39  ;;  %v4227_v41 = vadd.f32 %v4226_v45, %v9334_v25  ;;  %v4301_v22 = vadd.f32 %v9348_v29, %v9389_v61  ;;  %v345_v29 = vld [vmem:[#allocation8 + $0x120] sm:$0xff] }
 0x719   :  { %10151 = vst [vmem:[#allocation75_spill] sm:$0xff] %v9436_v14  ;;  %v7465_v46 = vpop.eup %7464  ;;  %v4428_v54 = vadd.f32 1.0, %v7463_v10  ;;  %7488 = vpow2.f32 %v6135_v52  ;;  %v9443_v4 = vpop.f32.mrf.mxu1  ;;  %v6120_v32 = vmul.f32 -1.442695, %v4368_v62  ;;  %v4229_v39 = vadd.f32 %v4228_v16, %v9326_v23  ;;  %v346_v62 = vld [vmem:[#allocation8 + $0x128] sm:$0xff] }
 0x71a   :  { %v9445_v24 = vpop.f32.mrf.mxu0  ;;  %v7467_v42 = vpop.eup %7466  ;;  %v4600_v47 = vadd.f32 %v4584_v53, %v9397_v50  ;;  %v3848_v63 = vadd.f32 %v9283_v6, %v339_v7  ;;  %v9453_v34 = vadd.f32 %v9287_v20, %v340_v58  ;;  %v9456_v45 = vadd.f32 %v9289_v55, %v342_v56  ;;  %v348_v20 = vld [vmem:[#allocation8 + $0x138] sm:$0xff]  ;;  %v349_v7 = vld [vmem:[#allocation8 + $0x140] sm:$0xff] }
 0x71b   :  { %10152 = vst [vmem:[#allocation76_spill] sm:$0xff] %v9445_v24  ;;  %v7469_v8 = vpop.eup %7468  ;;  %7490 = vrcp.f32 %v4428_v54  ;;  %v4234_v52 = vpop.f32.mrf.mxu1  ;;  %v9461_v10 = vadd.f32 %v9293_v31, %v343_v49  ;;  %v4306_v16 = vadd.f32 %v9336_v3, %v9389_v61  ;;  %v4539_v55 = vadd.f32 1.0, %v7465_v46  ;;  %v351_v31 = vld [vmem:[#allocation8 + $0x150] sm:$0xff] }
 0x71c   :  { %v9458_v43 = vpop.f32.mrf.mxu0  ;;  %v7471_v50 = vpop.eup %7470  ;;  %7492 = vtanh.f32 %v4600_v47  ;;  %v4585_v6 = vmul.f32 %v7469_v8, %v4301_v22  ;;  %v4480_v56 = vadd.f32 %v4227_v41, %v3840_v44  ;;  %v4540_v24 = vadd.f32 1.0, %v7467_v42 }
 0x71d   :  { %10153 = vst [vmem:[#allocation77_spill] sm:$0xff] %v9458_v43  ;;  %7494 = vrcp.f32 %v4538_v59  ;;  %v4429_v58 = vadd.f32 1.0, %v7471_v50  ;;  %v4236_v53 = vpop.f32.mrf.mxu1  ;;  %v9467_v43 = vpop.eup %7472  ;;  %v4369_v14 = vadd.f32 %v4229_v39, %v3842_v27  ;;  %v9471_v47 = vadd.f32 %v9295_v12, %v345_v29 }
 0x71e   :  { %v9465_v54 = vpop.f32.mrf.mxu0  ;;  %v4601_v49 = vadd.f32 %v4585_v6, %v9409_v26  ;;  %7496 = vpow2.f32 %v6120_v32  ;;  %v9474_v59 = vadd.f32 %v9299_v40, %v346_v62  ;;  %v4235_v44 = vadd.f32 %v4234_v52, %v9326_v23 }
 0x71f   :  { %v7475_v3 = vpop.eup %7474  ;;  %7498 = vrcp.f32 %v4429_v58  ;;  %v4238_v46 = vpop.f32.mrf.mxu1  ;;  %v9480_v8 = vadd.f32 %v9301_v17, %v348_v20  ;;  %v9483_v26 = vadd.f32 %v9305_v18, %v349_v7  ;;  %v9486_v42 = vadd.f32 %v9307_v57, %v351_v31 }
 0x720   :  { %v9477_v41 = vpop.f32.mrf.mxu0  ;;  %v7477_v22 = vpop.eup %7476  ;;  %7500 = vtanh.f32 %v4601_v49  ;;  %v4586_v27 = vmul.f32 %v7475_v3, %v4306_v16  ;;  %v6136_v32 = vmul.f32 -1.442695, %v4480_v56  ;;  %v4309_v17 = vadd.f32 %v9343_v37, %v9389_v61 }
 0x721   :  { %v7479_v12 = vpop.eup %7478  ;;  %7502 = vrcp.f32 %v4539_v55  ;;  %v4430_v40 = vadd.f32 1.0, %v7477_v22  ;;  %v4240_v39 = vpop.f32.mrf.mxu1  ;;  %v6121_v18 = vmul.f32 -1.442695, %v4369_v14  ;;  %v9495_v16 = vadd.f32 %v9351_v38, %v9389_v61 }
 0x722   :  { %v9488_v52 = vpop.f32.mrf.mxu0  ;;  %v7481_v50 = vpop.eup %7480  ;;  %v4602_v29 = vadd.f32 %v4586_v27, %v9394_v19  ;;  %7504 = vrcp.f32 %v4540_v24  ;;  %v4370_v57 = vadd.f32 %v4235_v44, %v3848_v63  ;;  %v4239_v6 = vadd.f32 %v4238_v46, %v9326_v23 }
 0x723   :  { %v7483_v62 = vpop.eup %7482  ;;  %7506 = vrcp.f32 %v4430_v40  ;;  %v4244_v20 = vpop.f32.mrf.mxu1  ;;  %v4314_v37 = vadd.f32 %v9355_v11, %v9389_v61  ;;  %v4231_v14 = vadd.f32 %v9443_v4, %v9334_v25  ;;  %v4317_v38 = vadd.f32 %v9363_v1, %v9389_v61 }
 0x724   :  { %v9498_v7 = vpop.f32.mrf.mxu0  ;;  %v7485_v55 = vpop.eup %7484  ;;  %7508 = vtanh.f32 %v4602_v29  ;;  %v4587_v19 = vmul.f32 %v7483_v62, %v4309_v17  ;;  %v4541_v58 = vadd.f32 1.0, %v7479_v12  ;;  %v4542_v44 = vadd.f32 1.0, %v7481_v50  ;;  %v10154_v17 = vld [vmem:[#allocation36_spill] sm:$0xff] }
 0x725   :  { %v7487_v24 = vpop.eup %7486  ;;  %v4431_v63 = vadd.f32 1.0, %v7485_v55  ;;  %7510 = vpow2.f32 %v6136_v32  ;;  %v9506_v56 = vpop.f32.mrf.mxu1  ;;  %v4237_v11 = vadd.f32 %v4236_v53, %v9334_v25  ;;  %v4632_v4 = vsub.f32 1.0, %v9467_v43 }
 0x726   :  { %v9508_v31 = vpop.f32.mrf.mxu0  ;;  %v7489_v49 = vpop.eup %7488  ;;  %v4603_v3 = vadd.f32 %v4587_v19, %v9406_v0  ;;  %7512 = vpow2.f32 %v6121_v18  ;;  %v6122_v46 = vmul.f32 -1.442695, %v4370_v57  ;;  %v4371_v1 = vadd.f32 %v4239_v6, %v9456_v45 }
 0x727   :  { %7514 = vrcp.f32 %v4431_v63  ;;  %v4248_v22 = vpop.f32.mrf.mxu1  ;;  %v4543_v40 = vadd.f32 1.0, %v7489_v49  ;;  %v4481_v32 = vadd.f32 %v4231_v14, %v9440_v2  ;;  %v4245_v0 = vadd.f32 %v4244_v20, %v9326_v23 }
 0x728   :  { %v9514_v27 = vpop.f32.mrf.mxu0  ;;  %v7491_v12 = vpop.eup %7490  ;;  %7516 = vtanh.f32 %v4603_v3  ;;  %v4664_v53 = vmul.f32 %v9467_v43, %v10154_v17  ;;  %v4633_v29 = vsub.f32 1.0, %v7487_v24  ;;  %v4482_v55 = vadd.f32 %v4237_v11, %v9453_v34 }
 0x729   :  { %v7493_v50 = vpop.eup %7492  ;;  %v4588_v18 = vmul.f32 %v7491_v12, %v4314_v37  ;;  %7518 = vrcp.f32 %v4541_v58  ;;  %v4250_v62 = vpop.f32.mrf.mxu1  ;;  %v4241_v19 = vadd.f32 %v4240_v39, %v9334_v25  ;;  %v6123_v14 = vmul.f32 -1.442695, %v4371_v1  ;;  %v10155_v1 = vld [vmem:[#allocation47_spill] sm:$0xff] }
 0x72a   :  { %v9520_v57 = vpop.f32.mrf.mxu0  ;;  %v7495_v45 = vpop.eup %7494  ;;  %v4648_v6 = vmul.f32 %v7493_v50, %v4632_v4  ;;  %7520 = vrcp.f32 %v4542_v44  ;;  %v4372_v43 = vadd.f32 %v4245_v0, %v9471_v47  ;;  %v6137_v4 = vmul.f32 -1.442695, %v4481_v32 }
 0x72b   :  { %v7497_v2 = vpop.eup %7496  ;;  %v4604_v20 = vadd.f32 %v4588_v18, %v9421_v15  ;;  %7522 = vpow2.f32 %v6122_v46  ;;  %v4254_v63 = vpop.f32.mrf.mxu1  ;;  %v4325_v34 = vadd.f32 %v9359_v60, %v9389_v61  ;;  %v4249_v15 = vadd.f32 %v4248_v22, %v9326_v23 }
 0x72c   :  { %v9526_v37 = vpop.f32.mrf.mxu0  ;;  %v7499_v58 = vpop.eup %7498  ;;  %v4680_v49 = vadd.f32 %v4664_v53, %v4648_v6  ;;  %7524 = vrcp.f32 %v4543_v40  ;;  %v4432_v3 = vadd.f32 1.0, %v7497_v2  ;;  %v4665_v12 = vmul.f32 %v7487_v24, %v10155_v1 }
 0x72d   :  { %v7501_v44 = vpop.eup %7500  ;;  %7526 = vtanh.f32 %v4604_v20  ;;  %v4589_v39 = vmul.f32 %v7499_v58, %v4317_v38  ;;  %v9531_v11 = vpop.f32.mrf.mxu1  ;;  %v6138_v40 = vmul.f32 -1.442695, %v4482_v55  ;;  %v4483_v60 = vadd.f32 %v4241_v19, %v9461_v10  ;;  %v10156_v55 = vld [vmem:[#allocation48_spill] sm:$0xff] }
 0x72e   :  { %v9533_v46 = vpop.f32.mrf.mxu0  ;;  %v7503_v47 = vpop.eup %7502  ;;  %5800 = vst [vmem:[#allocation19] sm:$0xff] %v4680_v49  ;;  %v4649_v0 = vmul.f32 %v7501_v44, %v4633_v29  ;;  %7528 = vrcp.f32 %v4432_v3  ;;  %v6124_v38 = vmul.f32 -1.442695, %v4372_v43  ;;  %v4634_v6 = vsub.f32 1.0, %v7495_v45 }
 0x72f   :  { %v9536_v32 = vpop.eup %7504  ;;  %v4605_v50 = vadd.f32 %v4589_v39, %v9433_v51  ;;  %7530 = vpow2.f32 %v6123_v14  ;;  %v9540_v22 = vpop.f32.mrf.mxu1  ;;  %v4247_v24 = vadd.f32 %v9506_v56, %v9334_v25  ;;  %v4666_v2 = vmul.f32 %v7495_v45, %v10156_v55  ;;  %v354_v39 = vld [vmem:[#allocation8 + $0x168] sm:$0xff] }
 0x730   :  { %v9542_v17 = vpop.f32.mrf.mxu0  ;;  %v7507_v53 = vpop.eup %7506  ;;  %v4681_v18 = vadd.f32 %v4665_v12, %v4649_v0  ;;  %7532 = vpow2.f32 %v6137_v4  ;;  %v4373_v10 = vadd.f32 %v4249_v15, %v9480_v8  ;;  %v4251_v58 = vadd.f32 %v4250_v62, %v9334_v25 }
 0x731   :  { %v7509_v29 = vpop.eup %7508  ;;  %7534 = vtanh.f32 %v4605_v50  ;;  %v4590_v51 = vmul.f32 %v7507_v53, %v9495_v16  ;;  %v9549_v19 = vpop.f32.mrf.mxu1  ;;  %v4255_v56 = vadd.f32 %v4254_v63, %v9326_v23  ;;  %v4635_v3 = vsub.f32 1.0, %v7503_v47 }
 0x732   :  { %v9551_v20 = vpop.f32.mrf.mxu0  ;;  %v7511_v14 = vpop.eup %7510  ;;  %5801 = vst [vmem:[#allocation19 + $0x8] sm:$0xff] %v4681_v18  ;;  %v4650_v43 = vmul.f32 %v7509_v29, %v4634_v6  ;;  %7536 = vpow2.f32 %v6138_v40  ;;  %v6139_v4 = vmul.f32 -1.442695, %v4483_v60  ;;  %v4484_v12 = vadd.f32 %v4247_v24, %v9474_v59  ;;  %v10157_v40 = vld [vmem:[#allocation49_spill] sm:$0xff] }
 0x733   :  { %v7513_v49 = vpop.eup %7512  ;;  %v4606_v45 = vadd.f32 %v4590_v51, %v9416_v5  ;;  %7538 = vpow2.f32 %v6124_v38  ;;  %v9558_v8 = vpop.f32.mrf.mxu1  ;;  %v6125_v0 = vmul.f32 -1.442695, %v4373_v10  ;;  %v4667_v63 = vmul.f32 %v7503_v47, %v10157_v40 }
 0x734   :  { %v9556_v16 = vpop.f32.mrf.mxu0  ;;  %v7515_v44 = vpop.eup %7514  ;;  %v4682_v15 = vadd.f32 %v4666_v2, %v4650_v43  ;;  %v4433_v1 = vadd.f32 1.0, %v7513_v49  ;;  %v4374_v5 = vadd.f32 %v4255_v56, %v9486_v42  ;;  %v4544_v6 = vadd.f32 1.0, %v7511_v14  ;;  %v335_v2 = vld [vmem:[#allocation8 + $0xd0] sm:$0xff]  ;;  %v352_v43 = vld [vmem:[#allocation8 + $0x158] sm:$0xff] }
 0x735   :  { %v7517_v62 = vpop.eup %7516  ;;  %7540 = vtanh.f32 %v4606_v45  ;;  %v4591_v50 = vmul.f32 %v7515_v44, %v4325_v34  ;;  %v9565_v38 = vpop.f32.mrf.mxu1  ;;  %v4485_v29 = vadd.f32 %v4251_v58, %v9483_v26  ;;  %v3872_v24 = vadd.f32 %v9320_v13, %v354_v39  ;;  %v10158_v39 = vld [vmem:[#allocation50_spill] sm:$0xff] }
 0x736   :  { %v9563_v60 = vpop.f32.mrf.mxu0  ;;  %v7519_v53 = vpop.eup %7518  ;;  %5802 = vst [vmem:[#allocation19 + $0x10] sm:$0xff] %v4682_v15  ;;  %v4651_v18 = vmul.f32 %v7517_v62, %v4635_v3  ;;  %7542 = vrcp.f32 %v4433_v1  ;;  %v4330_v10 = vadd.f32 %v9371_v33, %v9389_v61  ;;  %v6140_v14 = vmul.f32 -1.442695, %v4484_v12  ;;  %v10159_v12 = vld [vmem:[#allocation42_spill] sm:$0xff] }
 0x737   :  { %v9568_v59 = vpop.eup %7520  ;;  %v4607_v47 = vadd.f32 %v4591_v50, %v9428_v36  ;;  %7544 = vpow2.f32 %v6125_v0  ;;  %v9574_v42 = vpop.f32.mrf.mxu1  ;;  %v4636_v13 = vsub.f32 1.0, %v9536_v32  ;;  %v6126_v58 = vmul.f32 -1.442695, %v4374_v5  ;;  %v10160_v50 = vld [vmem:[#allocation66_spill] sm:$0xff] }
 0x738   :  { %v9572_v34 = vpop.f32.mrf.mxu0  ;;  %v7523_v55 = vpop.eup %7522  ;;  %v4683_v51 = vadd.f32 %v4667_v63, %v4651_v18  ;;  %7546 = vpow2.f32 %v6139_v4  ;;  %v6141_v45 = vmul.f32 -1.442695, %v4485_v29  ;;  %v4257_v33 = vadd.f32 %v9531_v11, %v9334_v25 }
 0x739   :  { %v9578_v26 = vpop.eup %7524  ;;  %7548 = vtanh.f32 %v4607_v47  ;;  %v4434_v36 = vadd.f32 1.0, %v7523_v55  ;;  %v9583_v49 = vpop.f32.mrf.mxu1  ;;  %v4259_v4 = vadd.f32 %v9540_v22, %v9326_v23  ;;  %v3943_v15 = vadd.f32 %v10158_v39, %v335_v2  ;;  %v355_v2 = vld [vmem:[#allocation8 + $0x170] sm:$0xff] }
 0x73a   :  { %v9581_v56 = vpop.f32.mrf.mxu0  ;;  %v7527_v3 = vpop.eup %7526  ;;  %5803 = vst [vmem:[#allocation19 + $0x18] sm:$0xff] %v4683_v51  ;;  %7550 = vrcp.f32 %v4544_v6  ;;  %v4668_v0 = vmul.f32 %v9536_v32, %v10159_v12  ;;  %v3870_v5 = vadd.f32 %v10160_v50, %v352_v43  ;;  %v4637_v22 = vsub.f32 1.0, %v7519_v53  ;;  %v10164_v50 = vld [vmem:[#allocation73_spill] sm:$0xff] }
 0x73b   :  { %v7529_v44 = vpop.eup %7528  ;;  %v4652_v1 = vmul.f32 %v7527_v3, %v4636_v13  ;;  %7552 = vrcp.f32 %v4434_v36  ;;  %v9594_v40 = vpop.f32.mrf.mxu1  ;;  %v4375_v11 = vadd.f32 %v4259_v4, %v3872_v24  ;;  %v4261_v43 = vadd.f32 %v9549_v19, %v9334_v25 }
 0x73c   :  { %v9592_v62 = vpop.f32.mrf.mxu0  ;;  %v7531_v63 = vpop.eup %7530  ;;  %v4592_v18 = vmul.f32 %v7529_v44, %v4330_v10  ;;  %7554 = vpow2.f32 %v6140_v14  ;;  %v4486_v13 = vadd.f32 %v4257_v33, %v3870_v5  ;;  %v10161_v14 = vld [vmem:[#allocation43_spill] sm:$0xff]  ;;  %v4638_v12 = vsub.f32 1.0, %v9568_v59 }
 0x73d   :  { %v7533_v6 = vpop.eup %7532  ;;  %v4684_v23 = vadd.f32 %v4668_v0, %v4652_v1  ;;  %v4435_v29 = vadd.f32 1.0, %v7531_v63  ;;  %7556 = vpow2.f32 %v6126_v58  ;;  %v9599_v55 = vpop.f32.mrf.mxu1  ;;  %v6127_v36 = vmul.f32 -1.442695, %v4375_v11  ;;  %v10165_v11 = vld [vmem:[#allocation53_spill] sm:$0xff] }
 0x73e   :  { %v9597_v47 = vpop.f32.mrf.mxu0  ;;  %v7535_v32 = vpop.eup %7534  ;;  %v4608_v51 = vadd.f32 %v4592_v18, %v3943_v15  ;;  %7558 = vpow2.f32 %v6141_v45  ;;  %v4669_v24 = vmul.f32 %v7519_v53, %v10161_v14  ;;  %v4545_v44 = vadd.f32 1.0, %v7533_v6  ;;  %v338_v15 = vld [vmem:[#allocation8 + $0xe8] sm:$0xff]  ;;  %v10162_v45 = vld [vmem:[#allocation69_spill] sm:$0xff] }
 0x73f   :  { %v7537_v3 = vpop.eup %7536  ;;  %5804 = vst [vmem:[#allocation19 + $0x20] sm:$0xff] %v4684_v23  ;;  %v4653_v10 = vmul.f32 %v7535_v32, %v4637_v22  ;;  %7560 = vrcp.f32 %v4435_v29  ;;  %v9604_v58 = vpop.f32.mrf.mxu1  ;;  %v3874_v33 = vadd.f32 %v10162_v45, %v355_v2  ;;  %v4333_v25 = vadd.f32 %v10164_v50, %v9389_v61  ;;  %v10167_v32 = vld [vmem:[#allocation64_spill] sm:$0xff] }
 0x740   :  { %v7539_v4 = vpop.eup %7538  ;;  %7562 = vtanh.f32 %v4608_v51  ;;  %v9606_v39 = vpop.f32.mrf.mxu0  ;;  %v6142_v19 = vmul.f32 -1.442695, %v4486_v13  ;;  %v4670_v6 = vmul.f32 %v9568_v59, %v10165_v11  ;;  %v3946_v2 = vadd.f32 %v10167_v32, %v338_v15 }
 0x741   :  { %v4685_v1 = vadd.f32 %v4669_v24, %v4653_v10  ;;  %v4436_v0 = vadd.f32 1.0, %v7539_v4  ;;  %v9610_v63 = vpop.f32.mrf.mxu1  ;;  %7564 = vpow2.f32 %v6127_v36  ;;  %v4487_v23 = vadd.f32 %v4261_v43, %v3874_v33  ;;  %v10170_v43 = vld [vmem:[#allocation71_spill] sm:$0xff] }
 0x742   :  { %10163 = vst [vmem:[#allocation36_spill] sm:$0xff] %v9610_v63  ;;  %v7541_v53 = vpop.eup %7540  ;;  %v9619_v10 = vpop.f32.mrf.mxu0  ;;  %v4639_v36 = vsub.f32 1.0, %v9578_v26  ;;  %v4546_v24 = vadd.f32 1.0, %v7537_v3  ;;  %v4338_v33 = vadd.f32 %v10170_v43, %v9389_v61  ;;  %v10194_v63 = vld [vmem:[#allocation77_spill] sm:$0xff] }
 0x743   :  { %v7543_v5 = vpop.eup %7542  ;;  %5805 = vst [vmem:[#allocation19 + $0x28] sm:$0xff] %v4685_v1  ;;  %v4654_v18 = vmul.f32 %v7541_v53, %v4638_v12  ;;  %7566 = vrcp.f32 %v4436_v0  ;;  %v9616_v22 = vpop.f32.mrf.mxu1  ;;  %10168 = vst [vmem:[#allocation48_spill] sm:$0xff] %v9619_v10  ;;  %v341_v1 = vld [vmem:[#allocation8 + $0x100] sm:$0xff]  ;;  %v344_v0 = vld [vmem:[#allocation8 + $0x118] sm:$0xff] }
 0x744   :  { %10166 = vst [vmem:[#allocation47_spill] sm:$0xff] %v9616_v22  ;;  %v7545_v29 = vpop.eup %7544  ;;  %v4593_v51 = vmul.f32 %v7543_v5, %v4333_v25  ;;  %7568 = vrcp.f32 %v4545_v44  ;;  %v10171_v53 = vld [vmem:[#allocation40_spill] sm:$0xff]  ;;  %v6143_v25 = vmul.f32 -1.442695, %v4487_v23  ;;  %v9630_v11 = vpop.f32.mrf.mxu0 }
 0x745   :  { %v7547_v14 = vpop.eup %7546  ;;  %v4686_v13 = vadd.f32 %v4670_v6, %v4654_v18  ;;  %v4437_v4 = vadd.f32 1.0, %v7545_v29  ;;  %v9622_v45 = vpop.f32.mrf.mxu1  ;;  %7570 = vpow2.f32 %v6142_v19  ;;  %v4671_v50 = vmul.f32 %v9578_v26, %v10171_v53  ;;  %10173 = vst [vmem:[#allocation42_spill] sm:$0xff] %v9630_v11  ;;  %v10174_v29 = vld [vmem:[#allocation39_spill] sm:$0xff]  ;;  %v356_v53 = vld [vmem:[#allocation8 + $0x178] sm:$0xff]  ;;  %v10184_v22 = vld [vmem:[#allocation44_spill] sm:$0xff] }
 0x746   :  { %10169 = vst [vmem:[#allocation49_spill] sm:$0xff] %v9622_v45  ;;  %v7549_v59 = vpop.eup %7548  ;;  %v4609_v12 = vadd.f32 %v4593_v51, %v3946_v2  ;;  %v4547_v18 = vadd.f32 1.0, %v7547_v14  ;;  %v3951_v32 = vadd.f32 %v10174_v29, %v341_v1  ;;  %v6168_v26 = vld [vmem:[%s9984_s11 + $0x3] sm:$0x7]  ;;  %v10177_v14 = vld [vmem:[#allocation72_spill] sm:$0xff]  ;;  %v9643_v29 = vpop.f32.mrf.mxu0  ;;  %s8018_s11 = smov [#allocation19]  }
 0x747   :  { %v7551_v15 = vpop.eup %7550  ;;  %5806 = vst [vmem:[#allocation19 + $0x30] sm:$0xff] %v4686_v13  ;;  %v4655_v44 = vmul.f32 %v7549_v59, %v4639_v36  ;;  %7572 = vrcp.f32 %v4437_v4  ;;  %v9628_v3 = vpop.f32.mrf.mxu1  ;;  %v10176_v13 = vld [vmem:[#allocation63_spill] sm:$0xff]  ;;  %v4341_v43 = vadd.f32 %v10177_v14, %v9389_v61  ;;  %10179 = vst [vmem:[#allocation69_spill] sm:$0xff] %v9643_v29  ;;  %v359_v29 = vld [vmem:[#allocation8 + $0x188] sm:$0xff]  ;;  %s5838_s19 = sshll.u32 %s8018_s11, 4  ;;  %s5839_s19 = int_to_ptr.vmem [resolvable:$true] %s5838_s19 }
 0x748   :  { %10172 = vst [vmem:[#allocation50_spill] sm:$0xff] %v9628_v3  ;;  %v7553_v5 = vpop.eup %7552  ;;  %7574 = vtanh.f32 %v4609_v12  ;;  %v3954_v36 = vadd.f32 %v10176_v13, %v344_v0  ;;  %v353_v59 = vld [vmem:[#allocation8 + $0x160] sm:$0xff]  ;;  %v10180_v0 = vld [vmem:[#allocation34_spill] sm:$0xff]  ;;  %s7966_s20 = scalar_lea.vmem %s5839_s19, 4096  ;;  %p7971_p9 = scmp.lt.s32.totalorder %s5839_s19, %s5839_s19 }
 0x749   :  { %v7555_v6 = vpop.eup %7554  ;;  %v4687_v19 = vadd.f32 %v4671_v50, %v4655_v44  ;;  %v4594_v2 = vmul.f32 %v7553_v5, %v4338_v33  ;;  %7576 = vrcp.f32 %v4546_v24  ;;  %v9633_v51 = vpop.f32.mrf.mxu1  ;;  %v347_v44 = vld [vmem:[#allocation8 + $0x130] sm:$0xff]  ;;  %v4640_v50 = vsub.f32 1.0, %v7551_v15  ;;  %v10185_v45 = vld [vmem:[#allocation67_spill] sm:$0xff]  ;;  %p7967_p8 = scmp.ne.s32.totalorder %s5839_s19, %s7966_s20  ;;  %p7972_p10 = scmp.lt.s32.totalorder %s7966_s20, %s7966_s20 }
 0x74a   :  { %10175 = vst [vmem:[#allocation66_spill] sm:$0xff] %v9633_v51  ;;  %v7557_v23 = vpop.eup %7556  ;;  %7578 = vpow2.f32 %v6143_v25  ;;  %v4548_v5 = vadd.f32 1.0, %v7555_v6  ;;  %v9646_v13 = vrot.slane %v6168_v26, %v10180_v0  ;;  %v9651_v25 = vrot.slane %v6168_v26, %v10100_v35 }
 0x74b   :  { %v7559_v4 = vpop.eup %7558  ;;  %5807 = vst [vmem:[#allocation19 + $0x38] sm:$0xff] %v4687_v19  ;;  %v4610_v12 = vadd.f32 %v4594_v2, %v3951_v32  ;;  %v4438_v1 = vadd.f32 1.0, %v7557_v23  ;;  %v9641_v33 = vpop.f32.mrf.mxu1  ;;  %7580 = vrcp.f32 %v4547_v18  ;;  %v10182_v32 = vld [vmem:[#allocation38_spill] sm:$0xff]  ;;  %v10183_v23 = vld [vmem:[#allocation65_spill] sm:$0xff]  ;;  %v350_v18 = vld [vmem:[#allocation8 + $0x148] sm:$0xff]  ;;  %v4672_v51 = vmul.f32 %v7551_v15, %v10184_v22  ;;  %p7973_p11 = por %p7972_p10, %p7971_p9 }
 0x74c   :  { %10178 = vst [vmem:[#allocation43_spill] sm:$0xff] %v9641_v33  ;;  %v7561_v24 = vpop.eup %7560  ;;  %v9654_v2 = vrot.slane %v6168_v26, %v10182_v32  ;;  %v9657_v33 = vadd.f32 %v10183_v23, %v353_v59  ;;  %v4346_v35 = vadd.f32 %v9391_v30, %v9389_v61  ;;  %v4549_v22 = vadd.f32 1.0, %v7559_v4  ;;  %v10191_v4 = vld [vmem:[#allocation74_spill] sm:$0xff] }
 0x74d   :  { %v7563_v3 = vpop.eup %7562  ;;  %7582 = vtanh.f32 %v4610_v12  ;;  %v4595_v14 = vmul.f32 %v7561_v24, %v4341_v43  ;;  %v9648_v19 = vpop.f32.mrf.mxu1  ;;  %v3959_v12 = vadd.f32 %v10185_v45, %v347_v44  ;;  %v10186_v43 = vld [vmem:[#allocation68_spill] sm:$0xff]  ;;  %v10189_v44 = vld [vmem:[#allocation70_spill] sm:$0xff]  ;;  %v9673_v30 = vadd.f32 %v9384_v9, %v9389_v61  ;;  %p7974_p12 = pnand %p7973_p11, %p7967_p8 }
 0x74e   :  { %10181 = vst [vmem:[#allocation73_spill] sm:$0xff] %v9648_v19  ;;  %v4656_v6 = vmul.f32 %v7563_v3, %v4640_v50  ;;  %7584 = vrcp.f32 %v4438_v1  ;;  %v7565_v0 = vpop.eup %7564  ;;  %v9662_v24 = vadd.f32 %v10186_v43, %v356_v53  ;;  %v358_v19 = vld [vmem:[#allocation8 + $0x180] sm:$0xff]  ;;  %v361_v3 = vld [vmem:[#allocation8 + $0x198] sm:$0xff]  ;;  %v9668_v1 = vpop.f32.mrf.mxu0  ;;  %v3962_v53 = vadd.f32 %v10189_v44, %v350_v18 }
 0x74f   :  { %v4611_v26 = vadd.f32 %v4595_v14, %v3954_v36  ;;  %v9666_v32 = vpop.f32.mrf.mxu1  ;;  %v362_v50 = vld [vmem:[#allocation8 + $0x1a0] sm:$0xff]  ;;  %7586 = vrcp.f32 %v4548_v5  ;;  %v4439_v15 = vadd.f32 1.0, %v7565_v0  ;;  %10188 = vst [vmem:[#allocation64_spill] sm:$0xff] %v9668_v1  ;;  %v364_v36 = vld [vmem:[#allocation8 + $0x1b0] sm:$0xff]  ;;  %v4349_v5 = vadd.f32 %v10191_v4, %v9389_v61  ;;  %v365_v18 = vld [vmem:[#allocation8 + $0x1b8] sm:$0xff] }
 0x750   :  { %10187 = vst [vmem:[#allocation53_spill] sm:$0xff] %v9666_v32  ;;  %v7567_v59 = vpop.eup %7566  ;;  %v4688_v23 = vadd.f32 %v4672_v51, %v4656_v6  ;;  %v9679_v51 = vadd.f32 %v9402_v28, %v9389_v61  ;;  %v4900_v6 = vadd.f32 %v9418_v21, %v358_v19  ;;  %v367_v0 = vld [vmem:[#allocation8 + $0x1c8] sm:$0xff]  ;;  %v4902_v44 = vadd.f32 %v9425_v48, %v359_v29  ;;  %v368_v61 = vld [vmem:[#allocation8 + $0x1d0] sm:$0xff]  ;;  %v370_v21 = vld [vmem:[#allocation8 + $0x1e0] sm:$0xff]  ;;  %v9690_v19 = vpop.f32.mrf.mxu0 }
 0x751   :  { %v7569_v45 = vpop.eup %7568  ;;  %7588 = vtanh.f32 %v4611_v26  ;;  %v4596_v14 = vmul.f32 %v7567_v59, %v4346_v35  ;;  %v9675_v43 = vpop.f32.mrf.mxu1  ;;  %v10192_v26 = vld [vmem:[#allocation75_spill] sm:$0xff]  ;;  %v10193_v59 = vld [vmem:[#allocation76_spill] sm:$0xff]  ;;  %v9688_v10 = vadd.f32 %v10194_v63, %v364_v36  ;;  %v9694_v48 = vadd.f32 %v9465_v54, %v365_v18  ;;  %v10195_v36 = vld [vmem:[#allocation45_spill] sm:$0xff] }
 0x752   :  { %10190 = vst [vmem:[#allocation71_spill] sm:$0xff] %v9675_v43  ;;  %5808 = vst [vmem:[#allocation19 + $0x40] sm:$0xff] %v4688_v23  ;;  %7590 = vrcp.f32 %v4439_v15  ;;  %v7571_v9 = vpop.eup %7570  ;;  %v4904_v35 = vadd.f32 %v10192_v26, %v361_v3  ;;  %v4906_v32 = vadd.f32 %v10193_v59, %v362_v50  ;;  %v4641_v11 = vsub.f32 1.0, %v7569_v45  ;;  %v371_v4 = vld [vmem:[#allocation8 + $0x1e8] sm:$0xff] }
 0x753   :  { %v4612_v43 = vadd.f32 %v4596_v14, %v3959_v12  ;;  %v5288_v1 = vpop.f32.mrf.mxu1  ;;  %7592 = vrcp.f32 %v4549_v22  ;;  %v9697_v29 = vadd.f32 %v9477_v41, %v367_v0  ;;  %v4673_v14 = vmul.f32 %v7569_v45, %v10195_v36  ;;  %v373_v22 = vld [vmem:[#allocation8 + $0x1f8] sm:$0xff] }
 0x754   :  { %v7573_v28 = vpop.eup %7572  ;;  %v5289_v23 = vadd.f32 %v5288_v1, %v9646_v13  ;;  %v9702_v1 = vadd.f32 %v9488_v52, %v368_v61  ;;  %v9705_v54 = vadd.f32 %v9498_v7, %v370_v21  ;;  %v4550_v18 = vadd.f32 1.0, %v7571_v9  ;;  %v10196_v36 = vld [vmem:[#allocation46_spill] sm:$0xff] }
 0x755   :  { %v7575_v15 = vpop.eup %7574  ;;  %7594 = vtanh.f32 %v4612_v43  ;;  %v4597_v12 = vmul.f32 %v7573_v28, %v4349_v5  ;;  %v5290_v3 = vpop.f32.mrf.mxu1  ;;  %v374_v28 = vld [vmem:[#allocation8 + $0x200] sm:$0xff]  ;;  %v9711_v52 = vadd.f32 %v9508_v31, %v371_v4  ;;  %v9714_v7 = vadd.f32 %v9514_v27, %v373_v22 }
 0x756   :  { %v7577_v50 = vpop.eup %7576  ;;  %v4657_v63 = vmul.f32 %v7575_v15, %v4641_v11  ;;  %v5464_v26 = vadd.f32 %v5289_v23, %v4900_v6  ;;  %v5291_v59 = vadd.f32 %v5290_v3, %v9654_v2  ;;  %v9707_v11 = vpop.f32.mrf.mxu0 }
 0x757   :  { %v4613_v41 = vadd.f32 %v4597_v12, %v3962_v53  ;;  %v5292_v43 = vpop.f32.mrf.mxu1  ;;  %v7579_v5 = vpop.eup %7578  ;;  %v4642_v3 = vsub.f32 1.0, %v7577_v50 }
 0x758   :  { %v4689_v0 = vadd.f32 %v4673_v14, %v4657_v63  ;;  %v6193_v45 = vmul.f32 -1.442695, %v5464_v26  ;;  %v5576_v15 = vadd.f32 %v5291_v59, %v4902_v44  ;;  %v5293_v6 = vadd.f32 %v5292_v43, %v9646_v13  ;;  %v7581_v23 = vpop.eup %7580  ;;  %v9722_v22 = vpop.f32.mrf.mxu0 }
 0x759   :  { %7596 = vtanh.f32 %v4613_v41  ;;  %v5294_v53 = vpop.f32.mrf.mxu1  ;;  %v4674_v14 = vmul.f32 %v7577_v50, %v10196_v36  ;;  %v9719_v26 = vadd.f32 %v9520_v57, %v374_v28  ;;  %v4551_v31 = vadd.f32 1.0, %v7579_v5 }
 0x75a   :  { %v7583_v9 = vpop.eup %7582  ;;  %5809 = vst [vmem:[#allocation19 + $0x48] sm:$0xff] %v4689_v0  ;;  %7598 = vpow2.f32 %v6193_v45  ;;  %v6209_v61 = vmul.f32 -1.442695, %v5576_v15  ;;  %v5465_v21 = vadd.f32 %v5293_v6, %v4904_v35  ;;  %v5295_v12 = vadd.f32 %v5294_v53, %v9654_v2  ;;  %v10197_v6 = vld [vmem:[#allocation57_spill] sm:$0xff] }
 0x75b   :  { %v7585_v44 = vpop.eup %7584  ;;  %v4658_v63 = vmul.f32 %v7583_v9, %v4642_v3  ;;  %v5298_v4 = vpop.f32.mrf.mxu1  ;;  %7600 = vrcp.f32 %v4550_v18  ;;  %v4643_v0 = vsub.f32 1.0, %v7581_v23  ;;  %v4675_v57 = vmul.f32 %v7581_v23, %v10197_v6  ;;  %v376_v3 = vld [vmem:[#allocation8 + $0x210] sm:$0xff] }
 0x75c   :  { %v4598_v27 = vmul.f32 %v7585_v44, %v9673_v30  ;;  %v6194_v59 = vmul.f32 -1.442695, %v5465_v21  ;;  %v5577_v41 = vadd.f32 %v5295_v12, %v4906_v32  ;;  %v7587_v43 = vpop.eup %7586  ;;  %7602 = vpow2.f32 %v6209_v61  ;;  %v9730_v12 = vpop.f32.mrf.mxu0 }
 0x75d   :  { %v4690_v35 = vadd.f32 %v4674_v14, %v4658_v63  ;;  %v5299_v45 = vadd.f32 %v5298_v4, %v9646_v13  ;;  %v5300_v15 = vpop.f32.mrf.mxu1  ;;  %v4644_v61 = vsub.f32 1.0, %v7587_v43  ;;  %v377_v63 = vld [vmem:[#allocation8 + $0x218] sm:$0xff]  ;;  %v9735_v4 = vadd.f32 %v9526_v37, %v376_v3 }
 0x75e   :  { %v7589_v50 = vpop.eup %7588  ;;  %v4614_v5 = vadd.f32 %v4598_v27, %v9657_v33  ;;  %7604 = vpow2.f32 %v6194_v59  ;;  %v6210_v28 = vmul.f32 -1.442695, %v5577_v41  ;;  %v5301_v53 = vadd.f32 %v5300_v15, %v9654_v2  ;;  %v380_v15 = vld [vmem:[#allocation8 + $0x230] sm:$0xff]  ;;  %v9744_v37 = vpop.f32.mrf.mxu0 }
 0x75f   :  { %v7591_v30 = vpop.eup %7590  ;;  %5810 = vst [vmem:[#allocation19 + $0x50] sm:$0xff] %v4690_v35  ;;  %v4659_v18 = vmul.f32 %v7589_v50, %v4643_v0  ;;  %7606 = vrcp.f32 %v4551_v31  ;;  %v5466_v32 = vadd.f32 %v5299_v45, %v9688_v10  ;;  %v5302_v9 = vpop.f32.mrf.mxu1  ;;  %v10198_v35 = vld [vmem:[#allocation58_spill] sm:$0xff]  ;;  %v379_v45 = vld [vmem:[#allocation8 + $0x228] sm:$0xff] }
 0x760   :  { %7608 = vtanh.f32 %v4614_v5  ;;  %v4599_v21 = vmul.f32 %v7591_v30, %v9679_v51  ;;  %v5303_v33 = vadd.f32 %v5302_v9, %v9646_v13  ;;  %v7593_v23 = vpop.eup %7592  ;;  %v5578_v14 = vadd.f32 %v5301_v53, %v9694_v48  ;;  %v382_v5 = vld [vmem:[#allocation8 + $0x240] sm:$0xff] }
 0x761   :  { %v4691_v44 = vadd.f32 %v4675_v57, %v4659_v18  ;;  %7610 = vpow2.f32 %v6210_v28  ;;  %v6195_v36 = vmul.f32 -1.442695, %v5466_v32  ;;  %v5304_v31 = vpop.f32.mrf.mxu1  ;;  %v4676_v0 = vmul.f32 %v7587_v43, %v10198_v35 }
 0x762   :  { %v7595_v10 = vpop.eup %7594  ;;  %v4615_v27 = vadd.f32 %v4599_v21, %v9662_v24  ;;  %v5467_v51 = vadd.f32 %v5303_v33, %v9697_v29  ;;  %v5305_v59 = vadd.f32 %v5304_v31, %v9654_v2  ;;  %v6211_v50 = vmul.f32 -1.442695, %v5578_v14  ;;  %v10199_v21 = vld [vmem:[#allocation59_spill] sm:$0xff]  ;;  %v360_v14 = vld [vmem:[#allocation8 + $0x190] sm:$0xff] }
 0x763   :  { %5811 = vst [vmem:[#allocation19 + $0x58] sm:$0xff] %v4691_v44  ;;  %v4660_v41 = vmul.f32 %v7595_v10, %v4644_v61  ;;  %7612 = vpow2.f32 %v6195_v36  ;;  %v5308_v48 = vpop.f32.mrf.mxu1  ;;  %v4645_v6 = vsub.f32 1.0, %v7593_v23  ;;  %v9742_v57 = vadd.f32 %v9533_v46, %v377_v63  ;;  %v366_v46 = vld [vmem:[#allocation8 + $0x1c0] sm:$0xff]  ;;  %v9760_v10 = vpop.f32.mrf.mxu0 }
 0x764   :  { %7614 = vtanh.f32 %v4615_v27  ;;  %v6196_v24 = vmul.f32 -1.442695, %v5467_v51  ;;  %v5579_v28 = vadd.f32 %v5305_v59, %v9702_v1  ;;  %v5309_v43 = vadd.f32 %v5308_v48, %v9646_v13  ;;  %v383_v1 = vld [vmem:[#allocation8 + $0x248] sm:$0xff] }
 0x765   :  { %v4692_v29 = vadd.f32 %v4676_v0, %v4660_v41  ;;  %7616 = vpow2.f32 %v6211_v50  ;;  %v5310_v30 = vpop.f32.mrf.mxu1  ;;  %v9749_v3 = vadd.f32 %v9542_v17, %v379_v45  ;;  %v9752_v32 = vadd.f32 %v9551_v20, %v380_v15  ;;  %v385_v20 = vld [vmem:[#allocation8 + $0x258] sm:$0xff] }
 0x766   :  { %v7597_v18 = vpop.eup %7596  ;;  %7618 = vpow2.f32 %v6196_v24  ;;  %v5311_v53 = vadd.f32 %v5310_v30, %v9654_v2  ;;  %v4677_v33 = vmul.f32 %v7593_v23, %v10199_v21  ;;  %v6212_v44 = vmul.f32 -1.442695, %v5579_v28  ;;  %v386_v21 = vld [vmem:[#allocation8 + $0x260] sm:$0xff] }
 0x767   :  { %v7599_v9 = vpop.eup %7598  ;;  %5812 = vst [vmem:[#allocation19 + $0x60] sm:$0xff] %v4692_v29  ;;  %v4661_v61 = vmul.f32 %v7597_v18, %v4645_v6  ;;  %v5468_v63 = vadd.f32 %v5309_v43, %v9705_v54  ;;  %v5312_v36 = vpop.f32.mrf.mxu1  ;;  %v9758_v17 = vadd.f32 %v9556_v16, %v382_v5  ;;  %v9765_v23 = vadd.f32 %v9558_v8, %v366_v46  ;;  %v10200_v18 = vld [vmem:[#allocation60_spill] sm:$0xff] }
 0x768   :  { %v5528_v31 = vadd.f32 1.0, %v7599_v9  ;;  %v5580_v27 = vadd.f32 %v5311_v53, %v9711_v52  ;;  %v5313_v51 = vadd.f32 %v5312_v36, %v9646_v13  ;;  %v7601_v59 = vpop.eup %7600  ;;  %7620 = vpow2.f32 %v6212_v44  ;;  %v5401_v5 = vpop.f32.mrf.mxu0 }
 0x769   :  { %v4693_v41 = vadd.f32 %v4677_v33, %v4661_v61  ;;  %v6197_v54 = vmul.f32 -1.442695, %v5468_v63  ;;  %v5314_v35 = vpop.f32.mrf.mxu1  ;;  %v7603_v0 = vpop.eup %7602  ;;  %v9768_v16 = vadd.f32 %v9563_v60, %v383_v1  ;;  %v9772_v52 = vadd.f32 %v9565_v38, %v360_v14  ;;  %v369_v60 = vld [vmem:[#allocation8 + $0x1d8] sm:$0xff] }
 0x76a   :  { %7622 = vrcp.f32 %v5528_v31  ;;  %v6213_v45 = vmul.f32 -1.442695, %v5580_v27  ;;  %v5469_v15 = vadd.f32 %v5313_v51, %v9714_v7  ;;  %v9775_v48 = vadd.f32 %v9572_v34, %v385_v20  ;;  %v363_v27 = vld [vmem:[#allocation8 + $0x1a8] sm:$0xff] }
 0x76b   :  { %v7605_v50 = vpop.eup %7604  ;;  %5813 = vst [vmem:[#allocation19 + $0x68] sm:$0xff] %v4693_v41  ;;  %7624 = vpow2.f32 %v6197_v54  ;;  %v5315_v8 = vadd.f32 %v5314_v35, %v9654_v2  ;;  %v5318_v6 = vpop.f32.mrf.mxu1  ;;  %v4646_v29 = vsub.f32 1.0, %v7601_v59  ;;  %v4678_v46 = vmul.f32 %v7601_v59, %v10200_v18 }
 0x76c   :  { %v7607_v24 = vpop.eup %7606  ;;  %v5529_v28 = vadd.f32 1.0, %v7605_v50  ;;  %v6198_v43 = vmul.f32 -1.442695, %v5469_v15  ;;  %v5319_v7 = vadd.f32 %v5318_v6, %v9646_v13  ;;  %v5640_v38 = vadd.f32 1.0, %v7603_v0  ;;  %v10201_v50 = vld [vmem:[#allocation41_spill] sm:$0xff] }
 0x76d   :  { %v7609_v30 = vpop.eup %7608  ;;  %7626 = vpow2.f32 %v6213_v45  ;;  %v5581_v34 = vadd.f32 %v5315_v8, %v9719_v26  ;;  %v5320_v53 = vpop.f32.mrf.mxu1  ;;  %v4647_v44 = vsub.f32 1.0, %v7607_v24  ;;  %v9784_v63 = vadd.f32 %v9574_v42, %v369_v60  ;;  %v388_v60 = vld [vmem:[#allocation8 + $0x270] sm:$0xff] }
 0x76e   :  { %v7611_v9 = vpop.eup %7610  ;;  %v4662_v61 = vmul.f32 %v7609_v30, %v4646_v29  ;;  %7628 = vrcp.f32 %v5529_v28  ;;  %v5470_v33 = vadd.f32 %v5319_v7, %v9735_v4  ;;  %v5321_v1 = vadd.f32 %v5320_v53, %v9654_v2  ;;  %v9786_v26 = vpop.f32.mrf.mxu0  ;;  %v378_v30 = vld [vmem:[#allocation8 + $0x220] sm:$0xff] }
 0x76f   :  { %7630 = vpow2.f32 %v6198_v43  ;;  %v6214_v36 = vmul.f32 -1.442695, %v5581_v34  ;;  %v5322_v14 = vpop.f32.mrf.mxu1  ;;  %v9791_v54 = vadd.f32 %v9581_v56, %v386_v21  ;;  %v5641_v42 = vadd.f32 1.0, %v7611_v9 }
 0x770   :  { %v7613_v20 = vpop.eup %7612  ;;  %v4694_v31 = vadd.f32 %v4678_v46, %v4662_v61  ;;  %v6199_v51 = vmul.f32 -1.442695, %v5470_v33  ;;  %v5582_v59 = vadd.f32 %v5321_v1, %v9742_v57  ;;  %v5323_v41 = vadd.f32 %v5322_v14, %v9646_v13  ;;  %v5404_v18 = vpop.f32.mrf.mxu0 }
 0x771   :  { %v7615_v4 = vpop.eup %7614  ;;  %7632 = vrcp.f32 %v5640_v38  ;;  %v5530_v35 = vadd.f32 1.0, %v7613_v20  ;;  %v5324_v0 = vpop.f32.mrf.mxu1  ;;  %v4679_v8 = vmul.f32 %v7607_v24, %v10201_v50  ;;  %v9796_v57 = vadd.f32 %v9583_v49, %v363_v27  ;;  %v389_v24 = vld [vmem:[#allocation8 + $0x278] sm:$0xff]  ;;  %v391_v27 = vld [vmem:[#allocation8 + $0x288] sm:$0xff] }
 0x772   :  { %v7617_v45 = vpop.eup %7616  ;;  %5814 = vst [vmem:[#allocation19 + $0x70] sm:$0xff] %v4694_v31  ;;  %v4663_v15 = vmul.f32 %v7615_v4, %v4647_v44  ;;  %7634 = vpow2.f32 %v6214_v36  ;;  %v5471_v6 = vadd.f32 %v5323_v41, %v9749_v3  ;;  %v6215_v56 = vmul.f32 -1.442695, %v5582_v59  ;;  %v381_v41 = vld [vmem:[#allocation8 + $0x238] sm:$0xff] }
 0x773   :  { %v7619_v29 = vpop.eup %7618  ;;  %7636 = vrcp.f32 %v5530_v35  ;;  %v5325_v28 = vadd.f32 %v5324_v0, %v9654_v2  ;;  %v5328_v43 = vpop.f32.mrf.mxu1  ;;  %v5642_v34 = vadd.f32 1.0, %v7617_v45  ;;  %v9802_v61 = vadd.f32 %v9592_v62, %v388_v60  ;;  %v372_v62 = vld [vmem:[#allocation8 + $0x1f0] sm:$0xff] }
 0x774   :  { %v4695_v7 = vadd.f32 %v4679_v8, %v4663_v15  ;;  %v5531_v46 = vadd.f32 1.0, %v7619_v29  ;;  %7638 = vpow2.f32 %v6199_v51  ;;  %v6200_v38 = vmul.f32 -1.442695, %v5471_v6  ;;  %v392_v0 = vld [vmem:[#allocation8 + $0x290] sm:$0xff] }
 0x775   :  { %7640 = vrcp.f32 %v5641_v42  ;;  %v5583_v3 = vadd.f32 %v5325_v28, %v9752_v32  ;;  %v5329_v49 = vadd.f32 %v5328_v43, %v9646_v13  ;;  %v5330_v53 = vpop.f32.mrf.mxu1  ;;  %v7621_v9 = vpop.eup %7620  ;;  %v5402_v21 = vadd.f32 %v5401_v5, %v9651_v25 }
 0x776   :  { %5815 = vst [vmem:[#allocation19 + $0x78] sm:$0xff] %v4695_v7  ;;  %7642 = vrcp.f32 %v5531_v46  ;;  %v5331_v33 = vadd.f32 %v5330_v53, %v9654_v2  ;;  %v9807_v44 = vadd.f32 %v9594_v40, %v378_v30  ;;  %v9811_v31 = vadd.f32 %v9597_v47, %v389_v24  ;;  %v9813_v5 = vpop.f32.mrf.mxu0  ;;  %v10202_v7 = vld [vmem:[#allocation48_spill] sm:$0xff] }
 0x777   :  { %v7623_v1 = vpop.eup %7622  ;;  %7644 = vpow2.f32 %v6215_v56  ;;  %v6216_v36 = vmul.f32 -1.442695, %v5583_v3  ;;  %v5472_v32 = vadd.f32 %v5329_v49, %v9758_v17  ;;  %v5332_v14 = vpop.f32.mrf.mxu1  ;;  %v5405_v40 = vadd.f32 %v5404_v18, %v9651_v25  ;;  %v394_v18 = vld [vmem:[#allocation8 + $0x2a0] sm:$0xff] }
 0x778   :  { %v7625_v20 = vpop.eup %7624  ;;  %v5688_v51 = vmul.f32 %v7623_v1, %v5402_v21  ;;  %7646 = vpow2.f32 %v6200_v38  ;;  %v5333_v59 = vadd.f32 %v5332_v14, %v9646_v13  ;;  %v5643_v4 = vadd.f32 1.0, %v7621_v9  ;;  %v5417_v43 = vpop.f32.mrf.mxu0 }
 0x779   :  { %7648 = vrcp.f32 %v5642_v34  ;;  %v5532_v42 = vadd.f32 1.0, %v7625_v20  ;;  %v5334_v17 = vpop.f32.mrf.mxu1  ;;  %v6201_v45 = vmul.f32 -1.442695, %v5472_v32  ;;  %v5584_v15 = vadd.f32 %v5331_v33, %v9768_v16  ;;  %v397_v34 = vld [vmem:[#allocation8 + $0x2b8] sm:$0xff]  ;;  %v10203_v32 = vld [vmem:[#allocation36_spill] sm:$0xff] }
 0x77a   :  { %v7627_v35 = vpop.eup %7626  ;;  %v5704_v47 = vadd.f32 %v5688_v51, %v9772_v52  ;;  %7650 = vpow2.f32 %v6216_v36  ;;  %v9820_v8 = vadd.f32 %v9599_v55, %v372_v62  ;;  %v9823_v6 = vadd.f32 %v9606_v39, %v391_v27  ;;  %v375_v55 = vld [vmem:[#allocation8 + $0x208] sm:$0xff]  ;;  %v10204_v20 = vld [vmem:[#allocation42_spill] sm:$0xff]  ;;  %v9849_v51 = vpop.f32.mrf.mxu0 }
 0x77b   :  { %v7629_v50 = vpop.eup %7628  ;;  %7652 = vrcp.f32 %v5532_v42  ;;  %v5473_v29 = vadd.f32 %v5333_v59, %v9775_v48  ;;  %v5338_v60 = vpop.f32.mrf.mxu1  ;;  %v9827_v28 = vadd.f32 %v9604_v58, %v381_v41  ;;  %v5335_v16 = vadd.f32 %v5334_v17, %v9654_v2  ;;  %v395_v39 = vld [vmem:[#allocation8 + $0x2a8] sm:$0xff] }
 0x77c   :  { %v7631_v56 = vpop.eup %7630  ;;  %7654 = vtanh.f32 %v5704_v47  ;;  %v5689_v52 = vmul.f32 %v7629_v50, %v5405_v40  ;;  %v9831_v30 = vadd.f32 %v10202_v7, %v392_v0  ;;  %v5644_v46 = vadd.f32 1.0, %v7627_v35  ;;  %v398_v40 = vld [vmem:[#allocation8 + $0x2c0] sm:$0xff] }
 0x77d   :  { %7656 = vrcp.f32 %v5643_v4  ;;  %v5533_v38 = vadd.f32 1.0, %v7631_v56  ;;  %v5340_v48 = vpop.f32.mrf.mxu1  ;;  %v6217_v3 = vmul.f32 -1.442695, %v5584_v15  ;;  %v5339_v49 = vadd.f32 %v5338_v60, %v9646_v13 }
 0x77e   :  { %v9833_v24 = vpop.eup %7632  ;;  %v5705_v58 = vadd.f32 %v5689_v52, %v9796_v57  ;;  %7658 = vpow2.f32 %v6201_v45  ;;  %v5410_v9 = vadd.f32 %v9760_v10, %v9651_v25  ;;  %v6202_v21 = vmul.f32 -1.442695, %v5473_v29  ;;  %v10205_v57 = vld [vmem:[#allocation69_spill] sm:$0xff]  ;;  %v10206_v10 = vld [vmem:[#allocation64_spill] sm:$0xff] }
 0x77f   :  { %v7635_v53 = vpop.eup %7634  ;;  %7660 = vrcp.f32 %v5533_v38  ;;  %v5585_v33 = vadd.f32 %v5335_v16, %v9791_v54  ;;  %v5342_v1 = vpop.f32.mrf.mxu1  ;;  %v9841_v14 = vadd.f32 %v10203_v32, %v375_v55  ;;  %v9844_v62 = vadd.f32 %v10204_v20, %v394_v18  ;;  %v400_v54 = vld [vmem:[#allocation8 + $0x2d0] sm:$0xff] }
 0x780   :  { %v7637_v36 = vpop.eup %7636  ;;  %v9847_v27 = vadd.f32 %v10205_v57, %v395_v39  ;;  %7662 = vtanh.f32 %v5705_v58  ;;  %v9852_v41 = vadd.f32 %v10206_v10, %v397_v34  ;;  %v5413_v4 = vadd.f32 %v9786_v26, %v9651_v25  ;;  %v5420_v55 = vpop.f32.mrf.mxu0 }
 0x781   :  { %v7639_v59 = vpop.eup %7638  ;;  %v5690_v42 = vmul.f32 %v7637_v36, %v5410_v9  ;;  %7664 = vrcp.f32 %v5644_v46  ;;  %v5344_v17 = vpop.f32.mrf.mxu1  ;;  %v5645_v0 = vadd.f32 1.0, %v7635_v53  ;;  %v5474_v45 = vadd.f32 %v5339_v49, %v9802_v61 }
 0x782   :  { %v9856_v35 = vpop.eup %7640  ;;  %v5534_v47 = vadd.f32 1.0, %v7639_v59  ;;  %7666 = vpow2.f32 %v6217_v3  ;;  %v6218_v29 = vmul.f32 -1.442695, %v5585_v33  ;;  %v5343_v60 = vadd.f32 %v5342_v1, %v9646_v13  ;;  %v10208_v1 = vld [vmem:[#allocation32_spill] sm:$0xff] }
 0x783   :  { %v7643_v15 = vpop.eup %7642  ;;  %v5706_v50 = vadd.f32 %v5690_v42, %v9765_v23  ;;  %7668 = vpow2.f32 %v6202_v21  ;;  %v5348_v56 = vpop.f32.mrf.mxu1  ;;  %v9862_v26 = vadd.f32 %v9690_v19, %v398_v40  ;;  %v9865_v16 = vadd.f32 %v9707_v11, %v400_v54 }
 0x784   :  { %v7645_v52 = vpop.eup %7644  ;;  %v5691_v7 = vmul.f32 %v7643_v15, %v5413_v4  ;;  %7670 = vrcp.f32 %v5534_v47  ;;  %v9869_v23 = vadd.f32 %v9813_v5, %v9651_v25  ;;  %v5418_v61 = vadd.f32 %v5417_v43, %v9651_v25  ;;  %v10207_v43 = vld [vmem:[#allocation51_spill] sm:$0xff] }
 0x785   :  { %v7647_v18 = vpop.eup %7646  ;;  %7672 = vtanh.f32 %v5706_v50  ;;  %v5341_v39 = vadd.f32 %v5340_v48, %v9654_v2  ;;  %v5350_v46 = vpop.f32.mrf.mxu1  ;;  %v5646_v11 = vadd.f32 1.0, %v7645_v52  ;;  %v5421_v3 = vadd.f32 %v5420_v55, %v9651_v25 }
 0x786   :  { %v9873_v38 = vpop.eup %7648  ;;  %v5707_v19 = vadd.f32 %v5691_v7, %v9784_v63  ;;  %7674 = vrcp.f32 %v5645_v0  ;;  %v5535_v34 = vadd.f32 1.0, %v7647_v18  ;;  %v6203_v49 = vmul.f32 -1.442695, %v5474_v45 }
 0x787   :  { %v7651_v58 = vpop.eup %7650  ;;  %7676 = vpow2.f32 %v6218_v29  ;;  %v5475_v5 = vadd.f32 %v5343_v60, %v9823_v6  ;;  %v5352_v53 = vpop.f32.mrf.mxu1  ;;  %v5768_v48 = vmul.f32 %v9833_v24, %v10207_v43  ;;  %v5736_v21 = vsub.f32 1.0, %v9833_v24 }
 0x788   :  { %v7653_v9 = vpop.eup %7652  ;;  %7678 = vtanh.f32 %v5707_v19  ;;  %v5349_v63 = vadd.f32 %v5348_v56, %v9646_v13  ;;  %v5769_v36 = vmul.f32 %v9856_v35, %v10208_v1  ;;  %v5345_v20 = vadd.f32 %v5344_v17, %v9654_v2 }
 0x789   :  { %v7655_v33 = vpop.eup %7654  ;;  %v5692_v32 = vmul.f32 %v7653_v9, %v5418_v61  ;;  %7680 = vrcp.f32 %v5535_v34  ;;  %v9885_v57 = vpop.f32.mrf.mxu1  ;;  %v5737_v10 = vsub.f32 1.0, %v9856_v35  ;;  %v5586_v24 = vadd.f32 %v5341_v39, %v9811_v31 }
 0x78a   :  { %v9887_v6 = vpop.eup %7656  ;;  %v5752_v59 = vmul.f32 %v7655_v33, %v5736_v21  ;;  %7682 = vrcp.f32 %v5646_v11  ;;  %v5647_v4 = vadd.f32 1.0, %v7651_v58  ;;  %v6204_v42 = vmul.f32 -1.442695, %v5475_v5  ;;  %v9902_v61 = vpop.f32.mrf.mxu0 }
 0x78b   :  { %v7659_v40 = vpop.eup %7658  ;;  %v5708_v54 = vadd.f32 %v5692_v32, %v9820_v8  ;;  %7684 = vpow2.f32 %v6203_v49  ;;  %v5358_v0 = vpop.f32.mrf.mxu1  ;;  %v5476_v15 = vadd.f32 %v5349_v63, %v9844_v62  ;;  %v5353_v50 = vadd.f32 %v5352_v53, %v9646_v13  ;;  %v10210_v32 = vld [vmem:[#allocation55_spill] sm:$0xff] }
 0x78c   :  { %v7661_v47 = vpop.eup %7660  ;;  %v5784_v45 = vadd.f32 %v5768_v48, %v5752_v59  ;;  %v5536_v17 = vadd.f32 1.0, %v7659_v40  ;;  %v5587_v60 = vadd.f32 %v5345_v20, %v9831_v30  ;;  %v5351_v31 = vadd.f32 %v5350_v46, %v9654_v2  ;;  %v5433_v63 = vpop.f32.mrf.mxu0 }
 0x78d   :  { %v7663_v29 = vpop.eup %7662  ;;  %7686 = vtanh.f32 %v5708_v54  ;;  %v5693_v35 = vmul.f32 %v7661_v47, %v5421_v3  ;;  %v6219_v52 = vmul.f32 -1.442695, %v5586_v24  ;;  %v5359_v7 = vadd.f32 %v5358_v0, %v9646_v13  ;;  %v5360_v39 = vpop.f32.mrf.mxu1 }
 0x78e   :  { %v9896_v56 = vpop.eup %7664  ;;  %5817 = vst [vmem:[#allocation19 + $0x80] sm:$0xff] %v5784_v45  ;;  %v5753_v8 = vmul.f32 %v7663_v29, %v5737_v10  ;;  %7688 = vrcp.f32 %v5536_v17  ;;  %v5738_v62 = vsub.f32 1.0, %v9873_v38  ;;  %v5429_v18 = vadd.f32 %v9849_v51, %v9651_v25  ;;  %v10209_v51 = vld [vmem:[#allocation27_spill] sm:$0xff] }
 0x78f   :  { %v7667_v55 = vpop.eup %7666  ;;  %v5709_v30 = vadd.f32 %v5693_v35, %v9841_v14  ;;  %7690 = vpow2.f32 %v6204_v42  ;;  %v6205_v11 = vmul.f32 -1.442695, %v5476_v15  ;;  %v5477_v34 = vadd.f32 %v5353_v50, %v9852_v41  ;;  %v5362_v1 = vpop.f32.mrf.mxu1  ;;  %v384_v35 = vld [vmem:[#allocation8 + $0x250] sm:$0xff] }
 0x790   :  { %v7669_v46 = vpop.eup %7668  ;;  %v5785_v19 = vadd.f32 %v5769_v36, %v5753_v8  ;;  %7692 = vrcp.f32 %v5647_v4  ;;  %v6220_v49 = vmul.f32 -1.442695, %v5587_v60  ;;  %v5588_v5 = vadd.f32 %v5351_v31, %v9847_v27  ;;  %v401_v36 = vld [vmem:[#allocation8 + $0x2d8] sm:$0xff] }
 0x791   :  { %v7671_v58 = vpop.eup %7670  ;;  %7694 = vtanh.f32 %v5709_v30  ;;  %v5537_v3 = vadd.f32 1.0, %v7669_v46  ;;  %v5770_v9 = vmul.f32 %v9873_v38, %v10209_v51  ;;  %v5478_v43 = vadd.f32 %v5359_v7, %v9865_v16  ;;  %v403_v16 = vld [vmem:[#allocation8 + $0x2e8] sm:$0xff]  ;;  %v10212_v46 = vld [vmem:[#allocation49_spill] sm:$0xff] }
 0x792   :  { %v7673_v53 = vpop.eup %7672  ;;  %5818 = vst [vmem:[#allocation19 + $0x88] sm:$0xff] %v5785_v19  ;;  %v5694_v14 = vmul.f32 %v7671_v58, %v9869_v23  ;;  %7696 = vpow2.f32 %v6219_v52  ;;  %v5739_v41 = vsub.f32 1.0, %v9887_v6  ;;  %v5648_v33 = vadd.f32 1.0, %v7667_v55  ;;  %v387_v51 = vld [vmem:[#allocation8 + $0x268] sm:$0xff] }
 0x793   :  { %v9911_v48 = vpop.eup %7674  ;;  %v5754_v21 = vmul.f32 %v7673_v53, %v5738_v62  ;;  %7698 = vrcp.f32 %v5537_v3  ;;  %v5771_v20 = vmul.f32 %v9887_v6, %v10210_v32  ;;  %v6206_v23 = vmul.f32 -1.442695, %v5477_v34  ;;  %v9923_v6 = vpop.f32.mrf.mxu0  ;;  %v10211_v62 = vld [vmem:[#allocation28_spill] sm:$0xff] }
 0x794   :  { %v7677_v27 = vpop.eup %7676  ;;  %v5710_v38 = vadd.f32 %v5694_v14, %v9807_v44  ;;  %7700 = vpow2.f32 %v6205_v11  ;;  %v6221_v24 = vmul.f32 -1.442695, %v5588_v5  ;;  %v5355_v40 = vadd.f32 %v9885_v57, %v9654_v2  ;;  %v5364_v5 = vpop.f32.mrf.mxu1 }
 0x795   :  { %v7679_v59 = vpop.eup %7678  ;;  %v5786_v10 = vadd.f32 %v5770_v9, %v5754_v21  ;;  %7702 = vpow2.f32 %v6220_v49  ;;  %v6207_v42 = vmul.f32 -1.442695, %v5478_v43  ;;  %v5363_v0 = vadd.f32 %v5362_v1, %v9646_v13  ;;  %v5436_v30 = vpop.f32.mrf.mxu0  ;;  %v404_v21 = vld [vmem:[#allocation8 + $0x2f0] sm:$0xff] }
 0x796   :  { %v7681_v54 = vpop.eup %7680  ;;  %v5755_v4 = vmul.f32 %v7679_v59, %v5739_v41  ;;  %7704 = vtanh.f32 %v5710_v38  ;;  %v4972_v44 = vadd.f32 %v9722_v22, %v401_v36  ;;  %v5361_v17 = vadd.f32 %v5360_v39, %v9654_v2 }
 0x797   :  { %v9920_v47 = vpop.eup %7682  ;;  %5819 = vst [vmem:[#allocation19 + $0x90] sm:$0xff] %v5786_v10  ;;  %v5695_v45 = vmul.f32 %v7681_v54, %v5429_v18  ;;  %7706 = vrcp.f32 %v5648_v33  ;;  %v4974_v57 = vadd.f32 %v9730_v12, %v403_v16  ;;  %v5740_v29 = vsub.f32 1.0, %v9896_v56 }
 0x798   :  { %v7685_v15 = vpop.eup %7684  ;;  %v5787_v50 = vadd.f32 %v5771_v20, %v5755_v4  ;;  %7708 = vpow2.f32 %v6206_v23  ;;  %v5589_v22 = vadd.f32 %v5355_v40, %v9862_v26  ;;  %v5434_v8 = vadd.f32 %v5433_v63, %v9651_v25  ;;  %v10213_v63 = vld [vmem:[#allocation33_spill] sm:$0xff]  ;;  %v10214_v20 = vld [vmem:[#allocation66_spill] sm:$0xff] }
 0x799   :  { %v5711_v13 = vadd.f32 %v5695_v45, %v9827_v28  ;;  %v5538_v60 = vadd.f32 1.0, %v7685_v15  ;;  %7710 = vpow2.f32 %v6221_v24  ;;  %v5649_v52 = vadd.f32 1.0, %v7677_v27 }
 0x79a   :  { %v7687_v31 = vpop.eup %7686  ;;  %5820 = vst [vmem:[#allocation19 + $0x98] sm:$0xff] %v5787_v50  ;;  %7712 = vpow2.f32 %v6207_v42  ;;  %v5479_v7 = vadd.f32 %v5363_v0, %v4974_v57  ;;  %v5772_v18 = vmul.f32 %v9896_v56, %v10211_v62  ;;  %v5590_v39 = vadd.f32 %v5361_v17, %v4972_v44  ;;  %v9944_v17 = vpop.f32.mrf.mxu0 }
 0x79b   :  { %v7689_v55 = vpop.eup %7688  ;;  %v5756_v12 = vmul.f32 %v7687_v31, %v5740_v29  ;;  %7714 = vtanh.f32 %v5711_v13  ;;  %v5045_v19 = vadd.f32 %v10212_v46, %v384_v35  ;;  %v5741_v58 = vsub.f32 1.0, %v9911_v48  ;;  %v390_v35 = vld [vmem:[#allocation8 + $0x280] sm:$0xff] }
 0x79c   :  { %v7691_v28 = vpop.eup %7690  ;;  %v5696_v11 = vmul.f32 %v7689_v55, %v5434_v8  ;;  %7716 = vrcp.f32 %v5538_v60  ;;  %v6222_v49 = vmul.f32 -1.442695, %v5589_v22  ;;  %v5437_v9 = vadd.f32 %v5436_v30, %v9651_v25  ;;  %v10216_v55 = vld [vmem:[#allocation52_spill] sm:$0xff] }
 0x79d   :  { %v7693_v26 = vpop.eup %7692  ;;  %v5788_v34 = vadd.f32 %v5772_v18, %v5756_v12  ;;  %v5539_v3 = vadd.f32 1.0, %v7691_v28  ;;  %7718 = vrcp.f32 %v5649_v52  ;;  %v6208_v14 = vmul.f32 -1.442695, %v5479_v7  ;;  %v5449_v52 = vpop.f32.mrf.mxu0  ;;  %v10217_v18 = vld [vmem:[#allocation47_spill] sm:$0xff] }
 0x79e   :  { %v7695_v53 = vpop.eup %7694  ;;  %v5712_v56 = vadd.f32 %v5696_v11, %v5045_v19  ;;  %v5773_v33 = vmul.f32 %v9911_v48, %v10213_v63  ;;  %v6223_v1 = vmul.f32 -1.442695, %v5590_v39  ;;  %v5365_v36 = vadd.f32 %v5364_v5, %v9654_v2  ;;  %v10215_v2 = vld [vmem:[#allocation37_spill] sm:$0xff]  ;;  %v393_v39 = vld [vmem:[#allocation8 + $0x298] sm:$0xff] }
 0x79f   :  { %v7697_v43 = vpop.eup %7696  ;;  %5821 = vst [vmem:[#allocation19 + $0xa0] sm:$0xff] %v5788_v34  ;;  %v5757_v41 = vmul.f32 %v7695_v53, %v5741_v58  ;;  %7720 = vrcp.f32 %v5539_v3  ;;  %v5048_v38 = vadd.f32 %v10214_v20, %v387_v51  ;;  %v4976_v10 = vadd.f32 %v9744_v37, %v404_v21  ;;  %v10218_v5 = vld [vmem:[#allocation50_spill] sm:$0xff]  ;;  %v6800_v53 = vpop.f32.mrf.mxu0 }
 0x7a0   :  { %v7699_v27 = vpop.eup %7698  ;;  %7722 = vtanh.f32 %v5712_v56  ;;  %v5742_v24 = vsub.f32 1.0, %v9920_v47  ;;  %v5774_v0 = vmul.f32 %v9920_v47, %v10215_v2  ;;  %v5650_v37 = vadd.f32 1.0, %v7697_v43 }
 0x7a1   :  { %v7701_v32 = vpop.eup %7700  ;;  %v5789_v23 = vadd.f32 %v5773_v33, %v5757_v41  ;;  %v5697_v59 = vmul.f32 %v7699_v27, %v5437_v9  ;;  %7724 = vpow2.f32 %v6222_v49  ;;  %v5591_v44 = vadd.f32 %v5365_v36, %v4976_v10 }
 0x7a2   :  { %v7703_v16 = vpop.eup %7702  ;;  %v5540_v40 = vadd.f32 1.0, %v7701_v32  ;;  %7726 = vpow2.f32 %v6208_v14  ;;  %v5743_v13 = vsub.f32 1.0, %v7693_v26  ;;  %v5442_v22 = vadd.f32 %v9902_v61, %v9651_v25  ;;  %v10219_v14 = vld [vmem:[#allocation29_spill] sm:$0xff]  ;;  %v5452_v32 = vpop.f32.mrf.mxu0 }
 0x7a3   :  { %v7705_v48 = vpop.eup %7704  ;;  %5822 = vst [vmem:[#allocation19 + $0xa8] sm:$0xff] %v5789_v23  ;;  %v5713_v54 = vadd.f32 %v5697_v59, %v5048_v38  ;;  %7728 = vpow2.f32 %v6223_v1  ;;  %v6224_v31 = vmul.f32 -1.442695, %v5591_v44  ;;  %v5775_v12 = vmul.f32 %v7693_v26, %v10216_v55  ;;  %v10220_v59 = vld [vmem:[#allocation73_spill] sm:$0xff]  ;;  %v402_v44 = vld [vmem:[#allocation8 + $0x2e0] sm:$0xff] }
 0x7a4   :  { %v7707_v4 = vpop.eup %7706  ;;  %v5758_v42 = vmul.f32 %v7705_v48, %v5742_v24  ;;  %7730 = vrcp.f32 %v5540_v40  ;;  %v5651_v62 = vadd.f32 1.0, %v7703_v16  ;;  %v5053_v30 = vadd.f32 %v10217_v18, %v390_v35  ;;  %v399_v24 = vld [vmem:[#allocation8 + $0x2c8] sm:$0xff]  ;;  %v10221_v48 = vld [vmem:[#allocation30_spill] sm:$0xff] }
 0x7a5   :  { %v7709_v45 = vpop.eup %7708  ;;  %7732 = vtanh.f32 %v5713_v54  ;;  %v5445_v61 = vadd.f32 %v9923_v6, %v9651_v25  ;;  %v5744_v34 = vsub.f32 1.0, %v7707_v4  ;;  %v5056_v26 = vadd.f32 %v10218_v5, %v393_v39  ;;  %v396_v6 = vld [vmem:[#allocation8 + $0x2b0] sm:$0xff]  ;;  %v405_v39 = vld [vmem:[#allocation8 + $0x2f8] sm:$0xff] }
 0x7a6   :  { %v7711_v15 = vpop.eup %7710  ;;  %v5790_v57 = vadd.f32 %v5774_v0, %v5758_v42  ;;  %v5541_v50 = vadd.f32 1.0, %v7709_v45  ;;  %v5776_v43 = vmul.f32 %v7707_v4, %v10219_v14  ;;  %v5450_v33 = vadd.f32 %v5449_v52, %v9651_v25 }
 0x7a7   :  { %v7713_v29 = vpop.eup %7712  ;;  %v5652_v3 = vadd.f32 1.0, %v7711_v15  ;;  %v5061_v16 = vadd.f32 %v10220_v59, %v396_v6  ;;  %v5453_v4 = vadd.f32 %v5452_v32, %v9651_v25  ;;  %v10222_v15 = vld [vmem:[#allocation71_spill] sm:$0xff]  ;;  %v10229_v59 = vld [vmem:[#allocation61_spill] sm:$0xff] }
 0x7a8   :  { %v7715_v60 = vpop.eup %7714  ;;  %5823 = vst [vmem:[#allocation19 + $0xb0] sm:$0xff] %v5790_v57  ;;  %7734 = vrcp.f32 %v5541_v50  ;;  %v5542_v47 = vadd.f32 1.0, %v7713_v29  ;;  %v5064_v57 = vadd.f32 %v10222_v15, %v399_v24  ;;  %v5458_v50 = vadd.f32 %v9944_v17, %v9651_v25  ;;  %v10227_v6 = vld [vmem:[#allocation31_spill] sm:$0xff] }
 0x7a9   :  { %v7717_v8 = vpop.eup %7716  ;;  %v5759_v7 = vmul.f32 %v7715_v60, %v5743_v13  ;;  %7736 = vrcp.f32 %v5650_v37  ;;  %v10223_v13 = vld [vmem:[#allocation43_spill] sm:$0xff] }
 0x7aa   :  { %v5698_v28 = vmul.f32 %v7717_v8, %v5442_v22  ;;  %7738 = vrcp.f32 %v5542_v47  ;;  %v7719_v46 = vpop.eup %7718  ;;  %v5069_v60 = vadd.f32 %v10223_v13, %v402_v44 }
 0x7ab   :  { %v5791_v19 = vadd.f32 %v5775_v12, %v5759_v7  ;;  %7740 = vpow2.f32 %v6224_v31  ;;  %v5745_v20 = vsub.f32 1.0, %v7719_v46  ;;  %v5777_v54 = vmul.f32 %v7719_v46, %v10221_v48 }
 0x7ac   :  { %v7721_v11 = vpop.eup %7720  ;;  %v5714_v58 = vadd.f32 %v5698_v28, %v5053_v30  ;;  %7742 = vrcp.f32 %v5651_v62  ;;  %v10224_v62 = vld [vmem:[#allocation54_spill] sm:$0xff] }
 0x7ad   :  { %v7723_v49 = vpop.eup %7722  ;;  %5824 = vst [vmem:[#allocation19 + $0xb8] sm:$0xff] %v5791_v19  ;;  %v5699_v51 = vmul.f32 %v7721_v11, %v5445_v61  ;;  %v5461_v61 = vadd.f32 %v6800_v53, %v9651_v25 }
 0x7ae   :  { %v7725_v9 = vpop.eup %7724  ;;  %v5760_v56 = vmul.f32 %v7723_v49, %v5744_v34  ;;  %7744 = vtanh.f32 %v5714_v58  ;;  %v10225_v58 = vld [vmem:[#allocation56_spill] sm:$0xff]  ;;  %v10226_v49 = vld [vmem:[#allocation53_spill] sm:$0xff] }
 0x7af   :  { %v7727_v21 = vpop.eup %7726  ;;  %v5715_v41 = vadd.f32 %v5699_v51, %v5056_v26  ;;  %7746 = vrcp.f32 %v5652_v3  ;;  %v5653_v38 = vadd.f32 1.0, %v7725_v9  ;;  %v5072_v5 = vadd.f32 %v10226_v49, %v405_v39 }
 0x7b0   :  { %v7729_v63 = vpop.eup %7728  ;;  %v5792_v1 = vadd.f32 %v5776_v43, %v5760_v56  ;;  %v5543_v27 = vadd.f32 1.0, %v7727_v21 }
 0x7b1   :  { %v7731_v36 = vpop.eup %7730  ;;  %7748 = vtanh.f32 %v5715_v41  ;;  %v5654_v2 = vadd.f32 1.0, %v7729_v63 }
 0x7b2   :  { %v7733_v23 = vpop.eup %7732  ;;  %5825 = vst [vmem:[#allocation19 + $0xc0] sm:$0xff] %v5792_v1  ;;  %v5700_v10 = vmul.f32 %v7731_v36, %v5450_v33  ;;  %7750 = vrcp.f32 %v5543_v27  ;;  %v10228_v27 = vld [vmem:[#allocation35_spill] sm:$0xff] }
 0x7b3   :  { %v5761_v40 = vmul.f32 %v7733_v23, %v5745_v20  ;;  %7752 = vrcp.f32 %v5653_v38 }
 0x7b4   :  { %v5716_v42 = vadd.f32 %v5700_v10, %v5061_v16 }
 0x7b5   :  { %v7735_v0 = vpop.eup %7734  ;;  %v5793_v45 = vadd.f32 %v5777_v54, %v5761_v40 }
 0x7b6   :  { %v7737_v37 = vpop.eup %7736  ;;  %7754 = vtanh.f32 %v5716_v42  ;;  %v5701_v29 = vmul.f32 %v7735_v0, %v5453_v4  ;;  %v10230_v4 = vld [vmem:[#allocation62_spill] sm:$0xff] }
 0x7b7   :  { %v7739_v35 = vpop.eup %7738  ;;  %5826 = vst [vmem:[#allocation19 + $0xc8] sm:$0xff] %v5793_v45  ;;  %7756 = vrcp.f32 %v5654_v2  ;;  %v5746_v52 = vsub.f32 1.0, %v7737_v37  ;;  %v5778_v18 = vmul.f32 %v7737_v37, %v10224_v62 }
 0x7b8   :  { %v5717_v22 = vadd.f32 %v5701_v29, %v5064_v57  ;;  %v5702_v47 = vmul.f32 %v7739_v35, %v5458_v50  ;;  %v7741_v31 = vpop.eup %7740 }
 0x7b9   :  { %v7743_v8 = vpop.eup %7742  ;;  %v5655_v17 = vadd.f32 1.0, %v7741_v31 }
 0x7ba   :  { %7758 = vtanh.f32 %v5717_v22  ;;  %v5718_v7 = vadd.f32 %v5702_v47, %v5069_v60  ;;  %v5747_v28 = vsub.f32 1.0, %v7743_v8  ;;  %v5779_v3 = vmul.f32 %v7743_v8, %v10225_v58 }
 0x7bb   :  { %v7745_v55 = vpop.eup %7744 }
 0x7bc   :  { %v5762_v12 = vmul.f32 %v7745_v55, %v5746_v52  ;;  %7760 = vtanh.f32 %v5718_v7  ;;  %v7747_v30 = vpop.eup %7746 }
 0x7bd   :  { %7762 = vrcp.f32 %v5655_v17  ;;  %v5748_v56 = vsub.f32 1.0, %v7747_v30  ;;  %v5780_v41 = vmul.f32 %v7747_v30, %v10227_v6 }
 0x7be   :  { %v7749_v46 = vpop.eup %7748  ;;  %v5794_v19 = vadd.f32 %v5778_v18, %v5762_v12 }
 0x7bf   :  { %v7751_v11 = vpop.eup %7750  ;;  %v5763_v34 = vmul.f32 %v7749_v46, %v5747_v28 }
 0x7c0   :  { %5827 = vst [vmem:[#allocation19 + $0xd0] sm:$0xff] %v5794_v19  ;;  %v5703_v26 = vmul.f32 %v7751_v11, %v5461_v61  ;;  %v7753_v9 = vpop.eup %7752 }
 0x7c1   :  { %v5795_v51 = vadd.f32 %v5779_v3, %v5763_v34  ;;  %v5749_v63 = vsub.f32 1.0, %v7753_v9  ;;  %v5781_v36 = vmul.f32 %v7753_v9, %v10228_v27 }
 0x7c2   :  { %v5719_v14 = vadd.f32 %v5703_v26, %v5072_v5 }
 0x7c3   :  { %v7755_v43 = vpop.eup %7754  ;;  %5828 = vst [vmem:[#allocation19 + $0xd8] sm:$0xff] %v5795_v51 }
 0x7c4   :  { %v5764_v21 = vmul.f32 %v7755_v43, %v5748_v56  ;;  %7764 = vtanh.f32 %v5719_v14  ;;  %v7757_v25 = vpop.eup %7756 }
 0x7c5   :  { %v5750_v32 = vsub.f32 1.0, %v7757_v25  ;;  %v5782_v16 = vmul.f32 %v7757_v25, %v10229_v59 }
 0x7c6   :  { %v5796_v53 = vadd.f32 %v5780_v41, %v5764_v21 }
 0x7c7   :  { %v7759_v33 = vpop.eup %7758 }
 0x7c8   :  { %5829 = vst [vmem:[#allocation19 + $0xe0] sm:$0xff] %v5796_v53  ;;  %v5765_v1 = vmul.f32 %v7759_v33, %v5749_v63 }
 0x7c9   :  { %v7761_v20 = vpop.eup %7760 }
 0x7ca   :  { %v5797_v38 = vadd.f32 %v5781_v36, %v5765_v1  ;;  %v5766_v23 = vmul.f32 %v7761_v20, %v5750_v32  ;;  %v7763_v24 = vpop.eup %7762 }
 0x7cb   :  { %v5751_v40 = vsub.f32 1.0, %v7763_v24  ;;  %v5783_v42 = vmul.f32 %v7763_v24, %v10230_v4 }
 0x7cc   :  { %5830 = vst [vmem:[#allocation19 + $0xe8] sm:$0xff] %v5797_v38  ;;  %v5798_v10 = vadd.f32 %v5782_v16, %v5766_v23 }
 0x7ce   :  { %5831 = vst [vmem:[#allocation19 + $0xf0] sm:$0xff] %v5798_v10 }
 0x7d1   :  { %v7765_v48 = vpop.eup %7764 }
 0x7d2   :  { %v5767_v54 = vmul.f32 %v7765_v48, %v5751_v40 }
 0x7d4   :  { %v5799_v2 = vadd.f32 %v5783_v42, %v5767_v54 }
 0x7d6   :  { %5832 = vst [vmem:[#allocation19 + $0xf8] sm:$0xff] %v5799_v2 }
 0x7d7   :  { %7977 = shalt.err (!%p7974_p12)
}
 0x7d8   :  { %s8019_s21 = smov 128   ;;  %s8020_s0 = smov 8  }
 0x7d9   :  { %5844 = dma.vmem_to_hbm [thread:$0]  %s5839_s19, 4096, %s9985_s12, [#allocation4], %s8019_s21, %s8019_s21, %s8020_s0  }
 0x7da   :  { %7998 = dma.done.wait [#allocation4], 4096  }
 0x7db   :  { %7999 = vsyncadd [#allocation4], 4294963200 }
 0x7dc   :  { %5848 = vsyncpa [#allocation3], 1 }
 0x7dd   :  { %5849 = vsyncpa [#allocation6], 1 }
 0x7de   :  { %5850 = vsyncpa [#allocation9], 1 }
 0x7df   :  { %5851 = vsyncpa [#allocation12], 1 }
 0x7e0   :  { %5852 = vsyncpa [#allocation15], 1 }
 0x7e1   :  { %5853 = vsyncpa [#allocation18], 1 }
 0x7e2   :  { %5854 = vsyncpa [#allocation4], 1 }

</bundles_post_ra>
